<compile_context>
chip_gen: v7x
topology: tpu7x:2x2x1
jax: 0.10.0
libtpu: 0.0.40
codegen_flags: <defaults>
</compile_context>

<pallas_src>
import functools

import jax
import jax.numpy as jnp
from jax.experimental import pallas as pl
from jax.experimental.pallas import tpu as pltpu

_HALO = 8  # sublane-aligned column offset of the interior inside the pad scratch


def _residual_block_kernel(x_ref, w1_ref, w2_ref, b1_ref, b2_ref, o_ref,
                           pad_ref, *, use_residual):
    """One (image, repeat) grid step.

    x_ref : (H, W, C)          input image (only consumed at repeat 0)
    w1_ref: (C, Cmid)          1x1 conv weight, BN scale folded, bf16
    w2_ref: (9*Cmid, C)        3x3 conv weight ((ky,kx,cin) flattened), BN folded, bf16
    b1_ref: (1, Cmid)          folded BN bias (f32)
    b2_ref: (1, C)             folded BN bias (f32)
    o_ref : (H, W, C)          carried activation / output (resident across repeats)
    pad_ref: (H+2, W+16, Cmid) bf16 zero-padded scratch for the 3x3 stencil
    """
    r = pl.program_id(1)
    H, W, C = o_ref.shape
    Cmid = w1_ref.shape[1]

    # Once per image: zero the pad scratch (halo is never written afterwards; the
    # interior is fully overwritten on every repeat, so stale data cannot leak
    # through the halo reads) and seed the carried activation from the input.
    # Gated on the repeat axis only, so it stays correct if the batch axis is
    # sharded across TensorCores.
    @pl.when(r == 0)
    def _():
        pad_ref[...] = jnp.zeros(pad_ref.shape, pad_ref.dtype)
        o_ref[...] = x_ref[...]

    # ---- CNNBlock 1: 1x1 conv (BN folded) + bias + LeakyReLU(0.1) ----
    lhs1 = o_ref[...].astype(jnp.bfloat16).reshape(H * W, C)
    y1 = jnp.dot(lhs1, w1_ref[...], preferred_element_type=jnp.float32)  # (H*W, Cmid)
    y1 = y1 + b1_ref[...]
    y1 = jnp.maximum(y1, 0.1 * y1)

    # ---- CNNBlock 2: 3x3 conv, padding=1 (BN folded) as one im2col matmul ----
    # Mid activation stored straight into the bf16 pad scratch (the matmul LHS dtype)
    # at a sublane-aligned column offset (_HALO); the single-column zero halos live at
    # columns _HALO-1 and _HALO+W.
    pad_ref[pl.ds(1, H), pl.ds(_HALO, W), :] = (
        y1.astype(pad_ref.dtype).reshape(H, W, Cmid))

    patches = [
        pad_ref[pl.ds(ky, H), pl.ds(_HALO - 1 + kx, W), :]     # (H, W, Cmid) bf16
        for ky in range(3) for kx in range(3)
    ]
    im2col = jnp.concatenate(patches, axis=-1).reshape(H * W, 9 * Cmid)
    y2 = jnp.dot(im2col, w2_ref[...], preferred_element_type=jnp.float32)  # (H*W, C)
    y2 = y2 + b2_ref[...]
    y2 = jnp.maximum(y2, 0.1 * y2)
    y2 = y2.reshape(H, W, C)

    if use_residual:
        # Re-read the carried activation from VMEM for the residual instead of
        # keeping it live across both matmuls.
        y2 = o_ref[...].astype(jnp.float32) + y2
    o_ref[...] = y2.astype(o_ref.dtype)


def _run_block(x_nhwc, kp, use_residual):
    N, H, W, C = x_nhwc.shape
    R, _, Cmid = kp["w1"].shape
    kernel = functools.partial(_residual_block_kernel, use_residual=use_residual)
    return pl.pallas_call(
        kernel,
        out_shape=jax.ShapeDtypeStruct((N, H, W, C), x_nhwc.dtype),
        grid=(N, R),
        in_specs=[
            pl.BlockSpec((None, H, W, C), lambda n, r: (n, 0, 0, 0)),
            pl.BlockSpec((None, C, Cmid), lambda n, r: (r, 0, 0)),
            pl.BlockSpec((None, 9 * Cmid, C), lambda n, r: (r, 0, 0)),
            pl.BlockSpec((None, 1, Cmid), lambda n, r: (r, 0, 0)),
            pl.BlockSpec((None, 1, C), lambda n, r: (r, 0, 0)),
        ],
        # Same output block index for every repeat -> activation stays resident in
        # VMEM across the whole repeat chain; HBM writeback only once per image.
        out_specs=pl.BlockSpec((None, H, W, C), lambda n, r: (n, 0, 0, 0)),
        scratch_shapes=[pltpu.VMEM((H + 2, W + 16, Cmid), jnp.bfloat16)],
        compiler_params=pltpu.CompilerParams(
            dimension_semantics=("parallel", "arbitrary"),
            vmem_limit_bytes=64 * 1024 * 1024,
        ),
    )(x_nhwc, kp["w1"], kp["w2"], kp["b1"], kp["b2"])


def fold_params_for_kernel(params, compute_dtype=jnp.bfloat16):
    """Fold BN scales into conv weights, im2col-flatten the 3x3 weight, stack repeats."""
    w1s, w2s, b1s, b2s = [], [], [], []
    for p in params:
        C, Cmid = p["w1"].shape
        w1s.append((p["w1"] * p["s1"][0][None, :]).astype(compute_dtype))  # (C, Cmid)
        w2 = p["w2"] * p["s2"][0]                                          # (3,3,Cmid,C)
        w2s.append(w2.reshape(9 * Cmid, C).astype(compute_dtype))          # (9*Cmid, C)
        b1s.append(p["b1"].astype(jnp.float32))
        b2s.append(p["b2"].astype(jnp.float32))
    return {
        "w1": jnp.stack(w1s),   # (R, C, Cmid)
        "w2": jnp.stack(w2s),   # (R, 9*Cmid, C)
        "b1": jnp.stack(b1s),   # (R, 1, Cmid)
        "b2": jnp.stack(b2s),   # (R, 1, C)
    }


def residual_block_forward(x_nchw, params, use_residual=True):
    """params: list (one per repeat) of dicts with conv weights + folded BN params."""
    x = jnp.transpose(x_nchw, (0, 2, 3, 1))      # NCHW -> NHWC
    kp = fold_params_for_kernel(params)
    y = _run_block(x, kp, use_residual)
    return jnp.transpose(y, (0, 3, 1, 2))        # NHWC -> NCHW


def init_residual_block_params(key, channels, num_repeats):
    """Deterministic synthetic parameters (PyTorch shapes, then re-laid-out)."""
    eps = 1e-5
    cmid = channels // 2
    params = []
    for _ in range(num_repeats):
        key, k1, k2, k3, k4, k5, k6, k7, k8, k9, k10 = jax.random.split(key, 11)
        # torch layouts: conv1 (Cmid, C, 1, 1), conv2 (C, Cmid, 3, 3)
        w1_oihw = 0.1 * jax.random.normal(k1, (cmid, channels, 1, 1), jnp.float32)
        w2_oihw = 0.1 * jax.random.normal(k2, (channels, cmid, 3, 3), jnp.float32)
        g1 = 1.0 + 0.1 * jax.random.normal(k3, (cmid,), jnp.float32)
        be1 = 0.1 * jax.random.normal(k4, (cmid,), jnp.float32)
        m1 = 0.1 * jax.random.normal(k5, (cmid,), jnp.float32)
        v1 = jax.random.uniform(k6, (cmid,), jnp.float32, 0.5, 1.5)
        g2 = 1.0 + 0.1 * jax.random.normal(k7, (channels,), jnp.float32)
        be2 = 0.1 * jax.random.normal(k8, (channels,), jnp.float32)
        m2 = 0.1 * jax.random.normal(k9, (channels,), jnp.float32)
        v2 = jax.random.uniform(k10, (channels,), jnp.float32, 0.5, 1.5)
        s1 = g1 / jnp.sqrt(v1 + eps)
        s2 = g2 / jnp.sqrt(v2 + eps)
        params.append({
            "w1": w1_oihw[:, :, 0, 0].T,                 # (C, Cmid)
            "w2": jnp.transpose(w2_oihw, (2, 3, 1, 0)),  # (3, 3, Cmid, C) == HWIO
            "s1": s1.reshape(1, cmid),
            "b1": (be1 - m1 * s1).reshape(1, cmid),
            "s2": s2.reshape(1, channels),
            "b2": (be2 - m2 * s2).reshape(1, channels),
        })
    return params


def _ref_forward(x_nchw, params, use_residual=True):
    """Pure-JAX f32 reference (lax conv) used to validate the kernel."""
    x = jnp.transpose(x_nchw, (0, 2, 3, 1))
    dn = ("NHWC", "HWIO", "NHWC")
    for p in params:
        w1 = p["w1"][None, None]  # (1,1,C,Cmid)
        y1 = jax.lax.conv_general_dilated(x, w1, (1, 1), "VALID",
                                          dimension_numbers=dn)
        y1 = y1 * p["s1"][0] + p["b1"][0]
        y1 = jnp.where(y1 > 0, y1, 0.1 * y1)
        y2 = jax.lax.conv_general_dilated(y1, p["w2"], (1, 1),
                                          ((1, 1), (1, 1)),
                                          dimension_numbers=dn)
        y2 = y2 * p["s2"][0] + p["b2"][0]
        y2 = jnp.where(y2 > 0, y2, 0.1 * y2)
        x = x + y2 if use_residual else y2
    return jnp.transpose(x, (0, 3, 1, 2))


if __name__ == "__main__":
    channels, num_repeats = 4, 2
    key = jax.random.PRNGKey(0)
    kx, kp = jax.random.split(key)
    x = jax.random.normal(kx, (2, channels, 16, 16), jnp.float32)  # NCHW like PyTorch
    params = init_residual_block_params(kp, channels, num_repeats)

    out = residual_block_forward(x, params, use_residual=True)
    out = jax.block_until_ready(out)

    ref = _ref_forward(x, params, use_residual=True)
    assert out.shape == x.shape and out.dtype == x.dtype
    max_err = float(jnp.max(jnp.abs(out - ref)))
    # bf16 matmul operands (f32 accumulation) -> looser tolerance than pure f32.
    assert jnp.allclose(out, ref, atol=2e-2, rtol=2e-2), f"max abs err {max_err}"
    print("KERNEL_OK")
</pallas_src>

<mosaic_0001>
module attributes {stable_mosaic.version = 11 : i64} {
  func.func @_residual_block_kernel(%arg0: i32, %arg1: i32, %arg2: memref<1x16x16x4xf32, #tpu.memory_space<vmem>>, %arg3: memref<1x4x2xbf16, #tpu.memory_space<vmem>>, %arg4: memref<1x18x4xbf16, #tpu.memory_space<vmem>>, %arg5: memref<1x1x2xf32, #tpu.memory_space<vmem>>, %arg6: memref<1x1x4xf32, #tpu.memory_space<vmem>>, %arg7: memref<1x16x16x4xf32, #tpu.memory_space<vmem>>, %arg8: memref<18x32x2xbf16, #tpu.memory_space<vmem>>) attributes {dimension_semantics = [#tpu.dimension_semantics<parallel>, #tpu.dimension_semantics<arbitrary>], iteration_bounds = array<i64: 2, 2>, scalar_prefetch = 0 : i64, scratch_operands = 1 : i64, tpu.core_type = #tpu.core_type<tc>, window_params = [{transform_indices = @transform_0, window_bounds = array<i64: 1, 16, 16, 4>}, {transform_indices = @transform_1, window_bounds = array<i64: 1, 4, 2>}, {transform_indices = @transform_2, window_bounds = array<i64: 1, 18, 4>}, {transform_indices = @transform_3, window_bounds = array<i64: 1, 1, 2>}, {transform_indices = @transform_4, window_bounds = array<i64: 1, 1, 4>}, {transform_indices = @transform_5, window_bounds = array<i64: 1, 16, 16, 4>}]} {
    %c0_i32 = arith.constant 0 : i32
    %0 = arith.cmpi eq, %arg1, %c0_i32 : i32
    %1 = arith.extui %0 : i1 to i32
    %c0_i32_0 = arith.constant 0 : i32
    %2 = arith.cmpi ne, %1, %c0_i32_0 : i32
    scf.if %2 {
      %cst_52 = arith.constant 0.000000e+00 : bf16
      %48 = vector.broadcast %cst_52 : bf16 to vector<18x32x2xbf16>
      %c0_53 = arith.constant 0 : index
      %c0_54 = arith.constant 0 : index
      %c0_55 = arith.constant 0 : index
      %49 = vector.load %arg8[%c0_53, %c0_54, %c0_55] : memref<18x32x2xbf16, #tpu.memory_space<vmem>>, vector<18x32x2xbf16>
      tpu.vector_store %arg8[%c0_53, %c0_54, %c0_55], %48 {strides = array<i32>} : memref<18x32x2xbf16, #tpu.memory_space<vmem>>, vector<18x32x2xbf16>,
      %c0_56 = arith.constant 0 : index
      %c0_57 = arith.constant 0 : index
      %c0_58 = arith.constant 0 : index
      %c0_59 = arith.constant 0 : index
      %50 = vector.load %arg2[%c0_56, %c0_57, %c0_58, %c0_59] : memref<1x16x16x4xf32, #tpu.memory_space<vmem>>, vector<1x16x16x4xf32>
      %51 = vector.shape_cast %50 : vector<1x16x16x4xf32> to vector<16x16x4xf32>
      %c0_60 = arith.constant 0 : index
      %c0_61 = arith.constant 0 : index
      %c0_62 = arith.constant 0 : index
      %c0_63 = arith.constant 0 : index
      %52 = vector.load %arg7[%c0_60, %c0_61, %c0_62, %c0_63] : memref<1x16x16x4xf32, #tpu.memory_space<vmem>>, vector<1x16x16x4xf32>
      %53 = vector.shape_cast %52 : vector<1x16x16x4xf32> to vector<16x16x4xf32>
      %54 = vector.shape_cast %51 : vector<16x16x4xf32> to vector<1x16x16x4xf32>
      tpu.vector_store %arg7[%c0_60, %c0_61, %c0_62, %c0_63], %54 {strides = array<i32>} : memref<1x16x16x4xf32, #tpu.memory_space<vmem>>, vector<1x16x16x4xf32>,
    } else {
    }
    %c0 = arith.constant 0 : index
    %c0_1 = arith.constant 0 : index
    %c0_2 = arith.constant 0 : index
    %c0_3 = arith.constant 0 : index
    %3 = vector.load %arg7[%c0, %c0_1, %c0_2, %c0_3] : memref<1x16x16x4xf32, #tpu.memory_space<vmem>>, vector<1x16x16x4xf32>
    %4 = vector.shape_cast %3 : vector<1x16x16x4xf32> to vector<16x16x4xf32>
    %5 = arith.truncf %4 : vector<16x16x4xf32> to vector<16x16x4xbf16>
    %6 = vector.shape_cast %5 : vector<16x16x4xbf16> to vector<256x4xbf16>
    %c0_4 = arith.constant 0 : index
    %c0_5 = arith.constant 0 : index
    %c0_6 = arith.constant 0 : index
    %7 = vector.load %arg3[%c0_4, %c0_5, %c0_6] : memref<1x4x2xbf16, #tpu.memory_space<vmem>>, vector<1x4x2xbf16>
    %8 = vector.shape_cast %7 : vector<1x4x2xbf16> to vector<4x2xbf16>
    %cst = arith.constant dense<0.000000e+00> : vector<256x2xf32>
    %9 = tpu.matmul %6, %8, %cst {dimension_numbers = #tpu.dot_dimension_numbers<[1], [0], [0], [1], [0, 0, 1, 1], [], []>} : vector<256x4xbf16>, vector<4x2xbf16>, vector<256x2xf32> -> vector<256x2xf32>
    %c0_7 = arith.constant 0 : index
    %c0_8 = arith.constant 0 : index
    %c0_9 = arith.constant 0 : index
    %10 = vector.load %arg5[%c0_7, %c0_8, %c0_9] : memref<1x1x2xf32, #tpu.memory_space<vmem>>, vector<1x1x2xf32>
    %11 = vector.shape_cast %10 : vector<1x1x2xf32> to vector<1x2xf32>
    %12 = vector.broadcast %11 : vector<1x2xf32> to vector<256x2xf32>
    %13 = arith.addf %9, %12 : vector<256x2xf32>
    %cst_10 = arith.constant 1.000000e-01 : f32
    %14 = vector.broadcast %cst_10 : f32 to vector<256x2xf32>
    %15 = arith.mulf %14, %13 : vector<256x2xf32>
    %16 = arith.maximumf %13, %15 : vector<256x2xf32>
    %17 = arith.truncf %16 : vector<256x2xf32> to vector<256x2xbf16>
    %18 = vector.shape_cast %17 : vector<256x2xbf16> to vector<16x16x2xbf16>
    %c1 = arith.constant 1 : index
    %c8 = arith.constant 8 : index
    %c0_11 = arith.constant 0 : index
    %19 = vector.load %arg8[%c1, %c8, %c0_11] : memref<18x32x2xbf16, #tpu.memory_space<vmem>>, vector<16x16x2xbf16>
    tpu.vector_store %arg8[%c1, %c8, %c0_11], %18 {strides = array<i32>} : memref<18x32x2xbf16, #tpu.memory_space<vmem>>, vector<16x16x2xbf16>,
    %c0_12 = arith.constant 0 : index
    %c7 = arith.constant 7 : index
    %c0_13 = arith.constant 0 : index
    %20 = vector.load %arg8[%c0_12, %c7, %c0_13] : memref<18x32x2xbf16, #tpu.memory_space<vmem>>, vector<16x16x2xbf16>
    %c0_14 = arith.constant 0 : index
    %c8_15 = arith.constant 8 : index
    %c0_16 = arith.constant 0 : index
    %21 = vector.load %arg8[%c0_14, %c8_15, %c0_16] : memref<18x32x2xbf16, #tpu.memory_space<vmem>>, vector<16x16x2xbf16>
    %c0_17 = arith.constant 0 : index
    %c9 = arith.constant 9 : index
    %c0_18 = arith.constant 0 : index
    %22 = vector.load %arg8[%c0_17, %c9, %c0_18] : memref<18x32x2xbf16, #tpu.memory_space<vmem>>, vector<16x16x2xbf16>
    %c1_19 = arith.constant 1 : index
    %c7_20 = arith.constant 7 : index
    %c0_21 = arith.constant 0 : index
    %23 = vector.load %arg8[%c1_19, %c7_20, %c0_21] : memref<18x32x2xbf16, #tpu.memory_space<vmem>>, vector<16x16x2xbf16>
    %c1_22 = arith.constant 1 : index
    %c8_23 = arith.constant 8 : index
    %c0_24 = arith.constant 0 : index
    %24 = vector.load %arg8[%c1_22, %c8_23, %c0_24] : memref<18x32x2xbf16, #tpu.memory_space<vmem>>, vector<16x16x2xbf16>
    %c1_25 = arith.constant 1 : index
    %c9_26 = arith.constant 9 : index
    %c0_27 = arith.constant 0 : index
    %25 = vector.load %arg8[%c1_25, %c9_26, %c0_27] : memref<18x32x2xbf16, #tpu.memory_space<vmem>>, vector<16x16x2xbf16>
    %c2 = arith.constant 2 : index
    %c7_28 = arith.constant 7 : index
    %c0_29 = arith.constant 0 : index
    %26 = vector.load %arg8[%c2, %c7_28, %c0_29] : memref<18x32x2xbf16, #tpu.memory_space<vmem>>, vector<16x16x2xbf16>
    %c2_30 = arith.constant 2 : index
    %c8_31 = arith.constant 8 : index
    %c0_32 = arith.constant 0 : index
    %27 = vector.load %arg8[%c2_30, %c8_31, %c0_32] : memref<18x32x2xbf16, #tpu.memory_space<vmem>>, vector<16x16x2xbf16>
    %c2_33 = arith.constant 2 : index
    %c9_34 = arith.constant 9 : index
    %c0_35 = arith.constant 0 : index
    %28 = vector.load %arg8[%c2_33, %c9_34, %c0_35] : memref<18x32x2xbf16, #tpu.memory_space<vmem>>, vector<16x16x2xbf16>
    %29 = tpu.concatenate %20, %21, %22, %23, %24, %25, %26, %27, %28 in 2 : vector<16x16x2xbf16>, vector<16x16x2xbf16>, vector<16x16x2xbf16>, vector<16x16x2xbf16>, vector<16x16x2xbf16>, vector<16x16x2xbf16>, vector<16x16x2xbf16>, vector<16x16x2xbf16>, vector<16x16x2xbf16> -> vector<16x16x18xbf16>
    %30 = vector.shape_cast %29 : vector<16x16x18xbf16> to vector<256x18xbf16>
    %c0_36 = arith.constant 0 : index
    %c0_37 = arith.constant 0 : index
    %c0_38 = arith.constant 0 : index
    %31 = vector.load %arg4[%c0_36, %c0_37, %c0_38] : memref<1x18x4xbf16, #tpu.memory_space<vmem>>, vector<1x18x4xbf16>
    %32 = vector.shape_cast %31 : vector<1x18x4xbf16> to vector<18x4xbf16>
    %cst_39 = arith.constant dense<0.000000e+00> : vector<256x4xf32>
    %33 = tpu.matmul %30, %32, %cst_39 {dimension_numbers = #tpu.dot_dimension_numbers<[1], [0], [0], [1], [0, 0, 1, 1], [], []>} : vector<256x18xbf16>, vector<18x4xbf16>, vector<256x4xf32> -> vector<256x4xf32>
    %c0_40 = arith.constant 0 : index
    %c0_41 = arith.constant 0 : index
    %c0_42 = arith.constant 0 : index
    %34 = vector.load %arg6[%c0_40, %c0_41, %c0_42] : memref<1x1x4xf32, #tpu.memory_space<vmem>>, vector<1x1x4xf32>
    %35 = vector.shape_cast %34 : vector<1x1x4xf32> to vector<1x4xf32>
    %36 = vector.broadcast %35 : vector<1x4xf32> to vector<256x4xf32>
    %37 = arith.addf %33, %36 : vector<256x4xf32>
    %cst_43 = arith.constant 1.000000e-01 : f32
    %38 = vector.broadcast %cst_43 : f32 to vector<256x4xf32>
    %39 = arith.mulf %38, %37 : vector<256x4xf32>
    %40 = arith.maximumf %37, %39 : vector<256x4xf32>
    %41 = vector.shape_cast %40 : vector<256x4xf32> to vector<16x16x4xf32>
    %c0_44 = arith.constant 0 : index
    %c0_45 = arith.constant 0 : index
    %c0_46 = arith.constant 0 : index
    %c0_47 = arith.constant 0 : index
    %42 = vector.load %arg7[%c0_44, %c0_45, %c0_46, %c0_47] : memref<1x16x16x4xf32, #tpu.memory_space<vmem>>, vector<1x16x16x4xf32>
    %43 = vector.shape_cast %42 : vector<1x16x16x4xf32> to vector<16x16x4xf32>
    %44 = arith.addf %43, %41 : vector<16x16x4xf32>
    %c0_48 = arith.constant 0 : index
    %c0_49 = arith.constant 0 : index
    %c0_50 = arith.constant 0 : index
    %c0_51 = arith.constant 0 : index
    %45 = vector.load %arg7[%c0_48, %c0_49, %c0_50, %c0_51] : memref<1x16x16x4xf32, #tpu.memory_space<vmem>>, vector<1x16x16x4xf32>
    %46 = vector.shape_cast %45 : vector<1x16x16x4xf32> to vector<16x16x4xf32>
    %47 = vector.shape_cast %44 : vector<16x16x4xf32> to vector<1x16x16x4xf32>
    tpu.vector_store %arg7[%c0_48, %c0_49, %c0_50, %c0_51], %47 {strides = array<i32>} : memref<1x16x16x4xf32, #tpu.memory_space<vmem>>, vector<1x16x16x4xf32>,
    return
  }
  func.func @transform_0(%arg0: i32, %arg1: i32) -> (i32, i32, i32, i32) {
    %c0_i32 = arith.constant 0 : i32
    %c0_i32_0 = arith.constant 0 : i32
    %c0_i32_1 = arith.constant 0 : i32
    %c0_i32_2 = arith.constant 0 : i32
    return %arg0, %c0_i32, %c0_i32_0, %c0_i32_1 : i32, i32, i32, i32
  }
  func.func @transform_1(%arg0: i32, %arg1: i32) -> (i32, i32, i32) {
    %c0_i32 = arith.constant 0 : i32
    %c0_i32_0 = arith.constant 0 : i32
    %c0_i32_1 = arith.constant 0 : i32
    return %arg1, %c0_i32, %c0_i32_0 : i32, i32, i32
  }
  func.func @transform_2(%arg0: i32, %arg1: i32) -> (i32, i32, i32) {
    %c0_i32 = arith.constant 0 : i32
    %c0_i32_0 = arith.constant 0 : i32
    %c0_i32_1 = arith.constant 0 : i32
    return %arg1, %c0_i32, %c0_i32_0 : i32, i32, i32
  }
  func.func @transform_3(%arg0: i32, %arg1: i32) -> (i32, i32, i32) {
    %c0_i32 = arith.constant 0 : i32
    %c0_i32_0 = arith.constant 0 : i32
    %c0_i32_1 = arith.constant 0 : i32
    return %arg1, %c0_i32, %c0_i32_0 : i32, i32, i32
  }
  func.func @transform_4(%arg0: i32, %arg1: i32) -> (i32, i32, i32) {
    %c0_i32 = arith.constant 0 : i32
    %c0_i32_0 = arith.constant 0 : i32
    %c0_i32_1 = arith.constant 0 : i32
    return %arg1, %c0_i32, %c0_i32_0 : i32, i32, i32
  }
  func.func @transform_5(%arg0: i32, %arg1: i32) -> (i32, i32, i32, i32) {
    %c0_i32 = arith.constant 0 : i32
    %c0_i32_0 = arith.constant 0 : i32
    %c0_i32_1 = arith.constant 0 : i32
    %c0_i32_2 = arith.constant 0 : i32
    return %arg0, %c0_i32, %c0_i32_0, %c0_i32_1 : i32, i32, i32, i32
  }
}

</mosaic_0001>

<bundles_post_ra>
// kernel: tpu_custom_call.1
= control target key start
LH: loop header
LB: loop body
LE: loop exit
PB: predicated region body
PF: predicated region fallthrough
CT: control target
= control target key end

     0   :  { %s7024_s0 = inlined_call_operand.hbm [shape: f32[2,16,16,4], index: 0, kind: input, shape index: {}]   ;;  %s7025_s1 = inlined_call_operand.hbm [shape: bf16[2,4,2], index: 1, kind: input, shape index: {}]   ;;  %s7026_s2 = inlined_call_operand.hbm [shape: bf16[2,18,4], index: 2, kind: input, shape index: {}]   ;;  %s7027_s3 = inlined_call_operand.hbm [shape: f32[2,1,2], index: 3, kind: input, shape index: {}]   ;;  %s7028_s4 = inlined_call_operand.hbm [shape: f32[2,1,4], index: 4, kind: input, shape index: {}]   ;;  %s7029_s5 = inlined_call_operand.hbm [shape: f32[2,16,16,4], index: 5, kind: output, shape index: {}]  }
   0x1   :  { %7048 = sst [smem:[#allocation43_spill]] %s7024_s0 }
   0x2   :  { %7049 = sst [smem:[#allocation44_spill]] %s7025_s1 }
   0x3   :  { %7050 = sst [smem:[#allocation45_spill]] %s7027_s3 }
   0x4   :  { %7051 = sst [smem:[#allocation46_spill]] %s7029_s5 }
   0x5   :  { %10 = vsyncpa [#allocation4], 0 }
   0x6   :  { %12 = vsyncpa [#allocation4 + $0x1], 0 }
   0x7   :  { %13 = vsyncpa [#allocation7], 0 }
   0x8   :  { %15 = vsyncpa [#allocation7 + $0x1], 0 }
   0x9   :  { %16 = vsyncpa [#allocation10], 0 }
   0xa   :  { %18 = vsyncpa [#allocation10 + $0x1], 0 }
   0xb   :  { %19 = vsyncpa [#allocation5], 0 }
   0xc   :  { %21 = vsyncpa [#allocation5 + $0x1], 0  ;;  %s4669_s18 = smov 0   ;;  %s4671_s19 = smov 0  }
   0xd   :  { %s4673_s20 = smov 0   ;;  %s4675_s21 = smov 0  }
   0xe   :  { %s4677_s22 = smov 0   ;;  %s4679_s23 = smov 0  }
   0xf   :  { %s4681_s24 = smov 0   ;;  %s4683_s25 = smov 0  }
  0x10   :  { %s4685_s26 = smov 0   ;;  %s4687_s27 = smov 0  }
  0x11   :  { %s4689_s28 = smov 0  }
  0x12 LB: > { %7052 = sst [smem:[#allocation17_spill]] %s4581_s19  ;;  %s4723_s29 = sadd.s32 4294967295, %s4617_s28   ;;  %s4617_s28 = sphi %s4689_s28, %s27_s28   ;;  %s4613_s27 = sphi %s4687_s27, %s7140_s27   ;;  %s4609_s26 = sphi %s4685_s26, %s7145_s26   ;;  %s4605_s25 = sphi %s4683_s25, %s7138_s25   ;;  %s4601_s24 = sphi %s4681_s24, %s7144_s24   ;;  %s4597_s23 = sphi %s4679_s23, %s7143_s23   ;;  %s4593_s22 = sphi %s4677_s22, %s7142_s22   ;;  %s4589_s21 = sphi %s4675_s21, %s7141_s21   ;;  %s4585_s20 = sphi %s4673_s20, %s7136_s20   ;;  %s4581_s19 = sphi %s4671_s19, %s7135_s19   ;;  %s4577_s18 = sphi %s4669_s18, %s7134_s18  }
  0x13   : > { %7053 = sst [smem:[#allocation18_spill]] %s4585_s20  ;;  %s36_s30 = sadd.s32 1, %s4609_s26 }
  0x14   : > { %7054 = sst [smem:[#allocation19_spill]] %s4589_s21  ;;  %p4726_p0 = scmp.ge.s32.totalorder %s36_s30, 2 }
  0x15   : > { %7055 = sst [smem:[#allocation20_spill]] %s4601_s24  ;;  %p7034_p1 = scmp.eq.s32.totalorder %s4617_s28, 0 }
  0x16   : > { %7056 = sst [smem:[#allocation21_spill]] %s4605_s25  ;;  %p7033_p2 = scmp.eq.s32.totalorder %s4723_s29, 0 }
  0x17   : > { %7057 = sst [smem:[#allocation22_spill]] %s4613_s27  ;;  %s72_s7 = sadd.s32 1, %s4585_s20 }
  0x18   : > { %s7058_s6 = scalar_select %p4726_p0, 1, 0 }
  0x19   : > { %s7147_s30 = smov (%p4726_p0, %s36_s30), 0  ;;  %p79_p3 = scmp.ne.s32.totalorder %s4585_s20, %s4581_s19 }
  0x1a   : > { %7059 = sst [smem:[#allocation23_spill]] %s7147_s30  ;;  %p85_p4 = scmp.ne.s32.totalorder %s4581_s19, %s4577_s18 }
  0x1b   : > { %s69_s8 = ssub.s32 %s4609_s26, %s7147_s30  ;;  %p81_p6 = por %p79_p3, %p7034_p1 }
  0x1c   : > { %p70_p5 = scmp.eq.s32.totalorder %s69_s8, 0  ;;  %p4746_p7 = por %p85_p4, %p7033_p2 }
  0x1d   : > { %p7032_p8 = scmp.lt.s32.totalorder %s4617_s28, 4  ;;  %s4756_s12 = sand.u32 1, %s4585_s20  }
  0x1e   : > { %s7060_s9 = scalar_select %p4746_p7, 1, 0 }
  0x1f   : > { %s4752_s10 = scalar_select %p70_p5, %s4585_s20, %s72_s7  }
  0x20   : > { %7061 = sst [smem:[#allocation24_spill]] %s7060_s9  ;;  %s4019_s13 = sshll.u32 %s4756_s12, 1 }
  0x21   : > { %7062 = sst [smem:[#allocation25_spill]] %s4752_s10  ;;  %s4020_s14 = sshll.u32 %s4609_s26, 5 }
  0x22   : > { %s7063_s1 = sld [smem:[#allocation44_spill]]  ;;  %s238_s18 = scalar_lea.vmem [#allocation6], %s4019_s13 }
  0x23   : > { %s245_s8 = sshll.u32 %s238_s18, 4  ;;  %p4769_p9 = pnand %p7032_p8, %p81_p6  ;;  %s4765_s8 = int_to_ptr.vmem [resolvable:$true] %s245_s8 }
  0x24   : > { %s7065_s15 = sand.u32 1, %s4617_s28  }
  0x25   : > { %s7064_s7 = scalar_select %p4769_p9, 1, 0 }
  0x26   : > { %p4784_p13 = pneg %p4769_p9 }
  0x28   : > { %s4763_s17 = scalar_lea.hbm %s7063_s1, %s4020_s14  ;;  %s4778_s14 = scalar_lea.sflag [#allocation7], %s7065_s15 }
  0x29   : > { %s4337_s16 = scalar_lea.hbm %s4763_s17, 32  ;;  %s4342_s11 = scalar_lea.hbm %s7063_s1, 64 }
  0x2a   : > { %p4338_p12 = scmp.ne.s32.totalorder %s4763_s17, %s4337_s16  ;;  %p4343_p5 = scmp.lt.u32.totalorder %s4763_s17, %s7063_s1 }
  0x2b   : > { %p4344_p6 = scmp.lt.u32.totalorder %s4342_s11, %s4337_s16  ;;  %p4346_p2 = scmp.lt.u32.totalorder %s4337_s16, %s4763_s17 }
  0x2c   : > { %p4340_p3 = pnand %p4784_p13, %p4338_p12 }
  0x2d   : > { %p4345_p8 = por %p4344_p6, %p4343_p5 }
  0x2e   : > { %p4341_p4 = pneg %p4340_p3 }
  0x2f   : > { %p4347_p1 = por %p4346_p2, %p4345_p8 }
  0x31   : > { %p4348_p10 = pnand %p4347_p1, %p4341_p4 }
  0x33   : > { %4351 = shalt.err (!%p4348_p10)
}
  0x34   : > { %s4352_s15 = scalar_lea.vmem %s4765_s8, 32  ;;  %s4619_s30 = smov [#allocation6]  }
  0x35   : > { %p4353_p12 = scmp.ne.s32.totalorder %s4765_s8, %s4352_s15  ;;  %s4357_s18 = sshll.u32 %s4619_s30, 4  ;;  %s4358_s18 = int_to_ptr.vmem [resolvable:$false] %s4357_s18 }
  0x36   : > { %s4359_s20 = scalar_lea.vmem %s4358_s18, 64  ;;  %p4360_p7 = scmp.lt.s32.totalorder %s4765_s8, %s4358_s18 }
  0x37   : > { %p4355_p3 = pnand %p4353_p12, %p4784_p13  ;;  %p4361_p0 = scmp.lt.s32.totalorder %s4359_s20, %s4352_s15 }
  0x39   : > { %p4356_p11 = pneg %p4355_p3  ;;  %p4362_p5 = por %p4361_p0, %p4360_p7 }
  0x3b   : > { %p4363_p6 = pnand %p4362_p5, %p4356_p11 }
  0x3d   : > { %4366 = shalt.err (!%p4363_p6)
}
  0x3e   : > { %4200 = dma.hbm_to_vmem [thread:$0]  (!%p4769_p9), %s4763_s17, 32, %s4765_s8, %s4778_s14  }
  0x3f   : > { %p7067_p1 = scmp.lt.s32.totalorder %s4617_s28, 5  ;;  %p7068_p2 = scmp.ge.s32.totalorder %s4617_s28, 1 }
  0x40   : > { %s4022_s11 = sshll.u32 %s4609_s26, 4  ;;  %s7070_s3 = sld [smem:[#allocation45_spill]] }
  0x41   : > { %p4812_p8 = pnand %p7068_p2, %p7067_p1  ;;  %s276_s18 = scalar_lea.vmem [#allocation9], %s4756_s12 }
  0x42   : > { %s283_s20 = sshll.u32 %s276_s18, 4  ;;  %s4828_s1 = scalar_lea.hbm %s7028_s4, %s4022_s11  ;;  %s4823_s20 = int_to_ptr.vmem [resolvable:$true] %s283_s20 }
  0x43   : > { %s7069_s10 = scalar_select %p4812_p8, 1, 0 }
  0x44   : > { %s7071_s5 = sand.u32 1, %s4617_s28  }
  0x45   : > { %s4832_s25 = scalar_lea.sflag [#allocation10], %s7071_s5 }
  0x46   : > { %s4820_s30 = scalar_lea.hbm %s7070_s3, %s4022_s11  ;;  %s4372_s9 = scalar_lea.hbm %s7070_s3, 32 }
  0x47   : > { %s4367_s24 = scalar_lea.hbm %s4820_s30, 16  ;;  %p4373_p11 = scmp.lt.u32.totalorder %s4820_s30, %s7070_s3 }
  0x48   : > { %p4368_p0 = scmp.ne.s32.totalorder %s4820_s30, %s4367_s24  ;;  %p4374_p4 = scmp.lt.u32.totalorder %s4372_s9, %s4367_s24 }
  0x49   : > { %p4376_p3 = scmp.lt.u32.totalorder %s4367_s24, %s4820_s30 }
  0x4a   : > { %p4370_p7 = pnand %p4368_p0, %p4784_p13  ;;  %p4375_p12 = por %p4374_p4, %p4373_p11 }
  0x4c   : > { %p4371_p10 = pneg %p4370_p7  ;;  %p4377_p5 = por %p4376_p3, %p4375_p12 }
  0x4e   : > { %p4378_p6 = pnand %p4377_p5, %p4371_p10 }
  0x50   : > { %4381 = shalt.err (!%p4378_p6)
}
  0x51   : > { %s4382_s5 = scalar_lea.vmem %s4823_s20, 16  ;;  %s4620_s11 = smov [#allocation9]  }
  0x52   : > { %p4383_p1 = scmp.ne.s32.totalorder %s4823_s20, %s4382_s5  ;;  %s4387_s17 = sshll.u32 %s4620_s11, 4  ;;  %s4388_s17 = int_to_ptr.vmem [resolvable:$false] %s4387_s17 }
  0x53   : > { %s4389_s19 = scalar_lea.vmem %s4388_s17, 32  ;;  %p4390_p7 = scmp.lt.s32.totalorder %s4823_s20, %s4388_s17 }
  0x54   : > { %p4385_p2 = pnand %p4383_p1, %p4784_p13  ;;  %p4391_p8 = scmp.lt.s32.totalorder %s4389_s19, %s4382_s5 }
  0x56   : > { %p4386_p0 = pneg %p4385_p2  ;;  %p4392_p11 = por %p4391_p8, %p4390_p7 }
  0x58   : > { %p4393_p4 = pnand %p4392_p11, %p4386_p0 }
  0x5a   : > { %4396 = shalt.err (!%p4393_p4)
}
  0x5b   : > { %4206 = dma.hbm_to_vmem [thread:$0]  (!%p4769_p9), %s4820_s30, 16, %s4823_s20, %s4832_s25  }
  0x5c   : > { %s4013_s24 = sadd.s32 4294967294, %s4617_s28   ;;  %s39_s9 = sadd.s32 1, %s4613_s27 }
  0x5d   : > { %p7072_p8 = scmp.ne.s32.totalorder %s7058_s6, 0  ;;  %s46_s8 = sadd.s32 1, %s4597_s23 }
  0x5e   : > { %p53_p10 = scmp.ne.s32.totalorder %s4597_s23, %s4593_s22  ;;  %p59_p3 = scmp.ne.s32.totalorder %s4593_s22, %s4589_s21 }
  0x5f   : > { %s7149_s9 = smov (!%p7072_p8, %s39_s9), %s4613_s27  ;;  %p7073_p5 = scmp.eq.s32.totalorder %s4617_s28, 0 }
  0x60   : > { %p41_p12 = scmp.ge.s32.totalorder %s7149_s9, 2  ;;  %p187_p1 = scmp.eq.s32.totalorder %s4723_s29, 3 }
  0x61   : > { %p4868_p6 = por %p7073_p5, %p53_p10  ;;  %p7076_p2 = scmp.eq.s32.totalorder %s4723_s29, 0 }
  0x62   : > { %s7151_s9 = smov (%p41_p12, %s7149_s9), 0  ;;  %p4881_p7 = por %p187_p1, %p53_p10 }
  0x63   : > { %7075 = sst [smem:[#allocation26_spill]] %s7151_s9  ;;  %p4877_p0 = por %p7076_p2, %p59_p3 }
  0x64   : > { %s7078_s30 = scalar_select %p4881_p7, 1, 0 }
  0x65   : > { %s7077_s6 = scalar_select %p4877_p0, 1, 0 }
  0x66   : > { %s43_s20 = ssub.s32 %s4613_s27, %s7151_s9  ;;  %p193_p11 = scmp.eq.s32.totalorder %s4013_s24, 3 }
  0x67   : > { %p44_p4 = scmp.eq.s32.totalorder %s43_s20, 0  ;;  %s213_s15 = sand.u32 1, %s4597_s23  }
  0x68   : > { %p4888_p8 = por %p193_p11, %p59_p3  ;;  %s4016_s11 = sshll.u32 %s213_s15, 8 }
  0x69   : > { %s4893_s5 = scalar_select %p44_p4, %s4597_s23, %s46_s8  }
  0x6a   : > { %s7079_s18 = scalar_select %p4888_p8, 1, 0 }
  0x6b   : > { %7080 = sst [smem:[#allocation27_spill]] %s4893_s5  ;;  %s4070_s17 = sshll.u32 %s4613_s27, 12 }
  0x6c   : > { %s7081_s0 = sld [smem:[#allocation43_spill]]  ;;  %s217_s24 = scalar_lea.vmem [#allocation3], %s4016_s11 }
  0x6d   : > { %s224_s20 = sshll.u32 %s217_s24, 4  ;;  %p7082_p10 = scmp.lt.s32.totalorder %s4617_s28, 4  ;;  %s4909_s20 = int_to_ptr.vmem [resolvable:$true] %s224_s20 }
  0x6e   : > { %s4911_s8 = scalar_lea.sflag [#allocation4], %s213_s15 }
  0x6f   : > { %p4905_p12 = pnand %p7082_p10, %p4868_p6 }
  0x71   : > { %p4399_p5 = pneg %p4905_p12 }
  0x72   : > { %s4899_s21 = scalar_lea.hbm %s7081_s0, %s4070_s17  ;;  %s4402_s17 = scalar_lea.hbm %s7081_s0, 8192 }
  0x73   : > { %s4397_s3 = scalar_lea.hbm %s4899_s21, 4096  ;;  %p4403_p6 = scmp.lt.u32.totalorder %s4899_s21, %s7081_s0 }
  0x74   : > { %p4398_p3 = scmp.ne.s32.totalorder %s4899_s21, %s4397_s3  ;;  %p4404_p11 = scmp.lt.u32.totalorder %s4402_s17, %s4397_s3 }
  0x75   : > { %p4406_p10 = scmp.lt.u32.totalorder %s4397_s3, %s4899_s21 }
  0x76   : > { %p4400_p1 = pnand %p4399_p5, %p4398_p3  ;;  %p4405_p4 = por %p4404_p11, %p4403_p6 }
  0x78   : > { %p4401_p2 = pneg %p4400_p1  ;;  %p4407_p8 = por %p4406_p10, %p4405_p4 }
  0x7a   : > { %p4408_p7 = pnand %p4407_p8, %p4401_p2 }
  0x7c   : > { %4411 = shalt.err (!%p4408_p7)
}
  0x7d   : > { %s4412_s15 = scalar_lea.vmem %s4909_s20, 4096  ;;  %s4621_s16 = smov [#allocation3]  }
  0x7e   : > { %p4413_p3 = scmp.ne.s32.totalorder %s4909_s20, %s4412_s15  ;;  %s4417_s11 = sshll.u32 %s4621_s16, 4  ;;  %s4418_s11 = int_to_ptr.vmem [resolvable:$false] %s4417_s11 }
  0x7f   : > { %s4419_s19 = scalar_lea.vmem %s4418_s11, 8192  ;;  %p4420_p9 = scmp.lt.s32.totalorder %s4909_s20, %s4418_s11 }
  0x80   : > { %p4415_p1 = pnand %p4413_p3, %p4399_p5  ;;  %p4421_p6 = scmp.lt.s32.totalorder %s4419_s19, %s4412_s15 }
  0x82   : > { %p4416_p0 = pneg %p4415_p1  ;;  %p4422_p11 = por %p4421_p6, %p4420_p9 }
  0x84   : > { %p4423_p4 = pnand %p4422_p11, %p4416_p0 }
  0x86   : > { %4426 = shalt.err (!%p4423_p4)
}
  0x87   : > { %s4622_s3 = smov 128   ;;  %s4623_s17 = smov 8  }
  0x88   : > { %4197 = dma.hbm_to_vmem [thread:$0]  (!%p4905_p12), %s4899_s21, 4096, %s4909_s20, %s4911_s8, %s4622_s3, %s4622_s3, %s4623_s17  }
  0x89   : > { %s4180_s24 = smul.u32 192, %s4609_s26 }
  0x8a   : > { %s7084_s16 = smul.u32 12, %s4756_s12 }
  0x8b   : > { %s4945_s19 = scalar_lea.hbm %s7026_s2, %s4180_s24 }
  0x8c   : > { %s256_s0 = scalar_lea.vmem [#allocation8], %s7084_s16  ;;  %s4427_s5 = scalar_lea.hbm %s4945_s19, 192 }
  0x8d   : > { %s263_s27 = sshll.u32 %s256_s0, 4  ;;  %p4428_p9 = scmp.ne.s32.totalorder %s4945_s19, %s4427_s5  ;;  %s4947_s27 = int_to_ptr.vmem [resolvable:$true] %s263_s27 }
  0x8e   : > { %s4432_s0 = scalar_lea.hbm %s7026_s2, 384  ;;  %p4433_p8 = scmp.lt.u32.totalorder %s4945_s19, %s7026_s2 }
  0x8f   : > { %p4430_p0 = pnand %p4428_p9, %p4784_p13  ;;  %p4434_p12 = scmp.lt.u32.totalorder %s4432_s0, %s4427_s5 }
  0x90   : > { %p4436_p2 = scmp.lt.u32.totalorder %s4427_s5, %s4945_s19 }
  0x91   : > { %p4431_p7 = pneg %p4430_p0  ;;  %p4435_p5 = por %p4434_p12, %p4433_p8 }
  0x93   : > { %p4437_p10 = por %p4436_p2, %p4435_p5 }
  0x95   : > { %p4438_p3 = pnand %p4437_p10, %p4431_p7 }
  0x97   : > { %4441 = shalt.err (!%p4438_p3)
}
  0x98   : > { %s4442_s3 = scalar_lea.vmem %s4947_s27, 192  ;;  %s4624_s17 = smov [#allocation8]  }
  0x99   : > { %p4443_p1 = scmp.ne.s32.totalorder %s4947_s27, %s4442_s3  ;;  %s4447_s24 = sshll.u32 %s4624_s17, 4  ;;  %s4448_s24 = int_to_ptr.vmem [resolvable:$false] %s4447_s24 }
  0x9a   : > { %s4449_s16 = scalar_lea.vmem %s4448_s24, 384  ;;  %p4450_p4 = scmp.lt.s32.totalorder %s4947_s27, %s4448_s24 }
  0x9b   : > { %p4445_p6 = pnand %p4443_p1, %p4784_p13  ;;  %p4451_p9 = scmp.lt.s32.totalorder %s4449_s16, %s4442_s3 }
  0x9d   : > { %p4446_p11 = pneg %p4445_p6  ;;  %p4452_p0 = por %p4451_p9, %p4450_p4 }
  0x9f   : > { %p4453_p8 = pnand %p4452_p0, %p4446_p11 }
  0xa1   : > { %4456 = shalt.err (!%p4453_p8)
}
  0xa2   : > { %s4625_s5 = smov 64   ;;  %s4626_s11 = smov 4  }
  0xa3   : > { %p7085_p7 = scmp.ne.s32.totalorder %s7064_s7, 0  ;;  %s293_s15 = scalar_lea.vmem [#allocation11], %s4756_s12 }
  0xa4   : > { %s300_s21 = sshll.u32 %s293_s15, 4  ;;  %s4457_s9 = scalar_lea.hbm %s4828_s1, 16  ;;  %s301_s21 = int_to_ptr.vmem [resolvable:$true] %s300_s21 }
  0xa5   : > { %4203 = dma.hbm_to_vmem [thread:$0]  (!%p7085_p7), %s4945_s19, 192, %s4947_s27, %s4778_s14, %s4625_s5, %s4625_s5, %s4626_s11  }
  0xa6   : > { %p4458_p12 = scmp.ne.s32.totalorder %s4828_s1, %s4457_s9  ;;  %s4462_s8 = scalar_lea.hbm %s7028_s4, 32 }
  0xa7   : > { %p4463_p10 = scmp.lt.u32.totalorder %s4828_s1, %s7028_s4  ;;  %p4464_p3 = scmp.lt.u32.totalorder %s4462_s8, %s4457_s9 }
  0xa8   : > { %p4460_p5 = pnand %p4458_p12, %p4784_p13  ;;  %p4466_p6 = scmp.lt.u32.totalorder %s4457_s9, %s4828_s1 }
  0xa9   : > { %p4465_p1 = por %p4464_p3, %p4463_p10 }
  0xaa   : > { %p4461_p2 = pneg %p4460_p5 }
  0xab   : > { %p4467_p11 = por %p4466_p6, %p4465_p1 }
  0xad   : > { %p4468_p4 = pnand %p4467_p11, %p4461_p2 }
  0xaf   : > { %4471 = shalt.err (!%p4468_p4)
}
  0xb0   : > { %s4472_s27 = scalar_lea.vmem %s301_s21, 16  ;;  %s4627_s12 = smov [#allocation11]  }
  0xb1   : > { %p4473_p9 = scmp.ne.s32.totalorder %s301_s21, %s4472_s27  ;;  %s4477_s14 = sshll.u32 %s4627_s12, 4  ;;  %s4478_s14 = int_to_ptr.vmem [resolvable:$false] %s4477_s14 }
  0xb2   : > { %s4479_s19 = scalar_lea.vmem %s4478_s14, 32  ;;  %p4480_p12 = scmp.lt.s32.totalorder %s301_s21, %s4478_s14 }
  0xb3   : > { %p4475_p0 = pnand %p4473_p9, %p4784_p13  ;;  %p4481_p5 = scmp.lt.s32.totalorder %s4479_s19, %s4472_s27 }
  0xb5   : > { %p4476_p8 = pneg %p4475_p0  ;;  %p4482_p7 = por %p4481_p5, %p4480_p12 }
  0xb7   : > { %p4483_p3 = pnand %p4482_p7, %p4476_p8 }
  0xb9   : > { %4486 = shalt.err (!%p4483_p3)
}
  0xba   : > { %p7086_p10 = scmp.ne.s32.totalorder %s7064_s7, 0  ;;  %p7087_p2 = scmp.ne.s32.totalorder %s7069_s10, 0 }
  0xbc   : > { %4209 = dma.hbm_to_vmem [thread:$0]  (!%p7086_p10), %s4828_s1, 16, %s301_s21, %s4832_s25  }
  0xbd   : > { %309 = sbr.rel (%p7087_p2) target bundleno = 1360 (0x550), region = 40 }
  0xc4   : > { %s4993_s13 = sand.u32 1, %s4593_s22   ;;  %p7088_p13 = scmp.ne.s32.totalorder %s7077_s6, 0 }
  0xc5   : > { %s4025_s24 = sshll.u32 %s4993_s13, 8  ;;  %s312_s16 = scalar_lea.sflag [#allocation4], %s4993_s13 }
  0xc6   : > { %s4997_s5 = scalar_lea.vmem [#allocation3], %s4025_s24 }
  0xc7   : > { %4560 = dma.done.wait (%p7088_p13), %s312_s16, 4096  }
  0xc8   : > { %4562 = vsyncadd (%p7088_p13), %s312_s16, 4294963200  ;;  %s7089_s1 = sld [smem:[#allocation17_spill]]  ;;  %s7090_s25 = sld [smem:[#allocation24_spill]] }
  0xc9   : > { %s320_s7 = sand.u32 1, %s4723_s29  }
  0xca   : > { %s321_s15 = scalar_lea.sflag [#allocation7], %s320_s7 }
  0xce   : > { %s5005_s10 = sand.u32 1, %s7089_s1   ;;  %p7091_p7 = scmp.ne.s32.totalorder %s7090_s25, 0 }
  0xcf   : > { %s4026_s11 = sshll.u32 %s5005_s10, 1 }
  0xd0   : > { %s5008_s21 = scalar_lea.vmem [#allocation6], %s4026_s11 }
  0xd1   : > { %4564 = dma.done.wait (%p7091_p7), %s321_s15, 224  }
  0xd2   : > { %4566 = vsyncadd (%p7091_p7), %s321_s15, 4294967072  ;;  %s4181_s6 = smul.u32 12, %s5005_s10  ;;  %s339_s0 = scalar_lea.sflag [#allocation10], %s320_s7 }
  0xd3   : > { %s341_s29 = scalar_lea.vmem [#allocation9], %s5005_s10 }
  0xd4   : > { %s5015_s9 = scalar_lea.vmem [#allocation8], %s4181_s6 }
  0xd5   : > { %4568 = dma.done.wait (%p7091_p7), %s339_s0, 32  }
  0xd6   : > { %4570 = vsyncadd (%p7091_p7), %s339_s0, 4294967264  ;;  %s349_s20 = scalar_lea.vmem [#allocation11], %s5005_s10  ;;  %s5023_s8 = scalar_lea.vmem [#allocation12], %s4025_s24 }
  0xd7   : > { %s7092_s3 = sld [smem:[#allocation20_spill]] }
  0xdd   : > { %p4028_p1 = scmp.ne.s32.totalorder %s7092_s3, 0 }
  0xde   : > { %vm399_vm0 = vcmask (!%p4028_p1), 15360   ;;  %v436_v0 = vld [vmem:[%s4997_s5] sm:$0xff] (!%p4028_p1)  ;;  %vm468_vm1 = vcmask (!%p4028_p1), 31744   ;;  %v437_v1 = vld [vmem:[%s4997_s5 + $0x8] sm:$0xff] (!%p4028_p1)  ;;  %v438_v2 = vld [vmem:[%s4997_s5 + $0x10] sm:$0xff] (!%p4028_p1)  ;;  %v4628_v3 = vmov (!%p4028_p1), 0  }
  0xdf   : > { %398 = sbr.rel (%p4028_p1) target bundleno = 257 (0x101), region = 64  ;;  %400 = vst.msk [vmem:[#allocation2] sm:$0xff] (!%p4028_p1), %vm399_vm0, %v4628_v3  ;;  %401 = vst.msk [vmem:[#allocation2 + $0x8] sm:$0xff] (!%p4028_p1), %vm399_vm0, %v4628_v3  ;;  %v439_v4 = vld [vmem:[%s4997_s5 + $0x18] sm:$0xff] (!%p4028_p1)  ;;  %v440_v5 = vld [vmem:[%s4997_s5 + $0x20] sm:$0xff] (!%p4028_p1) }
  0xe0   : > { %402 = vst.msk [vmem:[#allocation2 + $0x10] sm:$0xff] (!%p4028_p1), %vm399_vm0, %v4628_v3  ;;  %403 = vst.msk [vmem:[#allocation2 + $0x18] sm:$0xff] (!%p4028_p1), %vm399_vm0, %v4628_v3  ;;  %v441_v6 = vld [vmem:[%s4997_s5 + $0x28] sm:$0xff] (!%p4028_p1)  ;;  %v442_v7 = vld [vmem:[%s4997_s5 + $0x30] sm:$0xff] (!%p4028_p1) }
  0xe1   : > { %404 = vst.msk [vmem:[#allocation2 + $0x20] sm:$0xff] (!%p4028_p1), %vm399_vm0, %v4628_v3  ;;  %405 = vst.msk [vmem:[#allocation2 + $0x28] sm:$0xff] (!%p4028_p1), %vm399_vm0, %v4628_v3  ;;  %v443_v8 = vld [vmem:[%s4997_s5 + $0x38] sm:$0xff] (!%p4028_p1)  ;;  %v444_v9 = vld [vmem:[%s4997_s5 + $0x40] sm:$0xff] (!%p4028_p1) }
  0xe2   : > { %406 = vst.msk [vmem:[#allocation2 + $0x30] sm:$0xff] (!%p4028_p1), %vm399_vm0, %v4628_v3  ;;  %407 = vst.msk [vmem:[#allocation2 + $0x38] sm:$0xff] (!%p4028_p1), %vm399_vm0, %v4628_v3  ;;  %v445_v10 = vld [vmem:[%s4997_s5 + $0x48] sm:$0xff] (!%p4028_p1)  ;;  %v446_v11 = vld [vmem:[%s4997_s5 + $0x50] sm:$0xff] (!%p4028_p1) }
  0xe3   : > { %408 = vst.msk [vmem:[#allocation2 + $0x40] sm:$0xff] (!%p4028_p1), %vm399_vm0, %v4628_v3  ;;  %409 = vst.msk [vmem:[#allocation2 + $0x48] sm:$0xff] (!%p4028_p1), %vm399_vm0, %v4628_v3  ;;  %v447_v12 = vld [vmem:[%s4997_s5 + $0x58] sm:$0xff] (!%p4028_p1)  ;;  %v448_v13 = vld [vmem:[%s4997_s5 + $0x60] sm:$0xff] (!%p4028_p1) }
  0xe4   : > { %410 = vst.msk [vmem:[#allocation2 + $0x50] sm:$0xff] (!%p4028_p1), %vm399_vm0, %v4628_v3  ;;  %411 = vst.msk [vmem:[#allocation2 + $0x58] sm:$0xff] (!%p4028_p1), %vm399_vm0, %v4628_v3  ;;  %v449_v14 = vld [vmem:[%s4997_s5 + $0x68] sm:$0xff] (!%p4028_p1)  ;;  %v450_v15 = vld [vmem:[%s4997_s5 + $0x70] sm:$0xff] (!%p4028_p1) }
  0xe5   : > { %412 = vst.msk [vmem:[#allocation2 + $0x60] sm:$0xff] (!%p4028_p1), %vm399_vm0, %v4628_v3  ;;  %413 = vst.msk [vmem:[#allocation2 + $0x68] sm:$0xff] (!%p4028_p1), %vm399_vm0, %v4628_v3  ;;  %v451_v16 = vld [vmem:[%s4997_s5 + $0x78] sm:$0xff] (!%p4028_p1)  ;;  %v452_v17 = vld [vmem:[%s4997_s5 + $0x80] sm:$0xff] (!%p4028_p1) }
  0xe6   : > { %414 = vst.msk [vmem:[#allocation2 + $0x70] sm:$0xff] %vm399_vm0, %v4628_v3  ;;  %415 = vst.msk [vmem:[#allocation2 + $0x78] sm:$0xff] %vm399_vm0, %v4628_v3  ;;  %v453_v18 = vld [vmem:[%s4997_s5 + $0x88] sm:$0xff]  ;;  %v454_v19 = vld [vmem:[%s4997_s5 + $0x90] sm:$0xff] }
  0xe7   : > { %416 = vst.msk [vmem:[#allocation2 + $0x80] sm:$0xff] %vm399_vm0, %v4628_v3  ;;  %417 = vst.msk [vmem:[#allocation2 + $0x88] sm:$0xff] %vm399_vm0, %v4628_v3  ;;  %v455_v20 = vld [vmem:[%s4997_s5 + $0x98] sm:$0xff]  ;;  %v456_v21 = vld [vmem:[%s4997_s5 + $0xa0] sm:$0xff] }
  0xe8   : > { %418 = vst.msk [vmem:[#allocation2 + $0x90] sm:$0xff] %vm399_vm0, %v4628_v3  ;;  %419 = vst.msk [vmem:[#allocation2 + $0x98] sm:$0xff] %vm399_vm0, %v4628_v3  ;;  %v457_v22 = vld [vmem:[%s4997_s5 + $0xa8] sm:$0xff]  ;;  %v458_v23 = vld [vmem:[%s4997_s5 + $0xb0] sm:$0xff] }
  0xe9   : > { %420 = vst.msk [vmem:[#allocation2 + $0xa0] sm:$0xff] %vm399_vm0, %v4628_v3  ;;  %421 = vst.msk [vmem:[#allocation2 + $0xa8] sm:$0xff] %vm399_vm0, %v4628_v3  ;;  %v459_v24 = vld [vmem:[%s4997_s5 + $0xb8] sm:$0xff]  ;;  %v460_v25 = vld [vmem:[%s4997_s5 + $0xc0] sm:$0xff] }
  0xea   : > { %422 = vst.msk [vmem:[#allocation2 + $0xb0] sm:$0xff] %vm399_vm0, %v4628_v3  ;;  %423 = vst.msk [vmem:[#allocation2 + $0xb8] sm:$0xff] %vm399_vm0, %v4628_v3  ;;  %v461_v26 = vld [vmem:[%s4997_s5 + $0xc8] sm:$0xff]  ;;  %v462_v27 = vld [vmem:[%s4997_s5 + $0xd0] sm:$0xff] }
  0xeb   : > { %424 = vst.msk [vmem:[#allocation2 + $0xc0] sm:$0xff] %vm399_vm0, %v4628_v3  ;;  %425 = vst.msk [vmem:[#allocation2 + $0xc8] sm:$0xff] %vm399_vm0, %v4628_v3  ;;  %v463_v28 = vld [vmem:[%s4997_s5 + $0xd8] sm:$0xff]  ;;  %v464_v29 = vld [vmem:[%s4997_s5 + $0xe0] sm:$0xff] }
  0xec   : > { %426 = vst.msk [vmem:[#allocation2 + $0xd0] sm:$0xff] %vm399_vm0, %v4628_v3  ;;  %427 = vst.msk [vmem:[#allocation2 + $0xd8] sm:$0xff] %vm399_vm0, %v4628_v3  ;;  %v465_v30 = vld [vmem:[%s4997_s5 + $0xe8] sm:$0xff]  ;;  %v466_v31 = vld [vmem:[%s4997_s5 + $0xf0] sm:$0xff] }
  0xed   : > { %428 = vst.msk [vmem:[#allocation2 + $0xe0] sm:$0xff] %vm399_vm0, %v4628_v3  ;;  %429 = vst.msk [vmem:[#allocation2 + $0xe8] sm:$0xff] %vm399_vm0, %v4628_v3  ;;  %v467_v32 = vld [vmem:[%s4997_s5 + $0xf8] sm:$0xff] }
  0xee   : > { %430 = vst.msk [vmem:[#allocation2 + $0xf0] sm:$0xff] %vm399_vm0, %v4628_v3  ;;  %431 = vst.msk [vmem:[#allocation2 + $0xf8] sm:$0xff] %vm399_vm0, %v4628_v3 }
  0xef   : > { %432 = vst.msk [vmem:[#allocation2 + $0x100] sm:$0xff] %vm399_vm0, %v4628_v3  ;;  %433 = vst.msk [vmem:[#allocation2 + $0x108] sm:$0xff] %vm399_vm0, %v4628_v3 }
  0xf0   : > { %434 = vst.msk [vmem:[#allocation2 + $0x110] sm:$0xff] %vm399_vm0, %v4628_v3  ;;  %435 = vst.msk [vmem:[#allocation2 + $0x118] sm:$0xff] %vm399_vm0, %v4628_v3 }
  0xf1   : > { %469 = vst.msk [vmem:[%s5023_s8] sm:$0xff] %vm468_vm1, %v436_v0  ;;  %470 = vst.msk [vmem:[%s5023_s8 + $0x8] sm:$0xff] %vm468_vm1, %v437_v1 }
  0xf2   : > { %471 = vst.msk [vmem:[%s5023_s8 + $0x10] sm:$0xff] %vm468_vm1, %v438_v2  ;;  %472 = vst.msk [vmem:[%s5023_s8 + $0x18] sm:$0xff] %vm468_vm1, %v439_v4 }
  0xf3   : > { %473 = vst.msk [vmem:[%s5023_s8 + $0x20] sm:$0xff] %vm468_vm1, %v440_v5  ;;  %474 = vst.msk [vmem:[%s5023_s8 + $0x28] sm:$0xff] %vm468_vm1, %v441_v6 }
  0xf4   : > { %475 = vst.msk [vmem:[%s5023_s8 + $0x30] sm:$0xff] %vm468_vm1, %v442_v7  ;;  %476 = vst.msk [vmem:[%s5023_s8 + $0x38] sm:$0xff] %vm468_vm1, %v443_v8 }
  0xf5   : > { %477 = vst.msk [vmem:[%s5023_s8 + $0x40] sm:$0xff] %vm468_vm1, %v444_v9  ;;  %478 = vst.msk [vmem:[%s5023_s8 + $0x48] sm:$0xff] %vm468_vm1, %v445_v10 }
  0xf6   : > { %479 = vst.msk [vmem:[%s5023_s8 + $0x50] sm:$0xff] %vm468_vm1, %v446_v11  ;;  %480 = vst.msk [vmem:[%s5023_s8 + $0x58] sm:$0xff] %vm468_vm1, %v447_v12 }
  0xf7   : > { %481 = vst.msk [vmem:[%s5023_s8 + $0x60] sm:$0xff] %vm468_vm1, %v448_v13  ;;  %482 = vst.msk [vmem:[%s5023_s8 + $0x68] sm:$0xff] %vm468_vm1, %v449_v14 }
  0xf8   : > { %483 = vst.msk [vmem:[%s5023_s8 + $0x70] sm:$0xff] %vm468_vm1, %v450_v15  ;;  %484 = vst.msk [vmem:[%s5023_s8 + $0x78] sm:$0xff] %vm468_vm1, %v451_v16 }
  0xf9   : > { %485 = vst.msk [vmem:[%s5023_s8 + $0x80] sm:$0xff] %vm468_vm1, %v452_v17  ;;  %486 = vst.msk [vmem:[%s5023_s8 + $0x88] sm:$0xff] %vm468_vm1, %v453_v18 }
  0xfa   : > { %487 = vst.msk [vmem:[%s5023_s8 + $0x90] sm:$0xff] %vm468_vm1, %v454_v19  ;;  %488 = vst.msk [vmem:[%s5023_s8 + $0x98] sm:$0xff] %vm468_vm1, %v455_v20 }
  0xfb   : > { %489 = vst.msk [vmem:[%s5023_s8 + $0xa0] sm:$0xff] %vm468_vm1, %v456_v21  ;;  %490 = vst.msk [vmem:[%s5023_s8 + $0xa8] sm:$0xff] %vm468_vm1, %v457_v22 }
  0xfc   : > { %491 = vst.msk [vmem:[%s5023_s8 + $0xb0] sm:$0xff] %vm468_vm1, %v458_v23  ;;  %492 = vst.msk [vmem:[%s5023_s8 + $0xb8] sm:$0xff] %vm468_vm1, %v459_v24 }
  0xfd   : > { %493 = vst.msk [vmem:[%s5023_s8 + $0xc0] sm:$0xff] %vm468_vm1, %v460_v25  ;;  %494 = vst.msk [vmem:[%s5023_s8 + $0xc8] sm:$0xff] %vm468_vm1, %v461_v26 }
  0xfe   : > { %495 = vst.msk [vmem:[%s5023_s8 + $0xd0] sm:$0xff] %vm468_vm1, %v462_v27  ;;  %496 = vst.msk [vmem:[%s5023_s8 + $0xd8] sm:$0xff] %vm468_vm1, %v463_v28 }
  0xff   : > { %497 = vst.msk [vmem:[%s5023_s8 + $0xe0] sm:$0xff] %vm468_vm1, %v464_v29  ;;  %498 = vst.msk [vmem:[%s5023_s8 + $0xe8] sm:$0xff] %vm468_vm1, %v465_v30 }
 0x100   : > { %499 = vst.msk [vmem:[%s5023_s8 + $0xf0] sm:$0xff] %vm468_vm1, %v466_v31  ;;  %500 = vst.msk [vmem:[%s5023_s8 + $0xf8] sm:$0xff] %vm468_vm1, %v467_v32 }
 0x101 PF: > { %v549_v33 = vld [vmem:[%s5008_s21] sm:$0x3]  ;;  %vm606_vm2 = vcmask 1041408   ;;  %v502_v35 = vld [vmem:[%s5023_s8 + $0x8] sm:$0xff]  ;;  %vm557_vm3 = vcmask 31744   ;;  %v503_v38 = vld [vmem:[%s5023_s8 + $0x10] sm:$0xff] }
 0x102   : > { %v501_v34 = vld [vmem:[%s5023_s8] sm:$0xff]  ;;  %4177 = vmatprep.subr.msk.bf16.mxu0 %vm606_vm2, %v549_v33  ;;  %v608_v36 = vsel %vm606_vm2, %v549_v33, 0  ;;  %v504_v39 = vld [vmem:[%s5023_s8 + $0x18] sm:$0xff]  ;;  %v506_v42 = vld [vmem:[%s5023_s8 + $0x28] sm:$0xff]  ;;  %s4629_s17 = smov 2   ;;  %vm1464_vm4 = vcmask 1046528  }
 0x103   : > { %v533_v37 = vpack.c.bf16 %v502_v35, %v501_v34  ;;  %v505_v40 = vld [vmem:[%s5023_s8 + $0x20] sm:$0xff]  ;;  %4108 = vmatpush3.bf16.msra.mxu0 %v608_v36  ;;  %v534_v41 = vpack.c.bf16 %v504_v39, %v503_v38  ;;  %v507_v44 = vld [vmem:[%s5023_s8 + $0x30] sm:$0xff]  ;;  %v508_v45 = vld [vmem:[%s5023_s8 + $0x38] sm:$0xff]  ;;  %s4630_s27 = smov 4   ;;  %vm1127_vm5 = vsmask.f32 7424 }
 0x104   : > { %v535_v43 = vpack.c.bf16 %v506_v42, %v505_v40  ;;  %v509_v46 = vld [vmem:[%s5023_s8 + $0x40] sm:$0xff]  ;;  %v510_v47 = vld [vmem:[%s5023_s8 + $0x48] sm:$0xff]  ;;  %v536_v48 = vpack.c.bf16 %v508_v45, %v507_v44  ;;  %v511_v50 = vld [vmem:[%s5023_s8 + $0x50] sm:$0xff]  ;;  %vm900_vm6 = vcmask 15364   ;;  %vm902_vm7 = vcmask 11264   ;;  %s4631_s12 = smov 6  }
 0x105   : > { %4109 = vmatprep.mubr.msk.bf16.mxu0 %vm557_vm3, %v533_v37  ;;  %v537_v49 = vpack.c.bf16 %v510_v47, %v509_v46  ;;  %v512_v51 = vld [vmem:[%s5023_s8 + $0x58] sm:$0xff]  ;;  %v513_v52 = vld [vmem:[%s5023_s8 + $0x60] sm:$0xff]  ;;  %v514_v53 = vld [vmem:[%s5023_s8 + $0x68] sm:$0xff]  ;;  %s4632_s14 = smov 12   ;;  %s4633_s19 = smov 10   ;;  %vm3509_vm8 = vcmask 1040384  }
 0x106   : > { %4110 = vmatmul.mubr.msk.bf16.vlgmr.msra.gmra.mrb[0].mxu0 %vm557_vm3, %v534_v41  ;;  %v538_v54 = vpack.c.bf16 %v512_v51, %v511_v50  ;;  %v539_v55 = vpack.c.bf16 %v514_v53, %v513_v52  ;;  %v515_v56 = vld [vmem:[%s5023_s8 + $0x70] sm:$0xff]  ;;  %v516_v57 = vld [vmem:[%s5023_s8 + $0x78] sm:$0xff]  ;;  %v935_v59 = vld [vmem:[#allocation2 + $0x8] sm:$0xf]  ;;  %s4634_s24 = smov 16   ;;  %s4635_s16 = smov 8  }
 0x107   : > { %4113 = vmatprep.mubr.msk.bf16.mxu0 %vm557_vm3, %v535_v43  ;;  %v540_v58 = vpack.c.bf16 %v516_v57, %v515_v56  ;;  %v1136_v60 = vshll.u32 %v935_v59, 16  ;;  %v1140_v62 = vshrl.u32 %v935_v59, 16  ;;  %v966_v0 = vld [vmem:[#allocation2] sm:$0xf0]  ;;  %v982_v1 = vld [vmem:[#allocation2 + $0x8] sm:$0x1f] }
 0x108   : > { %v1465_v2 = vrot.slane %v966_v0, 1  ;;  %v1466_v3 = vrot.slane %v982_v1, 1  ;;  %v1131_v4 = vshll.u32 %v966_v0, 16  ;;  %v1129_v6 = vshrl.u32 %v966_v0, 16  ;;  %v517_v9 = vld [vmem:[%s5023_s8 + $0x80] sm:$0xff]  ;;  %v518_v10 = vld [vmem:[%s5023_s8 + $0x88] sm:$0xff] }
 0x109   : > { %v1138_v61 = vrot.slane %v1136_v60, 1  ;;  %v519_v11 = vld [vmem:[%s5023_s8 + $0x90] sm:$0xff]  ;;  %v541_v12 = vpack.c.bf16 %v518_v10, %v517_v9  ;;  %v520_v13 = vld [vmem:[%s5023_s8 + $0x98] sm:$0xff]  ;;  %v521_v16 = vld [vmem:[%s5023_s8 + $0xa0] sm:$0xff]  ;;  %s4636_s5 = smov 14   ;;  %vm2665_vm9 = vcmask 15360  }
 0x10a   : > { %v1467_v5 = vsel %vm1464_vm4, %v1465_v2, %v1466_v3  ;;  %v1133_v7 = vrot.slane %v1131_v4, 1  ;;  %1515 = vrot.lane.b32.xlu1 %v1466_v3, %s4630_s27  ;;  %v542_v15 = vpack.c.bf16 %v520_v13, %v519_v11  ;;  %v522_v17 = vld [vmem:[%s5023_s8 + $0xa8] sm:$0xff]  ;;  %v523_v19 = vld [vmem:[%s5023_s8 + $0xb0] sm:$0xff]  ;;  %v524_v20 = vld [vmem:[%s5023_s8 + $0xb8] sm:$0xff]  ;;  %vm2810_vm10 = vcmask 48128   ;;  %s7129_s1 = sld [smem:[#allocation21_spill]] }
 0x10b   : > { %v1142_v63 = vor.u32 %v1140_v62, %v1138_v61  ;;  %v543_v18 = vpack.c.bf16 %v522_v17, %v521_v16  ;;  %v544_v21 = vpack.c.bf16 %v524_v20, %v523_v19  ;;  %v525_v22 = vld [vmem:[%s5023_s8 + $0xc0] sm:$0xff]  ;;  %v526_v23 = vld [vmem:[%s5023_s8 + $0xc8] sm:$0xff]  ;;  %v527_v25 = vld [vmem:[%s5023_s8 + $0xd0] sm:$0xff]  ;;  %vm2875_vm11 = vcmask 64512   ;;  %s3848_s7 = sshll.u32 %s5023_s8, 4  ;;  %s7130_s15 = sld [smem:[#allocation46_spill]]  ;;  %s6956_s7 = int_to_ptr.vmem [resolvable:$true] %s3848_s7 }
 0x10c   : > { %v1134_v8 = vor.u32 %v1133_v7, %v1129_v6  ;;  %v545_v24 = vpack.c.bf16 %v526_v23, %v525_v22  ;;  %v528_v26 = vld [vmem:[%s5023_s8 + $0xd8] sm:$0xff]  ;;  %v529_v28 = vld [vmem:[%s5023_s8 + $0xe0] sm:$0xff]  ;;  %v530_v29 = vld [vmem:[%s5023_s8 + $0xe8] sm:$0xff]  ;;  %vm2940_vm12 = vcmask 80896   ;;  %vm3005_vm13 = vcmask 97280   ;;  %s3835_s6 = scalar_lea.sflag [#allocation5], %s4993_s13 }
 0x10d   : > { %1370 = vrot.lane.b32.xlu0 %v1142_v63, %s4629_s17  ;;  %v546_v27 = vpack.c.bf16 %v528_v26, %v527_v25  ;;  %v531_v30 = vld [vmem:[%s5023_s8 + $0xf0] sm:$0xff]  ;;  %v547_v31 = vpack.c.bf16 %v530_v29, %v529_v28  ;;  %v532_v32 = vld [vmem:[%s5023_s8 + $0xf8] sm:$0xff]  ;;  %v5215_v34 = vld [vmem:[%s341_s29] ss:$0 sm:$0xff]  ;;  %vm3070_vm14 = vcmask 113664   ;;  %vm3135_vm15 = vcmask 130048  }
 0x10e   : > { %4114 = vmatmul.mubr.msk.bf16.gmra.mrb[4].mxu0 %vm557_vm3, %v536_v48  ;;  %v1139_v14 = vsel %vm1127_vm5, %v1134_v8, %v1138_v61  ;;  %v548_v33 = vpack.c.bf16 %v532_v32, %v531_v30  ;;  %vm3200_vm0 = vsmask.f32 4352  ;;  %vm3460_vm1 = vcmask 146432   ;;  %p7131_p11 = scmp.ne.s32.totalorder %s7078_s30, 0  ;;  %s4637_s0 = smov [#allocation12]  }
 0x10f   : > { %4117 = vmatprep.mubr.msk.bf16.mxu0 %vm557_vm3, %v537_v49  ;;  %s4491_s29 = sshll.u32 %s4637_s0, 4  ;;  %s4492_s29 = int_to_ptr.vmem [resolvable:$false] %s4491_s29 }
 0x110   : > { %s4071_s25 = sshll.u32 %s7129_s1, 12  ;;  %p4494_p0 = scmp.lt.s32.totalorder %s6956_s7, %s4492_s29 }
 0x111   : > { %1513 = vrot.lane.b32.xlu0 %v1467_v5, %s4630_s27  ;;  %s6952_s21 = scalar_lea.hbm %s7130_s15, %s4071_s25 }
 0x115   : > { %1368 = vrot.lane.b32.xlu0 %v1139_v14, %s4629_s17 }
 0x116   : > { %4118 = vmatmul.mubr.msk.bf16.gmra.mrb[8].mxu0 %vm557_vm3, %v538_v54 }
 0x117   : > { %4121 = vmatprep.mubr.msk.bf16.mxu0 %vm557_vm3, %v539_v55 }
 0x11e   : > { %4122 = vmatmul.mubr.msk.bf16.gmra.mrb[12].mxu0 %vm557_vm3, %v540_v58 }
 0x11f   : > { %4125 = vmatprep.mubr.msk.bf16.mxu0 %vm557_vm3, %v541_v12 }
 0x126   : > { %4126 = vmatmul.mubr.msk.bf16.gmra.mrb[16].mxu0 %vm557_vm3, %v542_v15 }
 0x127   : > { %4129 = vmatprep.mubr.msk.bf16.mxu0 %vm557_vm3, %v543_v18 }
 0x12e   : > { %4130 = vmatmul.mubr.msk.bf16.gmra.mrb[20].mxu0 %vm557_vm3, %v544_v21 }
 0x12f   : > { %4133 = vmatprep.mubr.msk.bf16.mxu0 %vm557_vm3, %v545_v24 }
 0x136   : > { %4134 = vmatmul.mubr.msk.bf16.gmra.mrb[24].mxu0 %vm557_vm3, %v546_v27 }
 0x137   : > { %4137 = vmatprep.mubr.msk.bf16.mxu0 %vm557_vm3, %v547_v31 }
 0x13e   : > { %4138 = vmatmul.mubr.msk.bf16.gmra.mrb[28].mxu0 %vm557_vm3, %v548_v33 }
 0x1d9   : > { %v4111_v35 = vpop.f32.mrb[0].mxu0 }
 0x1da   : > { %v653_v36 = vadd.f32 %v4111_v35, %v5215_v34  ;;  %v644_v37 = vpop.f32.mrb[1].mxu0 }
 0x1db   : > { %v645_v38 = vadd.f32 %v5215_v34, %v644_v37  ;;  %v4112_v39 = vpop.f32.mrb[2].mxu0 }
 0x1dc   : > { %v773_v40 = vmul.f32 0.1, %v653_v36  ;;  %v656_v41 = vadd.f32 %v4112_v39, %v5215_v34  ;;  %v647_v42 = vpop.f32.mrb[3].mxu0 }
 0x1dd   : > { %v771_v43 = vmul.f32 0.1, %v645_v38  ;;  %v648_v44 = vadd.f32 %v5215_v34, %v647_v42 }
 0x1de   : > { %v774_v45 = vmul.f32 0.1, %v656_v41  ;;  %v805_v47 = vmax.f32 %v653_v36, %v773_v40 }
 0x1df   : > { %v772_v46 = vmul.f32 0.1, %v648_v44  ;;  %v803_v49 = vmax.f32 %v645_v38, %v771_v43 }
 0x1e0   : > { %v806_v48 = vmax.f32 %v656_v41, %v774_v45 }
 0x1e1   : > { %v804_v50 = vmax.f32 %v648_v44, %v772_v46  ;;  %v4115_v51 = vpop.f32.mrb[4].mxu0 }
 0x1e2   : > { %v836_v52 = vpack.c.bf16 %v806_v48, %v805_v47  ;;  %v669_v53 = vadd.f32 %v4115_v51, %v5215_v34  ;;  %v660_v54 = vpop.f32.mrb[5].mxu0 }
 0x1e3   : > { %v835_v55 = vpack.c.bf16 %v804_v50, %v803_v49  ;;  %v661_v56 = vadd.f32 %v5215_v34, %v660_v54  ;;  %v4116_v57 = vpop.f32.mrb[6].mxu0 }
 0x1e4   : > { %v868_v58 = vrot.slane %v836_v52, 4  ;;  %v777_v59 = vmul.f32 0.1, %v669_v53  ;;  %v672_v60 = vadd.f32 %v4116_v57, %v5215_v34  ;;  %v663_v61 = vpop.f32.mrb[7].mxu0 }
 0x1e5   : > { %v867_v62 = vrot.slane %v835_v55, 4  ;;  %v775_v63 = vmul.f32 0.1, %v661_v56  ;;  %v664_v0 = vadd.f32 %v5215_v34, %v663_v61 }
 0x1e6   : > { %904 = vst.msk [vmem:[#allocation2 + $0x20] sm:$0xf0] %vm900_vm6, %v868_v58  ;;  %v809_v1 = vmax.f32 %v669_v53, %v777_v59  ;;  %v778_v2 = vmul.f32 0.1, %v672_v60 }
 0x1e7   : > { %905 = vst.msk [vmem:[#allocation2 + $0x28] sm:$0xf] %vm902_vm7, %v868_v58  ;;  %903 = vst.msk [vmem:[#allocation2 + $0x18] sm:$0xf] %vm902_vm7, %v867_v62  ;;  %v807_v3 = vmax.f32 %v661_v56, %v775_v63  ;;  %v776_v4 = vmul.f32 0.1, %v664_v0 }
 0x1e8   : > { %901 = vst.msk [vmem:[#allocation2 + $0x10] sm:$0xf0] %vm900_vm6, %v867_v62  ;;  %v810_v5 = vmax.f32 %v672_v60, %v778_v2 }
 0x1e9   : > { %v808_v6 = vmax.f32 %v664_v0, %v776_v4  ;;  %v4119_v7 = vpop.f32.mrb[8].mxu0 }
 0x1ea   : > { %v838_v8 = vpack.c.bf16 %v810_v5, %v809_v1  ;;  %v676_v9 = vpop.f32.mrb[9].mxu0  ;;  %v685_v35 = vadd.f32 %v4119_v7, %v5215_v34 }
 0x1eb   : > { %v837_v10 = vpack.c.bf16 %v808_v6, %v807_v3  ;;  %v4120_v11 = vpop.f32.mrb[10].mxu0  ;;  %v677_v41 = vadd.f32 %v5215_v34, %v676_v9 }
 0x1ec   : > { %v870_v12 = vrot.slane %v838_v8, 4  ;;  %v679_v13 = vpop.f32.mrb[11].mxu0  ;;  %v781_v45 = vmul.f32 0.1, %v685_v35  ;;  %v688_v46 = vadd.f32 %v4120_v11, %v5215_v34 }
 0x1ed   : > { %v1000_v15 = vld [vmem:[#allocation2 + $0x20] sm:$0xf8]  ;;  %v869_v16 = vrot.slane %v837_v10, 4  ;;  %v680_v47 = vadd.f32 %v5215_v34, %v679_v13  ;;  %v779_v57 = vmul.f32 0.1, %v677_v41 }
 0x1ee   : > { %v5229_v14 = vld [vmem:[#allocation2 + $0x28] sm:$0xf]  ;;  %1613 = vrot.lane.b32.xlu0 %v1000_v15, %s4631_s12  ;;  %908 = vst.msk [vmem:[#allocation2 + $0x40] sm:$0xf0] %vm900_vm6, %v870_v12  ;;  %v1063_v17 = vld [vmem:[#allocation2 + $0x20] sm:$0xf8]  ;;  %v813_v58 = vmax.f32 %v685_v35, %v781_v45 }
 0x1ef   : > { %1615 = vrot.lane.b32.xlu1 %v5229_v14, %s4631_s12  ;;  %909 = vst.msk [vmem:[#allocation2 + $0x48] sm:$0xf] %vm902_vm7, %v870_v12  ;;  %v5236_v18 = vld [vmem:[#allocation2 + $0x28] sm:$0xf]  ;;  %907 = vst.msk [vmem:[#allocation2 + $0x38] sm:$0xf] %vm902_vm7, %v869_v16  ;;  %v811_v0 = vmax.f32 %v677_v41, %v779_v57 }
 0x1f0   : > { %906 = vst.msk [vmem:[#allocation2 + $0x30] sm:$0xf0] %vm900_vm6, %v869_v16  ;;  %v5243_v19 = vld [vmem:[#allocation2 + $0x18] sm:$0xf]  ;;  %v998_v20 = vld [vmem:[#allocation2 + $0x10] sm:$0xf8] }
 0x1f1   : > { %v984_v21 = vld [vmem:[#allocation2 + $0x28] sm:$0x1f]  ;;  %v983_v25 = vld [vmem:[#allocation2 + $0x18] sm:$0x1f]  ;;  %v5250_v27 = vld [vmem:[#allocation2 + $0x20] sm:$0xf0] }
 0x1f2   : > { %2155 = vrot.lane.b32.xlu0 %v5236_v18, %s4632_s14  ;;  %v1047_v22 = vld [vmem:[#allocation2 + $0x28] sm:$0x1f]  ;;  %v1472_v23 = vrot.slane %v984_v21, 1  ;;  %v5252_v28 = vld [vmem:[#allocation2 + $0x20] sm:$0xf0]  ;;  %v1469_v29 = vrot.slane %v983_v25, 1 }
 0x1f3   : > { %2153 = vrot.lane.b32.xlu1 %v1063_v17, %s4632_s14  ;;  %v2013_v24 = vrot.slane %v1047_v22, 1  ;;  %v1111_v26 = vld [vmem:[#allocation2 + $0x28] sm:$0x1f]  ;;  %v2012_v31 = vrot.slane %v5250_v27, 1  ;;  %v1471_v32 = vrot.slane %v5252_v28, 1  ;;  %v5265_v42 = vpop.f32.mrb[12].mxu0 }
 0x1f4   : > { %v2554_v30 = vrot.slane %v1111_v26, 1  ;;  %v5258_v33 = vld [vmem:[#allocation2 + $0x20] sm:$0xf0]  ;;  %v1046_v39 = vld [vmem:[#allocation2 + $0x18] sm:$0x1f]  ;;  %v1696_v48 = vshll.u32 %v5229_v14, 16 }
 0x1f5   : > { %v2014_v36 = vsel %vm1464_vm4, %v2012_v31, %v2013_v24  ;;  %v1473_v37 = vsel %vm1464_vm4, %v1471_v32, %v1472_v23  ;;  %v2553_v38 = vrot.slane %v5258_v33, 1  ;;  %v939_v40 = vld [vmem:[#allocation2 + $0x28] sm:$0xf]  ;;  %v5269_v43 = vld [vmem:[#allocation2 + $0x10] sm:$0xf0]  ;;  %v5276_v49 = vpop.f32.mrb[13].mxu0 }
 0x1f6   : > { %1609 = vrot.lane.b32.xlu0 %v998_v20, %s4631_s12  ;;  %v5271_v44 = vld [vmem:[#allocation2 + $0x10] sm:$0xf0]  ;;  %v2010_v50 = vrot.slane %v1046_v39, 1  ;;  %v1166_v51 = vshll.u32 %v939_v40, 16  ;;  %v4124_v52 = vpop.f32.mrb[14].mxu0  ;;  %v2009_v54 = vrot.slane %v5269_v43, 1 }
 0x1f7   : > { %1611 = vrot.lane.b32.xlu1 %v5243_v19, %s4631_s12  ;;  %v2555_v53 = vsel %vm1464_vm4, %v2553_v38, %v2554_v30  ;;  %v1468_v55 = vrot.slane %v5271_v44, 1  ;;  %v937_v56 = vld [vmem:[#allocation2 + $0x18] sm:$0xf]  ;;  %v782_v59 = vmul.f32 0.1, %v688_v46  ;;  %v1698_v61 = vrot.slane %v1696_v48, 1 }
 0x1f8   : > { %v780_v60 = vmul.f32 0.1, %v680_v47  ;;  %v1700_v62 = vshrl.u32 %v5229_v14, 16  ;;  %v2225_v63 = vshll.u32 %v5236_v18, 16  ;;  %v5285_v1 = vpop.f32.mrb[15].mxu0  ;;  %v1168_v2 = vrot.slane %v1166_v51, 1 }
 0x1f9   : > { %v1151_v3 = vshll.u32 %v937_v56, 16  ;;  %v814_v4 = vmax.f32 %v688_v46, %v782_v59  ;;  %v2011_v6 = vsel %vm1464_vm4, %v2009_v54, %v2010_v50  ;;  %v1470_v7 = vsel %vm1464_vm4, %v1468_v55, %v1469_v29 }
 0x1fa   : > { %2063 = vrot.lane.b32.xlu0 %v2013_v24, %s4633_s19  ;;  %v812_v5 = vmax.f32 %v680_v47, %v780_v60  ;;  %v1691_v8 = vshll.u32 %v5250_v27, 16  ;;  %v1161_v9 = vshll.u32 %v5252_v28, 16  ;;  %v1170_v10 = vshrl.u32 %v939_v40, 16 }
 0x1fb   : > { %1523 = vrot.lane.b32.xlu1 %v1472_v23, %s4630_s27  ;;  %v840_v11 = vpack.c.bf16 %v814_v4, %v813_v58  ;;  %v2227_v13 = vrot.slane %v2225_v63, 1  ;;  %v1702_v14 = vor.u32 %v1700_v62, %v1698_v61  ;;  %v1153_v16 = vrot.slane %v1151_v3, 1 }
 0x1fc   : > { %v839_v12 = vpack.c.bf16 %v812_v5, %v811_v0  ;;  %v1172_v15 = vor.u32 %v1170_v10, %v1168_v2  ;;  %v1693_v21 = vrot.slane %v1691_v8, 1  ;;  %v1163_v22 = vrot.slane %v1161_v9, 1  ;;  %v5331_v0 = vld [vmem:[#allocation2 + $0x48] sm:$0xf]  ;;  %v1067_v8 = vld [vmem:[#allocation2 + $0x40] sm:$0xf8] }
 0x1fd   : > { %v872_v17 = vrot.slane %v840_v11, 4  ;;  %v2220_v23 = vshll.u32 %v5258_v33, 16  ;;  %v2229_v24 = vshrl.u32 %v5236_v18, 16  ;;  %v1155_v25 = vshrl.u32 %v937_v56, 16  ;;  %v1049_v9 = vld [vmem:[#allocation2 + $0x48] sm:$0x1f] }
 0x1fe   : > { %2603 = vrot.lane.b32.xlu0 %v2554_v30, %s4634_s24  ;;  %v871_v20 = vrot.slane %v839_v12, 4  ;;  %v1689_v26 = vshrl.u32 %v5250_v27, 16  ;;  %v1681_v18 = vshll.u32 %v5243_v19, 16  ;;  %v1146_v32 = vshll.u32 %v5271_v44, 16  ;;  %v5349_v11 = vld [vmem:[#allocation2 + $0x38] sm:$0xf] }
 0x1ff   : > { %1519 = vrot.lane.b32.xlu1 %v1469_v29, %s4630_s27  ;;  %912 = vst.msk [vmem:[#allocation2 + $0x60] sm:$0xf0] %vm900_vm6, %v872_v17  ;;  %v1159_v29 = vshrl.u32 %v5252_v28, 16  ;;  %v1157_v30 = vor.u32 %v1155_v25, %v1153_v16  ;;  %v2231_v31 = vor.u32 %v2229_v24, %v2227_v13  ;;  %v701_v38 = vadd.f32 %v5265_v42, %v5215_v34  ;;  %v1113_v12 = vld [vmem:[#allocation2 + $0x48] sm:$0x1f] }
 0x200   : > { %913 = vst.msk [vmem:[#allocation2 + $0x68] sm:$0xf] %vm902_vm7, %v872_v17  ;;  %911 = vst.msk [vmem:[#allocation2 + $0x58] sm:$0xf] %vm902_vm7, %v871_v20  ;;  %v1694_v35 = vor.u32 %v1693_v21, %v1689_v26  ;;  %v704_v27 = vadd.f32 %v4124_v52, %v5215_v34  ;;  %v2218_v28 = vshrl.u32 %v5258_v33, 16  ;;  %v1683_v40 = vrot.slane %v1681_v18, 1 }
 0x201   : > { %910 = vst.msk [vmem:[#allocation2 + $0x50] sm:$0xf0] %vm900_vm6, %v871_v20  ;;  %v785_v39 = vmul.f32 0.1, %v701_v38  ;;  %v1148_v41 = vrot.slane %v1146_v32, 1  ;;  %v1685_v42 = vshrl.u32 %v5243_v19, 16  ;;  %v693_v33 = vadd.f32 %v5215_v34, %v5276_v49 }
 0x202   : > { %1521 = vrot.lane.b32.xlu0 %v1473_v37, %s4630_s27  ;;  %v2222_v37 = vrot.slane %v2220_v23, 1  ;;  %v786_v45 = vmul.f32 0.1, %v704_v27  ;;  %v1699_v46 = vsel %vm1127_vm5, %v1694_v35, %v1698_v61  ;;  %v1144_v51 = vshrl.u32 %v5271_v44, 16  ;;  %v1004_v19 = vld [vmem:[#allocation2 + $0x40] sm:$0xf8] }
 0x203   : > { %2061 = vrot.lane.b32.xlu1 %v2014_v36, %s4633_s19  ;;  %v1164_v36 = vor.u32 %v1163_v22, %v1159_v29  ;;  %v1676_v56 = vshll.u32 %v5269_v43, 16  ;;  %v783_v58 = vmul.f32 0.1, %v693_v33  ;;  %v696_v44 = vadd.f32 %v5215_v34, %v5285_v1  ;;  %v1112_v22 = vld [vmem:[#allocation2 + $0x38] sm:$0x1f] }
 0x204   : > { %v2223_v48 = vor.u32 %v2222_v37, %v2218_v28  ;;  %v818_v52 = vmax.f32 %v704_v27, %v786_v45  ;;  %v1149_v55 = vor.u32 %v1148_v41, %v1144_v51  ;;  %v1674_v61 = vshrl.u32 %v5269_v43, 16  ;;  %v1002_v43 = vld [vmem:[#allocation2 + $0x30] sm:$0xf8]  ;;  %v985_v23 = vld [vmem:[#allocation2 + $0x38] sm:$0x1f]  ;;  %v4127_v27 = vpop.f32.mrb[16].mxu0 }
 0x205   : > { %v1169_v47 = vsel %vm1127_vm5, %v1164_v36, %v1168_v2  ;;  %v1678_v49 = vrot.slane %v1676_v56, 1  ;;  %v815_v62 = vmax.f32 %v693_v33, %v783_v58  ;;  %v784_v63 = vmul.f32 0.1, %v696_v44  ;;  %v5333_v2 = vld [vmem:[#allocation2 + $0x48] sm:$0xf]  ;;  %v708_v33 = vpop.f32.mrb[17].mxu0 }
 0x206   : > { %2059 = vrot.lane.b32.xlu0 %v2010_v50, %s4633_s19  ;;  %v817_v50 = vmax.f32 %v701_v38, %v785_v39  ;;  %v2228_v54 = vsel %vm1127_vm5, %v2223_v48, %v2227_v13  ;;  %v1154_v59 = vsel %vm1127_vm5, %v1149_v55, %v1153_v16  ;;  %v2019_v10 = vrot.slane %v1049_v9, 1  ;;  %v986_v13 = vld [vmem:[#allocation2 + $0x48] sm:$0x1f]  ;;  %v1065_v16 = vld [vmem:[#allocation2 + $0x30] sm:$0xf8] }
 0x207   : > { %2601 = vrot.lane.b32.xlu1 %v2555_v53, %s4634_s24  ;;  %v1687_v53 = vor.u32 %v1685_v42, %v1683_v40  ;;  %v1679_v1 = vor.u32 %v1678_v49, %v1674_v61  ;;  %v816_v3 = vmax.f32 %v696_v44, %v784_v63  ;;  %v1478_v20 = vrot.slane %v986_v13, 1  ;;  %v5362_v26 = vld [vmem:[#allocation2 + $0x40] sm:$0xf0]  ;;  %v1048_v29 = vld [vmem:[#allocation2 + $0x38] sm:$0x1f] }
 0x208   : > { %v842_v57 = vpack.c.bf16 %v818_v52, %v817_v50  ;;  %v2557_v24 = vrot.slane %v1112_v22, 1  ;;  %v1475_v25 = vrot.slane %v985_v23, 1  ;;  %v2018_v18 = vrot.slane %v5362_v26, 1  ;;  %v5368_v32 = vld [vmem:[#allocation2 + $0x30] sm:$0xf0] }
 0x209   : > { %v841_v4 = vpack.c.bf16 %v816_v3, %v815_v62  ;;  %v1684_v5 = vsel %vm1127_vm5, %v1679_v1, %v1683_v40  ;;  %v5370_v35 = vld [vmem:[#allocation2 + $0x40] sm:$0xf0]  ;;  %v1474_v37 = vrot.slane %v5368_v32, 1  ;;  %v2255_v28 = vshll.u32 %v5331_v0, 16  ;;  %v5381_v41 = vld [vmem:[#allocation2 + $0x30] sm:$0xf0] }
 0x20a   : > { %1517 = vrot.lane.b32.xlu0 %v1470_v7, %s4630_s27  ;;  %v874_v60 = vrot.slane %v842_v57, 4  ;;  %v5344_v7 = vld [vmem:[#allocation2 + $0x38] sm:$0xf]  ;;  %v2020_v36 = vsel %vm1464_vm4, %v2018_v18, %v2019_v10  ;;  %v2559_v38 = vrot.slane %v5370_v35, 1  ;;  %v1730_v40 = vshrl.u32 %v5333_v2, 16 }
 0x20b   : > { %2057 = vrot.lane.b32.xlu1 %v2011_v6, %s4633_s19  ;;  %v873_v6 = vrot.slane %v841_v4, 4  ;;  %v717_v45 = vadd.f32 %v4127_v27, %v5215_v34  ;;  %v943_v50 = vld [vmem:[#allocation2 + $0x48] sm:$0xf]  ;;  %v2259_v52 = vshrl.u32 %v5331_v0, 16  ;;  %v5392_v55 = vrot.slane %v2255_v28, 1 }
 0x20c   : > { %916 = vst.msk [vmem:[#allocation2 + $0x80] sm:$0xf0] %vm900_vm6, %v874_v60  ;;  %v1196_v49 = vshll.u32 %v943_v50, 16  ;;  %v1200_v9 = vshrl.u32 %v943_v50, 16  ;;  %v1711_v22 = vshll.u32 %v5349_v11, 16  ;;  %v1719_v18 = vshrl.u32 %v5362_v26, 16 }
 0x20d   : > { %917 = vst.msk [vmem:[#allocation2 + $0x88] sm:$0xf] %vm902_vm7, %v874_v60  ;;  %915 = vst.msk [vmem:[#allocation2 + $0x78] sm:$0xf] %vm902_vm7, %v873_v6  ;;  %v789_v51 = vmul.f32 0.1, %v717_v45 }
 0x20e   : > { %1919 = vrot.lane.b32.xlu0 %v1702_v14, %s4635_s16  ;;  %914 = vst.msk [vmem:[#allocation2 + $0x70] sm:$0xf0] %vm900_vm6, %v873_v6  ;;  %v2560_v14 = vrot.slane %v1113_v12, 1  ;;  %v5427_v27 = vrot.slane %v1711_v22, 1  ;;  %v5469_v22 = vld [vmem:[#allocation2 + $0x68] sm:$0xf] }
 0x20f   : > { %1378 = vrot.lane.b32.xlu1 %v1172_v15, %s4629_s17  ;;  %v5354_v15 = vld [vmem:[#allocation2 + $0x40] sm:$0xf0] }
 0x210   : > { %v1477_v17 = vrot.slane %v5354_v15, 1  ;;  %v2561_v48 = vsel %vm1464_vm4, %v2559_v38, %v2560_v14  ;;  %v1191_v42 = vshll.u32 %v5354_v15, 16  ;;  %v1189_v57 = vshrl.u32 %v5354_v15, 16  ;;  %v5422_v38 = vpop.permute.xlu0 %1370 }
 0x211   : > { %v1721_v15 = vshll.u32 %v5362_v26, 16  ;;  %v1715_v26 = vshrl.u32 %v5349_v11, 16 }
 0x212   : > { %2459 = vrot.lane.b32.xlu0 %v2231_v31, %s4636_s5  ;;  %v1479_v21 = vsel %vm1464_vm4, %v1477_v17, %v1478_v20  ;;  %v2016_v31 = vrot.slane %v1048_v29, 1  ;;  %v1193_v63 = vrot.slane %v1191_v42, 1  ;;  %v2244_v17 = vshrl.u32 %v5344_v7, 16 }
 0x213   : > { %1374 = vrot.lane.b32.xlu1 %v1157_v30, %s4629_s17  ;;  %v1726_v30 = vshll.u32 %v5333_v2, 16  ;;  %v1717_v42 = vor.u32 %v1715_v26, %v5427_v27 }
 0x215   : > { %v5378_v39 = vrot.slane %v1726_v30, 1 }
 0x216   : > { %1376 = vrot.lane.b32.xlu0 %v1169_v47, %s4629_s17  ;;  %v1476_v47 = vsel %vm1464_vm4, %v1474_v37, %v1475_v25  ;;  %v2250_v37 = vshll.u32 %v5370_v35, 16 }
 0x217   : > { %1917 = vrot.lane.b32.xlu1 %v1699_v46, %s4635_s16  ;;  %v2556_v46 = vrot.slane %v5381_v41, 1  ;;  %v1732_v56 = vor.u32 %v1730_v40, %v5378_v39 }
 0x218   : > { %v2252_v50 = vrot.slane %v2250_v37, 1 }
 0x219   : > { %v2558_v44 = vsel %vm1464_vm4, %v2556_v46, %v2557_v24 }
 0x21a   : > { %1915 = vrot.lane.b32.xlu0 %v1687_v53, %s4635_s16  ;;  %v709_v53 = vadd.f32 %v5215_v34, %v708_v33 }
 0x21b   : > { %2457 = vrot.lane.b32.xlu1 %v2228_v54, %s4636_s5  ;;  %v4128_v54 = vpop.f32.mrb[18].mxu0 }
 0x21c   : > { %v711_v58 = vpop.f32.mrb[19].mxu0  ;;  %v787_v60 = vmul.f32 0.1, %v709_v53 }
 0x21d   : > { %v712_v61 = vadd.f32 %v5215_v34, %v711_v58  ;;  %v4131_v33 = vpop.f32.mrb[20].mxu0 }
 0x21e   : > { %1621 = vrot.lane.b32.xlu0 %v1004_v19, %s4631_s12  ;;  %v720_v19 = vadd.f32 %v4128_v54, %v5215_v34  ;;  %v819_v3 = vmax.f32 %v709_v53, %v787_v60  ;;  %v733_v54 = vadd.f32 %v4131_v33, %v5215_v34 }
 0x21f   : > { %1372 = vrot.lane.b32.xlu1 %v1154_v59, %s4629_s17  ;;  %v5398_v59 = vld [vmem:[#allocation2 + $0x30] sm:$0xf0]  ;;  %v788_v4 = vmul.f32 0.1, %v712_v61 }
 0x220   : > { %v2015_v62 = vrot.slane %v5398_v59, 1  ;;  %v790_v1 = vmul.f32 0.1, %v720_v19 }
 0x221   : > { %v820_v12 = vmax.f32 %v712_v61, %v788_v4  ;;  %v4318_v4 = vld [vmem:[%s5015_s9] sm:$0xff]  }
 0x222   : > { %2163 = vrot.lane.b32.xlu0 %v5331_v0, %s4632_s14  ;;  %v941_v0 = vld [vmem:[#allocation2 + $0x38] sm:$0xf]  ;;  %v822_v6 = vmax.f32 %v720_v19, %v790_v1  ;;  %v2017_v13 = vsel %vm1464_vm4, %v2015_v62, %v2016_v31  ;;  %v793_v19 = vmul.f32 0.1, %v733_v54  ;;  %4141 = vmatprep.subr.bf16.mxu1 %v4318_v4 }
 0x223   : > { %1623 = vrot.lane.b32.xlu1 %v5333_v2, %s4631_s12  ;;  %v821_v2 = vmax.f32 %v717_v45, %v789_v51  ;;  %v1185_v23 = vshrl.u32 %v941_v0, 16  ;;  %v1174_v45 = vshrl.u32 %v5368_v32, 16  ;;  %v5435_v51 = vpop.permute.xlu0 %1513  ;;  %4142 = vmatpush3.bf16.msra.mxu1 %v4318_v4  ;;  %v1069_v4 = vld [vmem:[#allocation2 + $0x50] sm:$0xf8] }
 0x224   : > { %v825_v62 = vmax.f32 %v733_v54, %v793_v19 }
 0x226   : > { %1617 = vrot.lane.b32.xlu0 %v1002_v43, %s4631_s12  ;;  %v2240_v43 = vshll.u32 %v5344_v7, 16 }
 0x227   : > { %1913 = vrot.lane.b32.xlu1 %v1684_v5, %s4635_s16  ;;  %v2261_v5 = vor.u32 %v2259_v52, %v5392_v55 }
 0x22a   : > { %2159 = vrot.lane.b32.xlu0 %v5344_v7, %s4632_s14  ;;  %v1176_v7 = vshll.u32 %v5368_v32, 16 }
 0x22b   : > { %2161 = vrot.lane.b32.xlu1 %v1067_v8, %s4632_s14  ;;  %v1198_v8 = vrot.slane %v1196_v49, 1 }
 0x22e   : > { %2071 = vrot.lane.b32.xlu0 %v2019_v10, %s4633_s19  ;;  %v1181_v10 = vshll.u32 %v941_v0, 16  ;;  %v5452_v0 = vpop.permute.xlu1 %1515 }
 0x22f   : > { %1619 = vrot.lane.b32.xlu1 %v5349_v11, %s4631_s12  ;;  %v2235_v11 = vshll.u32 %v5381_v41, 16 }
 0x230   : > { %v1183_v29 = vrot.slane %v1181_v10, 1 }
 0x231   : > { %v2237_v49 = vrot.slane %v2235_v11, 1 }
 0x232   : > { %2611 = vrot.lane.b32.xlu0 %v2560_v14, %s4634_s24  ;;  %v1194_v14 = vor.u32 %v1193_v63, %v1189_v57  ;;  %v1187_v40 = vor.u32 %v1185_v23, %v1183_v29 }
 0x233   : > { %2157 = vrot.lane.b32.xlu1 %v1065_v16, %s4632_s14  ;;  %v844_v16 = vpack.c.bf16 %v822_v6, %v821_v2  ;;  %v5454_v2 = vpop.permute.xlu0 %1368 }
 0x236   : > { %1529 = vrot.lane.b32.xlu0 %v1479_v21, %s4630_s27  ;;  %v5411_v21 = vrot.slane %v2240_v43, 1  ;;  %v1008_v43 = vld [vmem:[#allocation2 + $0x60] sm:$0xf8] }
 0x237   : > { %1531 = vrot.lane.b32.xlu1 %v1478_v20, %s4630_s27  ;;  %v843_v20 = vpack.c.bf16 %v820_v12, %v819_v3  ;;  %v4319_v12 = vld [vmem:[%s5015_s9 + $0x8] ss:$0 sps:$4 sm:$0x11]   ;;  %s4487_s9 = scalar_lea.vmem %s6956_s7, 4096 }
 0x238   : > { %v2246_v28 = vor.u32 %v2244_v17, %v5411_v21  ;;  %4178 = vmatprep.subr.msk.bf16.mxu1 %vm3509_vm8, %v4319_v12  ;;  %p4488_p6 = scmp.ne.s32.totalorder %s6956_s7, %s4487_s9 }
 0x239   : > { %v875_v30 = vrot.slane %v843_v20, 4  ;;  %v3511_v20 = vsel %vm3509_vm8, %v4319_v12, 0 }
 0x23a   : > { %2607 = vrot.lane.b32.xlu0 %v2557_v24, %s4634_s24  ;;  %v876_v24 = vrot.slane %v844_v16, 4  ;;  %4144 = vmatpush3.bf16.msra.mxu1 %v3511_v20  ;;  %p4489_p4 = pnand %p4488_p6, %p7131_p11 }
 0x23b   : > { %1527 = vrot.lane.b32.xlu1 %v1475_v25, %s4630_s27  ;;  %v1202_v25 = vor.u32 %v1200_v9, %v1198_v8  ;;  %918 = vst.msk [vmem:[#allocation2 + $0x90] sm:$0xf0] %vm900_vm6, %v875_v30 }
 0x23c   : > { %920 = vst.msk [vmem:[#allocation2 + $0xa0] sm:$0xf0] %vm900_vm6, %v876_v24  ;;  %p4490_p9 = pneg %p4489_p4 }
 0x23d   : > { %921 = vst.msk [vmem:[#allocation2 + $0xa8] sm:$0xf] %vm902_vm7, %v876_v24  ;;  %919 = vst.msk [vmem:[#allocation2 + $0x98] sm:$0xf] %vm902_vm7, %v875_v30 }
 0x23e   : > { %2067 = vrot.lane.b32.xlu0 %v2016_v31, %s4633_s19  ;;  %v1199_v31 = vsel %vm1127_vm5, %v1194_v14, %v1198_v8  ;;  %v5459_v8 = vld [vmem:[#allocation2 + $0x68] sm:$0xf] }
 0x23f   : > { %2069 = vrot.lane.b32.xlu1 %v2020_v36, %s4633_s19  ;;  %v1723_v36 = vrot.slane %v1721_v15, 1 }
 0x241   : > { %v1724_v46 = vor.u32 %v1723_v36, %v1719_v18 }
 0x242   : > { %1525 = vrot.lane.b32.xlu0 %v1476_v47, %s4630_s27  ;;  %v1178_v47 = vrot.slane %v1176_v7, 1 }
 0x243   : > { %2609 = vrot.lane.b32.xlu1 %v2561_v48, %s4634_s24  ;;  %v2248_v48 = vshrl.u32 %v5370_v35, 16  ;;  %v1729_v52 = vsel %vm1127_vm5, %v1724_v46, %v5378_v39  ;;  %v724_v35 = vpop.f32.mrb[21].mxu0  ;;  %v1706_v39 = vshll.u32 %v5398_v59, 16  ;;  %v1071_v46 = vld [vmem:[#allocation2 + $0x60] sm:$0xf8] }
 0x244   : > { %v1179_v32 = vor.u32 %v1178_v47, %v1174_v45  ;;  %v4132_v57 = vpop.f32.mrb[22].mxu0 }
 0x245   : > { %v2253_v53 = vor.u32 %v2252_v50, %v2248_v48  ;;  %v736_v58 = vadd.f32 %v4132_v57, %v5215_v34  ;;  %v727_v3 = vpop.f32.mrb[23].mxu0  ;;  %v1708_v6 = vrot.slane %v1706_v39, 1  ;;  %v5497_v50 = vld [vmem:[#allocation2 + $0x68] sm:$0x1f] }
 0x246   : > { %1927 = vrot.lane.b32.xlu0 %v1732_v56, %s4635_s16  ;;  %v725_v56 = vadd.f32 %v5215_v34, %v724_v35  ;;  %v1184_v60 = vsel %vm1127_vm5, %v1179_v32, %v1183_v29  ;;  %v4135_v36 = vpop.f32.mrb[24].mxu0  ;;  %v2025_v35 = vrot.slane %v5497_v50, 1  ;;  %v2285_v50 = vshll.u32 %v5469_v22, 16 }
 0x247   : > { %2605 = vrot.lane.b32.xlu1 %v2558_v44, %s4634_s24  ;;  %v2233_v44 = vshrl.u32 %v5381_v41, 16  ;;  %v2258_v61 = vsel %vm1127_vm5, %v2253_v53, %v5392_v55  ;;  %v794_v63 = vmul.f32 0.1, %v736_v58  ;;  %v728_v55 = vadd.f32 %v5215_v34, %v727_v3  ;;  %v740_v37 = vpop.f32.mrb[25].mxu0 }
 0x248   : > { %v791_v41 = vmul.f32 0.1, %v725_v56  ;;  %v749_v7 = vadd.f32 %v4135_v36, %v5215_v34  ;;  %v741_v26 = vadd.f32 %v5215_v34, %v740_v37 }
 0x249   : > { %v826_v1 = vmax.f32 %v736_v58, %v794_v63  ;;  %v2238_v9 = vor.u32 %v2237_v49, %v2233_v44  ;;  %v792_v14 = vmul.f32 0.1, %v728_v55  ;;  %v5508_v58 = vld [vmem:[#allocation2 + $0x58] sm:$0xf]  ;;  %v5510_v44 = vld [vmem:[#allocation2 + $0x68] sm:$0x1f] }
 0x24a   : > { %2467 = vrot.lane.b32.xlu0 %v2261_v5, %s4636_s5  ;;  %v1704_v5 = vshrl.u32 %v5398_v59, 16  ;;  %v797_v47 = vmul.f32 0.1, %v749_v7  ;;  %v988_v49 = vld [vmem:[#allocation2 + $0x68] sm:$0x1f]  ;;  %v2566_v63 = vrot.slane %v5510_v44, 1 }
 0x24b   : > { %2065 = vrot.lane.b32.xlu1 %v2017_v13, %s4633_s19  ;;  %v846_v10 = vpack.c.bf16 %v826_v1, %v825_v62  ;;  %v823_v13 = vmax.f32 %v725_v56, %v791_v41  ;;  %v824_v17 = vmax.f32 %v728_v55, %v792_v14  ;;  %v2243_v23 = vsel %vm1127_vm5, %v2238_v9, %v5411_v21  ;;  %v5522_v41 = vld [vmem:[#allocation2 + $0x60] sm:$0xf0] }
 0x24c   : > { %v1709_v24 = vor.u32 %v1708_v6, %v1704_v5  ;;  %v829_v33 = vmax.f32 %v749_v7, %v797_v47  ;;  %v1484_v5 = vrot.slane %v988_v49, 1  ;;  %v5551_v47 = vld [vmem:[#allocation2 + $0x60] sm:$0xf0] }
 0x24d   : > { %v878_v15 = vrot.slane %v846_v10, 4 }
 0x24e   : > { %1384 = vrot.lane.b32.xlu0 %v1199_v31, %s4629_s17  ;;  %v1006_v31 = vld [vmem:[#allocation2 + $0x50] sm:$0xf8]  ;;  %v1714_v21 = vsel %vm1127_vm5, %v1709_v24, %v5427_v27  ;;  %v5494_v27 = vld [vmem:[#allocation2 + $0x58] sm:$0xf] }
 0x24f   : > { %1386 = vrot.lane.b32.xlu1 %v1202_v25, %s4629_s17  ;;  %924 = vst.msk [vmem:[#allocation2 + $0xc0] sm:$0xf0] %vm900_vm6, %v878_v15  ;;  %v845_v25 = vpack.c.bf16 %v824_v17, %v823_v13  ;;  %v5537_v17 = vld [vmem:[#allocation2 + $0x58] sm:$0x1f] }
 0x250   : > { %925 = vst.msk [vmem:[#allocation2 + $0xc8] sm:$0xf] %vm902_vm7, %v878_v15  ;;  %v2563_v37 = vrot.slane %v5537_v17, 1 }
 0x251   : > { %v877_v30 = vrot.slane %v845_v25, 4  ;;  %v987_v25 = vld [vmem:[#allocation2 + $0x58] sm:$0x1f] }
 0x252   : > { %2463 = vrot.lane.b32.xlu0 %v2246_v28, %s4636_s5  ;;  %v4136_v28 = vpop.f32.mrb[26].mxu0 }
 0x253   : > { %1382 = vrot.lane.b32.xlu1 %v1187_v40, %s4629_s17  ;;  %922 = vst.msk [vmem:[#allocation2 + $0xb0] sm:$0xf0] %vm900_vm6, %v877_v30  ;;  %v752_v48 = vadd.f32 %v4136_v28, %v5215_v34  ;;  %v743_v11 = vpop.f32.mrb[27].mxu0 }
 0x254   : > { %923 = vst.msk [vmem:[#allocation2 + $0xb8] sm:$0xf] %vm902_vm7, %v877_v30  ;;  %v744_v32 = vadd.f32 %v5215_v34, %v743_v11  ;;  %v4139_v6 = vpop.f32.mrb[28].mxu0 }
 0x255   : > { %v765_v9 = vadd.f32 %v4139_v6, %v5215_v34  ;;  %v756_v10 = vpop.f32.mrb[29].mxu0 }
 0x256   : > { %1923 = vrot.lane.b32.xlu0 %v1717_v42, %s4635_s16  ;;  %v795_v42 = vmul.f32 0.1, %v741_v26  ;;  %v796_v19 = vmul.f32 0.1, %v744_v32  ;;  %v757_v12 = vadd.f32 %v5215_v34, %v756_v10  ;;  %v4140_v13 = vpop.f32.mrb[30].mxu0 }
 0x257   : > { %1925 = vrot.lane.b32.xlu1 %v1729_v52, %s4635_s16  ;;  %v798_v52 = vmul.f32 0.1, %v752_v48  ;;  %v801_v20 = vmul.f32 0.1, %v765_v9 }
 0x258   : > { %v827_v56 = vmax.f32 %v741_v26, %v795_v42  ;;  %v799_v30 = vmul.f32 0.1, %v757_v12 }
 0x259   : > { %v830_v57 = vmax.f32 %v752_v48, %v798_v52  ;;  %v2024_v52 = vrot.slane %v5551_v47, 1 }
 0x25a   : > { %1380 = vrot.lane.b32.xlu0 %v1184_v60, %s4629_s17  ;;  %v828_v60 = vmax.f32 %v744_v32, %v796_v19  ;;  %v831_v48 = vmax.f32 %v757_v12, %v799_v30  ;;  %v5585_v12 = vld [vmem:[#allocation2 + $0x50] sm:$0xf0] }
 0x25b   : > { %2465 = vrot.lane.b32.xlu1 %v2258_v61, %s4636_s5  ;;  %v848_v39 = vpack.c.bf16 %v830_v57, %v829_v33  ;;  %v5553_v33 = vld [vmem:[#allocation2 + $0x58] sm:$0x1f] }
 0x25c   : > { %v847_v3 = vpack.c.bf16 %v828_v60, %v827_v56  ;;  %v1756_v56 = vshll.u32 %v5459_v8, 16  ;;  %v2022_v49 = vrot.slane %v5553_v33, 1  ;;  %v5566_v60 = vld [vmem:[#allocation2 + $0x60] sm:$0xf0] }
 0x25d   : > { %v880_v1 = vrot.slane %v848_v39, 4  ;;  %v5564_v39 = vld [vmem:[#allocation2 + $0x50] sm:$0xf0] }
 0x25e   : > { %1629 = vrot.lane.b32.xlu0 %v1008_v43, %s4631_s12  ;;  %v1483_v43 = vrot.slane %v5522_v41, 1  ;;  %v879_v55 = vrot.slane %v847_v3, 4 }
 0x25f   : > { %1631 = vrot.lane.b32.xlu1 %v5459_v8, %s4631_s12  ;;  %928 = vst.msk [vmem:[#allocation2 + $0xe0] sm:$0xf0] %vm900_vm6, %v880_v1 }
 0x260   : > { %v5467_v16 = vpop.permute.xlu0 %1613  ;;  %929 = vst.msk [vmem:[#allocation2 + $0xe8] sm:$0xf] %vm902_vm7, %v880_v1  ;;  %927 = vst.msk [vmem:[#allocation2 + $0xd8] sm:$0xf] %vm902_vm7, %v879_v55  ;;  %v1485_v24 = vsel %vm1464_vm4, %v1483_v43, %v1484_v5  ;;  %v1480_v43 = vrot.slane %v5564_v39, 1 }
 0x261   : > { %v5465_v59 = vpop.permute.xlu1 %1615  ;;  %926 = vst.msk [vmem:[#allocation2 + $0xd0] sm:$0xf0] %vm900_vm6, %v879_v55  ;;  %v5577_v55 = vrot.slane %v1756_v56, 1 }
 0x262   : > { %2171 = vrot.lane.b32.xlu0 %v5469_v22, %s4632_s14 }
 0x263   : > { %2461 = vrot.lane.b32.xlu1 %v2243_v23, %s4636_s5  ;;  %v768_v23 = vadd.f32 %v4140_v13, %v5215_v34 }
 0x264   : > { %v5480_v18 = vpop.permute.xlu0 %2155 }
 0x265   : > { %v5478_v29 = vpop.permute.xlu1 %2153  ;;  %v802_v36 = vmul.f32 0.1, %v768_v23 }
 0x266   : > { %1625 = vrot.lane.b32.xlu0 %v1006_v31, %s4631_s12  ;;  %v759_v31 = vpop.f32.mrb[31].mxu0 }
 0x267   : > { %1921 = vrot.lane.b32.xlu1 %v1714_v21, %s4635_s16  ;;  %v833_v21 = vmax.f32 %v765_v9, %v801_v20  ;;  %v760_v7 = vadd.f32 %v5215_v34, %v759_v31  ;;  %v834_v42 = vmax.f32 %v768_v23, %v802_v36  ;;  %v1760_v9 = vshrl.u32 %v5459_v8, 16  ;;  %v947_v20 = vld [vmem:[#allocation2 + $0x68] sm:$0xf] }
 0x268   : > { %v5492_v45 = vpop.permute.xlu0 %1609  ;;  %v2562_v8 = vrot.slane %v5585_v12, 1  ;;  %v1221_v23 = vshll.u32 %v5522_v41, 16 }
 0x269   : > { %v5490_v40 = vpop.permute.xlu1 %1611  ;;  %v800_v11 = vmul.f32 0.1, %v760_v7  ;;  %v850_v34 = vpack.c.bf16 %v834_v42, %v833_v21  ;;  %v1762_v44 = vor.u32 %v1760_v9, %v5577_v55  ;;  %v1226_v21 = vshll.u32 %v947_v20, 16  ;;  %v945_v42 = vld [vmem:[#allocation2 + $0x58] sm:$0xf] }
 0x26a   : > { %2167 = vrot.lane.b32.xlu0 %v5494_v27, %s4632_s14  ;;  %v2564_v36 = vsel %vm1464_vm4, %v2562_v8, %v2563_v37  ;;  %v1211_v56 = vshll.u32 %v945_v42, 16  ;;  %v1215_v9 = vshrl.u32 %v945_v42, 16 }
 0x26b   : > { %2169 = vrot.lane.b32.xlu1 %v1071_v46, %s4632_s14  ;;  %v1481_v46 = vrot.slane %v987_v25, 1  ;;  %v832_v32 = vmax.f32 %v760_v7, %v800_v11  ;;  %v882_v1 = vrot.slane %v850_v34, 4  ;;  %v2289_v25 = vshrl.u32 %v5469_v22, 16  ;;  %v4320_v22 = vld [vmem:[#allocation2 + $0x8] sm:$0xf] }
 0x26c   : > { %v5505_v54 = vpop.permute.xlu0 %2063  ;;  %v2270_v11 = vshll.u32 %v5494_v27, 16  ;;  %v2670_v33 = vsel %vm2665_vm9, %v4320_v22, %v5422_v38  ;;  %v2274_v38 = vshrl.u32 %v5494_v27, 16  ;;  %v1213_v8 = vrot.slane %v1211_v56, 1 }
 0x26d   : > { %v5503_v53 = vpop.permute.xlu1 %1523  ;;  %v849_v3 = vpack.c.bf16 %v832_v32, %v831_v48  ;;  %932 = vst.msk [vmem:[#allocation2 + $0x100] sm:$0xf0] %vm900_vm6, %v882_v1  ;;  %v1482_v13 = vsel %vm1464_vm4, %v1480_v43, %v1481_v46  ;;  %v1223_v48 = vrot.slane %v1221_v23, 1  ;;  %v1228_v32 = vrot.slane %v1226_v21, 1 }
 0x26e   : > { %2079 = vrot.lane.b32.xlu0 %v2025_v35, %s4633_s19  ;;  %933 = vst.msk [vmem:[#allocation2 + $0x108] sm:$0xf] %vm902_vm7, %v882_v1  ;;  %v2749_v43 = vsel %vm557_vm3, %v2670_v33, %v5452_v0  ;;  %v1206_v27 = vshll.u32 %v5564_v39, 16  ;;  %v1745_v21 = vshrl.u32 %v5508_v58, 16  ;;  %v1217_v42 = vor.u32 %v1215_v9, %v1213_v8 }
 0x26f   : > { %1627 = vrot.lane.b32.xlu1 %v5508_v58, %s4631_s12  ;;  %v881_v6 = vrot.slane %v849_v3, 4  ;;  %v2263_v9 = vshrl.u32 %v5585_v12, 16 }
 0x270   : > { %v5519_v62 = vpop.permute.xlu0 %2603 }
 0x271   : > { %v5517_v61 = vpop.permute.xlu1 %1519  ;;  %930 = vst.msk [vmem:[#allocation2 + $0xf0] sm:$0xf0] %vm900_vm6, %v881_v6 }
 0x272   : > { %2619 = vrot.lane.b32.xlu0 %v2566_v63, %s4634_s24  ;;  %931 = vst.msk [vmem:[#allocation2 + $0xf8] sm:$0xf] %vm902_vm7, %v881_v6  ;;  %v1741_v6 = vshll.u32 %v5508_v58, 16 }
 0x273   : > { %2165 = vrot.lane.b32.xlu1 %v1069_v4, %s4632_s14  ;;  %v2026_v4 = vsel %vm1464_vm4, %v2024_v52, %v2025_v35 }
 0x274   : > { %v5535_v15 = vpop.permute.xlu0 %1521 }
 0x275   : > { %v5533_v14 = vpop.permute.xlu1 %2061 }
 0x276   : > { %1537 = vrot.lane.b32.xlu0 %v1485_v24, %s4630_s27  ;;  %v5597_v24 = vrot.slane %v2285_v50, 1  ;;  %v2814_v50 = vsel %vm2810_vm10, %v2749_v43, %v5490_v40  ;;  %v5641_v40 = vrot.slane %v1741_v6, 1 }
 0x277   : > { %1539 = vrot.lane.b32.xlu1 %v1484_v5, %s4630_s27  ;;  %v2565_v5 = vrot.slane %v5566_v60, 1 }
 0x278   : > { %v5549_v28 = vpop.permute.xlu0 %2059 }
 0x279   : > { %v5547_v26 = vpop.permute.xlu1 %2601  ;;  %v2567_v17 = vsel %vm1464_vm4, %v2565_v5, %v2566_v63  ;;  %v5605_v63 = vld [vmem:[#allocation2 + $0x50] sm:$0xf0]  ;;  %v5624_v5 = vrot.slane %v2270_v11, 1  ;;  %v1204_v11 = vshrl.u32 %v5564_v39, 16 }
 0x27a   : > { %2615 = vrot.lane.b32.xlu0 %v2563_v37, %s4634_s24  ;;  %v2021_v7 = vrot.slane %v5605_v63, 1  ;;  %v2291_v37 = vor.u32 %v2289_v25, %v5597_v24 }
 0x27b   : > { %1535 = vrot.lane.b32.xlu1 %v1481_v46, %s4630_s27  ;;  %v1219_v46 = vshrl.u32 %v5522_v41, 16  ;;  %v1230_v41 = vshrl.u32 %v947_v20, 16 }
 0x27c   : > { %v5561_v19 = vpop.permute.xlu0 %1517  ;;  %v2023_v1 = vsel %vm1464_vm4, %v2021_v7, %v2022_v49  ;;  %v934_v7 = vld [vmem:[#allocation2] sm:$0xf8] }
 0x27d   : > { %v5559_v57 = vpop.permute.xlu1 %2057  ;;  %v1224_v3 = vor.u32 %v1223_v48, %v1219_v46  ;;  %v2668_v58 = vsel %vm2665_vm9, %v934_v7, %v5454_v2 }
 0x27e   : > { %2075 = vrot.lane.b32.xlu0 %v2022_v49, %s4633_s19  ;;  %v1749_v49 = vshrl.u32 %v5551_v47, 16  ;;  %v2747_v2 = vsel %vm557_vm3, %v2668_v58, %v5435_v51  ;;  %v1736_v51 = vshll.u32 %v5605_v63, 16 }
 0x27f   : > { %2077 = vrot.lane.b32.xlu1 %v2026_v4, %s4633_s19  ;;  %v1751_v4 = vshll.u32 %v5551_v47, 16  ;;  %v1229_v23 = vsel %vm1127_vm5, %v1224_v3, %v1228_v32  ;;  %v2812_v43 = vsel %vm2810_vm10, %v2747_v2, %v5492_v45  ;;  %v1053_v2 = vld [vmem:[#allocation2 + $0x88] sm:$0x1f] }
 0x280   : > { %v5583_v10 = vpop.permute.xlu0 %1919 }
 0x281   : > { %v5581_v35 = vpop.permute.xlu1 %1378  ;;  %v1753_v25 = vrot.slane %v1751_v4, 1  ;;  %v2265_v4 = vshll.u32 %v5585_v12, 16 }
 0x282   : > { %1533 = vrot.lane.b32.xlu0 %v1482_v13, %s4630_s27 }
 0x283   : > { %2617 = vrot.lane.b32.xlu1 %v2567_v17, %s4634_s24  ;;  %v1232_v17 = vor.u32 %v1230_v41, %v1228_v32  ;;  %v1754_v33 = vor.u32 %v1753_v25, %v1749_v49 }
 0x284   : > { %v5602_v31 = vpop.permute.xlu0 %2459 }
 0x285   : > { %v5600_v30 = vpop.permute.xlu1 %1374 }
 0x286   : > { %1935 = vrot.lane.b32.xlu0 %v1762_v44, %s4635_s16  ;;  %v2280_v44 = vshll.u32 %v5566_v60, 16 }
 0x287   : > { %2613 = vrot.lane.b32.xlu1 %v2564_v36, %s4634_s24  ;;  %v2276_v36 = vor.u32 %v2274_v38, %v5624_v5 }
 0x288   : > { %v5617_v34 = vpop.permute.xlu0 %1376  ;;  %v2282_v32 = vrot.slane %v2280_v44, 1  ;;  %v1734_v44 = vshrl.u32 %v5605_v63, 16 }
 0x289   : > { %v5615_v52 = vpop.permute.xlu1 %1917 }
 0x28a   : > { %2475 = vrot.lane.b32.xlu0 %v2291_v37, %s4636_s5  ;;  %v2278_v37 = vshrl.u32 %v5566_v60, 16  ;;  %v1759_v60 = vsel %vm1127_vm5, %v1754_v33, %v5577_v55 }
 0x28b   : > { %2073 = vrot.lane.b32.xlu1 %v2023_v1, %s4633_s19 }
 0x28c   : > { %v1916_v0 = vpop.permute.xlu0 %1915  ;;  %v2283_v3 = vor.u32 %v2282_v32, %v2278_v37 }
 0x28d   : > { %v2458_v13 = vpop.permute.xlu1 %2457  ;;  %v2879_v20 = vsel %vm2875_vm11, %v2814_v50, %v1916_v0  ;;  %v2267_v0 = vrot.slane %v2265_v4, 1  ;;  %v1075_v4 = vld [vmem:[#allocation2 + $0x80] sm:$0xf8] }
 0x28e   : > { %v2944_v47 = vsel %vm2940_vm12, %v2879_v20, %v5549_v28  ;;  %1392 = vrot.lane.b32.xlu0 %v1229_v23, %s4629_s17  ;;  %v1208_v28 = vrot.slane %v1206_v27, 1  ;;  %v2288_v50 = vsel %vm1127_vm5, %v2283_v3, %v5597_v24  ;;  %v1012_v20 = vld [vmem:[#allocation2 + $0x80] sm:$0xf8]  ;;  %v5694_v23 = vld [vmem:[#allocation2 + $0x88] sm:$0xf] }
 0x28f   : > { %1394 = vrot.lane.b32.xlu1 %v1232_v17, %s4629_s17  ;;  %v3009_v22 = vsel %vm3005_vm13, %v2944_v47, %v5480_v18  ;;  %v1747_v18 = vor.u32 %v1745_v21, %v5641_v40  ;;  %v2268_v25 = vor.u32 %v2267_v0, %v2263_v9  ;;  %v1738_v47 = vrot.slane %v1736_v51, 1  ;;  %v5727_v3 = vld [vmem:[#allocation2 + $0x78] sm:$0xf] }
 0x290   : > { %v5645_v46 = vpop.permute.xlu0 %1621  ;;  %v3074_v41 = vsel %vm3070_vm14, %v3009_v22, %v5602_v31  ;;  %v1209_v1 = vor.u32 %v1208_v28, %v1204_v11  ;;  %v5706_v22 = vld [vmem:[#allocation2 + $0x88] sm:$0xf]  ;;  %v5736_v9 = vld [vmem:[#allocation2 + $0x78] sm:$0xf] }
 0x291   : > { %v5647_v48 = vpop.permute.xlu1 %1372  ;;  %v3139_v31 = vsel %vm3135_vm15, %v3074_v41, %v5519_v62  ;;  %v1739_v63 = vor.u32 %v1738_v47, %v1734_v44  ;;  %v1786_v44 = vshll.u32 %v5694_v23, 16 }
 0x292   : > { %2471 = vrot.lane.b32.xlu0 %v2276_v36, %s4636_s5  ;;  %v1214_v55 = vsel %vm1127_vm5, %v1209_v1, %v1213_v8  ;;  %v3208_v45 = vshrl.u32 %v3139_v31, 16  ;;  %v3211_v17 = vshll.u32 %v3139_v31, 16  ;;  %v990_v31 = vld [vmem:[#allocation2 + $0x88] sm:$0x1f] }
 0x293   : > { %1390 = vrot.lane.b32.xlu1 %v1217_v42, %s4629_s17 }
 0x294   : > { %v5659_v56 = vpop.permute.xlu0 %2163  ;;  %v3210_v21 = vrot.slane %v3208_v45, 3  ;;  %v3213_v36 = vrot.slane %v3211_v17, 4  ;;  %v1073_v45 = vld [vmem:[#allocation2 + $0x70] sm:$0xf8]  ;;  %v1116_v17 = vld [vmem:[#allocation2 + $0x78] sm:$0x1f] }
 0x295   : > { %v5661_v39 = vpop.permute.xlu1 %1623 }
 0x296   : > { %1931 = vrot.lane.b32.xlu0 %v1747_v18, %s4635_s16  ;;  %v3214_v37 = vor.u32 %v3213_v36, %v3210_v21  ;;  %v1010_v18 = vld [vmem:[#allocation2 + $0x70] sm:$0xf8] }
 0x297   : > { %1933 = vrot.lane.b32.xlu1 %v1759_v60, %s4635_s16  ;;  %v5759_v36 = vld [vmem:[#allocation2 + $0x70] sm:$0xf0] }
 0x298   : > { %v5675_v38 = vpop.permute.xlu0 %1617 }
 0x299   : > { %v1914_v6 = vpop.permute.xlu1 %1913 }
 0x29a   : > { %v2877_v49 = vsel %vm2875_vm11, %v2812_v43, %v1914_v6  ;;  %1388 = vrot.lane.b32.xlu0 %v1214_v55, %s4629_s17  ;;  %v2031_v6 = vrot.slane %v1053_v2, 1  ;;  %v974_v55 = vld [vmem:[#allocation2 + $0x80] sm:$0xf0]  ;;  %v951_v2 = vld [vmem:[#allocation2 + $0x88] sm:$0xf] }
 0x29b   : > { %v2942_v62 = vsel %vm2940_vm12, %v2877_v49, %v5559_v57  ;;  %2473 = vrot.lane.b32.xlu1 %v2288_v50, %s4636_s5  ;;  %v1489_v49 = vrot.slane %v974_v55, 1  ;;  %v1490_v50 = vrot.slane %v990_v31, 1 }
 0x29c   : > { %v3007_v12 = vsel %vm3005_vm13, %v2942_v62, %v5478_v29  ;;  %v5690_v27 = vpop.permute.xlu0 %2159 }
 0x29d   : > { %v3072_v8 = vsel %vm3070_vm14, %v3007_v12, %v2458_v13  ;;  %v5692_v24 = vpop.permute.xlu1 %2161  ;;  %v1491_v62 = vsel %vm1464_vm4, %v1489_v49, %v1490_v50 }
 0x29e   : > { %v3137_v57 = vsel %vm3135_vm15, %v3072_v8, %v5547_v26  ;;  %1637 = vrot.lane.b32.xlu0 %v1012_v20, %s4631_s12  ;;  %v2273_v26 = vsel %vm1127_vm5, %v2268_v25, %v5624_v5  ;;  %v1744_v5 = vsel %vm1127_vm5, %v1739_v63, %v5641_v40  ;;  %v2569_v20 = vrot.slane %v1116_v17, 1  ;;  %v1052_v25 = vld [vmem:[#allocation2 + $0x78] sm:$0x1f] }
 0x29f   : > { %1639 = vrot.lane.b32.xlu1 %v5694_v23, %s4631_s12  ;;  %v3201_v29 = vshrl.u32 %v3137_v57, 16  ;;  %v3204_v13 = vshll.u32 %v3137_v57, 16  ;;  %v989_v57 = vld [vmem:[#allocation2 + $0x78] sm:$0x1f]  ;;  %v1251_v63 = vshll.u32 %v974_v55, 16 }
 0x2a0   : > { %v5702_v7 = vpop.permute.xlu0 %2071  ;;  %v1487_v21 = vrot.slane %v989_v57, 1 }
 0x2a1   : > { %v5704_v42 = vpop.permute.xlu1 %1619  ;;  %v3203_v11 = vrot.slane %v3201_v29, 3  ;;  %v3206_v28 = vrot.slane %v3204_v13, 4  ;;  %v2028_v13 = vrot.slane %v1052_v25, 1  ;;  %v2300_v25 = vshll.u32 %v5727_v3, 16 }
 0x2a2   : > { %2179 = vrot.lane.b32.xlu0 %v5706_v22, %s4632_s14 }
 0x2a3   : > { %2469 = vrot.lane.b32.xlu1 %v2273_v26, %s4636_s5  ;;  %v3207_v33 = vor.u32 %v3206_v28, %v3203_v11  ;;  %v5761_v11 = vld [vmem:[#allocation2 + $0x80] sm:$0xf0]  ;;  %v1486_v28 = vrot.slane %v5759_v36, 1 }
 0x2a4   : > { %v5713_v32 = vpop.permute.xlu0 %2611  ;;  %v2030_v26 = vrot.slane %v5761_v11, 1 }
 0x2a5   : > { %v5715_v58 = vpop.permute.xlu1 %2157  ;;  %v3215_v41 = vsel %vm3200_vm0, %v3207_v33, %v3214_v37  ;;  %v5767_v33 = vld [vmem:[#allocation2 + $0x70] sm:$0xf0]  ;;  %v5769_v37 = vrot.slane %v1786_v44, 1  ;;  %v1488_v31 = vsel %vm1464_vm4, %v1486_v28, %v1487_v21 }
 0x2a6   : > { %4145 = vmatprep.mubr.msk.bf16.mxu1 %vm3460_vm1, %v3215_v41  ;;  %1633 = vrot.lane.b32.xlu0 %v1010_v18, %s4631_s12  ;;  %v1790_v41 = vshrl.u32 %v5694_v23, 16  ;;  %v2032_v49 = vsel %vm1464_vm4, %v2030_v26, %v2031_v6  ;;  %v1256_v23 = vshll.u32 %v951_v2, 16 }
 0x2a7   : > { %1929 = vrot.lane.b32.xlu1 %v1744_v5, %s4635_s16 }
 0x2a8   : > { %v5723_v1 = vpop.permute.xlu0 %1529  ;;  %v1792_v57 = vor.u32 %v1790_v41, %v5769_v37  ;;  %v1771_v41 = vshll.u32 %v5736_v9, 16 }
 0x2a9   : > { %7093 = vst [vmem:[#allocation28_spill] sm:$0xff] %v5723_v1  ;;  %v5725_v60 = vpop.permute.xlu1 %1531  ;;  %v1781_v1 = vshll.u32 %v5761_v11, 16 }
 0x2aa   : > { %2175 = vrot.lane.b32.xlu0 %v5727_v3, %s4632_s14 }
 0x2ab   : > { %2177 = vrot.lane.b32.xlu1 %v1075_v4, %s4632_s14  ;;  %v2568_v4 = vrot.slane %v5767_v33, 1 }
 0x2ac   : > { %v5732_v43 = vpop.permute.xlu0 %2607 }
 0x2ad   : > { %v5734_v40 = vpop.permute.xlu1 %1527 }
 0x2ae   : > { %2087 = vrot.lane.b32.xlu0 %v2031_v6, %s4633_s19  ;;  %v5789_v6 = vld [vmem:[#allocation2 + $0x70] sm:$0xf0] }
 0x2af   : > { %1635 = vrot.lane.b32.xlu1 %v5736_v9, %s4631_s12  ;;  %v2027_v26 = vrot.slane %v5789_v6, 1 }
 0x2b0   : > { %v5741_v0 = vpop.permute.xlu0 %2067 }
 0x2b1   : > { %v5743_v51 = vpop.permute.xlu1 %2069 }
 0x2b2   : > { %7094 = vst [vmem:[#allocation29_spill] sm:$0xff] %v5743_v51  ;;  %1545 = vrot.lane.b32.xlu0 %v1491_v62, %s4630_s27  ;;  %v1253_v62 = vrot.slane %v1251_v63, 1  ;;  %v949_v63 = vld [vmem:[#allocation2 + $0x78] sm:$0xf]  ;;  %v5811_v51 = vrot.slane %v1771_v41, 1 }
 0x2b3   : > { %2173 = vrot.lane.b32.xlu1 %v1073_v45, %s4632_s14  ;;  %v4321_v45 = vld [vmem:[#allocation2 + $0x18] sm:$0xf] }
 0x2b4   : > { %v5748_v12 = vpop.permute.xlu0 %1525  ;;  %v2675_v17 = vsel %vm2665_vm9, %v4321_v45, %v5600_v30  ;;  %v2570_v30 = vsel %vm1464_vm4, %v2568_v4, %v2569_v20  ;;  %v1258_v45 = vrot.slane %v1256_v23, 1  ;;  %v1260_v4 = vshrl.u32 %v951_v2, 16 }
 0x2b5   : > { %v5750_v8 = vpop.permute.xlu1 %2609 }
 0x2b6   : > { %2623 = vrot.lane.b32.xlu0 %v2569_v20, %s4634_s24 }
 0x2b7   : > { %1547 = vrot.lane.b32.xlu1 %v1490_v50, %s4630_s27  ;;  %v1249_v50 = vshrl.u32 %v974_v55, 16  ;;  %v2753_v55 = vsel %vm557_vm3, %v2675_v17, %v5517_v61 }
 0x2b8   : > { %v5755_v47 = vpop.permute.xlu0 %1927  ;;  %v2818_v61 = vsel %vm2810_vm10, %v2753_v55, %v5465_v59  ;;  %v1775_v59 = vshrl.u32 %v5736_v9, 16 }
 0x2b9   : > { %v5757_v29 = vpop.permute.xlu1 %2605  ;;  %v1254_v28 = vor.u32 %v1253_v62, %v1249_v50  ;;  %v1241_v50 = vshll.u32 %v949_v63, 16  ;;  %v1236_v62 = vshll.u32 %v5759_v36, 16  ;;  %v2883_v55 = vsel %vm2875_vm11, %v2818_v61, %v5583_v10 }
 0x2ba   : > { %2083 = vrot.lane.b32.xlu0 %v2028_v13, %s4633_s19 }
 0x2bb   : > { %1543 = vrot.lane.b32.xlu1 %v1487_v21, %s4630_s27  ;;  %v1243_v9 = vrot.slane %v1241_v50, 1  ;;  %v1764_v50 = vshrl.u32 %v5789_v6, 16 }
 0x2bc   : > { %v5772_v18 = vpop.permute.xlu0 %2467 }
 0x2bd   : > { %v5774_v5 = vpop.permute.xlu1 %2065 }
 0x2be   : > { %1541 = vrot.lane.b32.xlu0 %v1488_v31, %s4630_s27  ;;  %v5795_v31 = vrot.slane %v2300_v25, 1  ;;  %v1259_v25 = vsel %vm1127_vm5, %v1254_v28, %v1258_v45  ;;  %v1245_v28 = vshrl.u32 %v949_v63, 16 }
 0x2bf   : > { %2085 = vrot.lane.b32.xlu1 %v2032_v49, %s4633_s19  ;;  %v2304_v49 = vshrl.u32 %v5727_v3, 16  ;;  %v2029_v3 = vsel %vm1464_vm4, %v2027_v26, %v2028_v13 }
 0x2c0   : > { %v5785_v44 = vpop.permute.xlu0 %1384 }
 0x2c1   : > { %7095 = vst [vmem:[#allocation30_spill] sm:$0xff] %v5785_v44  ;;  %v5787_v21 = vpop.permute.xlu1 %1386  ;;  %v2306_v2 = vor.u32 %v2304_v49, %v5795_v31  ;;  %v1238_v44 = vrot.slane %v1236_v62, 1 }
 0x2c2   : > { %1943 = vrot.lane.b32.xlu0 %v1792_v57, %s4635_s16  ;;  %v4322_v57 = vld [vmem:[#allocation2 + $0x28] sm:$0xf] }
 0x2c3   : > { %2621 = vrot.lane.b32.xlu1 %v2570_v30, %s4634_s24  ;;  %v2680_v23 = vsel %vm2665_vm9, %v4322_v57, %v5581_v35  ;;  %v936_v30 = vld [vmem:[#allocation2 + $0x10] sm:$0xf8]  ;;  %v1234_v35 = vshrl.u32 %v5759_v36, 16  ;;  %v1262_v57 = vor.u32 %v1260_v4, %v1258_v45  ;;  %v2948_v36 = vsel %vm2940_vm12, %v2883_v55, %v5505_v54 }
 0x2c4   : > { %v2464_v17 = vpop.permute.xlu0 %2463  ;;  %v2673_v13 = vsel %vm2665_vm9, %v936_v30, %v5647_v48  ;;  %v2757_v49 = vsel %vm557_vm3, %v2680_v23, %v5503_v53  ;;  %v2295_v48 = vshll.u32 %v5767_v33, 16  ;;  %v1766_v30 = vshll.u32 %v5789_v6, 16 }
 0x2c5   : > { %v5803_v20 = vpop.permute.xlu1 %1382  ;;  %v2751_v10 = vsel %vm557_vm3, %v2673_v13, %v5561_v19  ;;  %v2822_v63 = vsel %vm2810_vm10, %v2757_v49, %v5704_v42  ;;  %v3013_v53 = vsel %vm3005_vm13, %v2948_v36, %v5690_v27  ;;  %v2293_v45 = vshrl.u32 %v5767_v33, 16  ;;  %v5885_v36 = vld [vmem:[#allocation2 + $0x90] sm:$0xf0] }
 0x2c6   : > { %1400 = vrot.lane.b32.xlu0 %v1259_v25, %s4629_s17  ;;  %v1779_v25 = vshrl.u32 %v5761_v11, 16  ;;  %v1777_v11 = vor.u32 %v1775_v59, %v5811_v51  ;;  %v3078_v19 = vsel %vm3070_vm14, %v3013_v53, %v2464_v17  ;;  %v1247_v42 = vor.u32 %v1245_v28, %v1243_v9  ;;  %v5856_v17 = vld [vmem:[#allocation2 + $0xa0] sm:$0xf0] }
 0x2c7   : > { %2081 = vrot.lane.b32.xlu1 %v2029_v3, %s4633_s19  ;;  %v1783_v3 = vrot.slane %v1781_v1, 1  ;;  %v1239_v4 = vor.u32 %v1238_v44, %v1234_v35  ;;  %v2816_v62 = vsel %vm2810_vm10, %v2751_v10, %v5467_v16  ;;  %v2297_v23 = vrot.slane %v2295_v48, 1  ;;  %v5858_v44 = vld [vmem:[#allocation2 + $0xa8] sm:$0x1f] }
 0x2c8   : > { %v1924_v26 = vpop.permute.xlu0 %1923  ;;  %v3143_v33 = vsel %vm3135_vm15, %v3078_v19, %v5732_v43  ;;  %v2881_v16 = vsel %vm2875_vm11, %v2816_v62, %v5615_v52  ;;  %v1495_v52 = vrot.slane %v5856_v17, 1 }
 0x2c9   : > { %v5822_v41 = vpop.permute.xlu1 %1925  ;;  %v2887_v1 = vsel %vm2875_vm11, %v2822_v63, %v1924_v26  ;;  %v1784_v27 = vor.u32 %v1783_v3, %v1779_v25  ;;  %v2298_v43 = vor.u32 %v2297_v23, %v2293_v45  ;;  %v938_v26 = vld [vmem:[#allocation2 + $0x20] sm:$0xf8]  ;;  %v1496_v25 = vrot.slane %v5858_v44, 1 }
 0x2ca   : > { %2479 = vrot.lane.b32.xlu0 %v2306_v2, %s4636_s5  ;;  %v1768_v2 = vrot.slane %v1766_v30, 1  ;;  %v2952_v59 = vsel %vm2940_vm12, %v2887_v1, %v5741_v0  ;;  %v1244_v0 = vsel %vm1127_vm5, %v1239_v4, %v1243_v9  ;;  %v2678_v9 = vsel %vm2665_vm9, %v938_v26, %v5617_v34  ;;  %v5893_v1 = vld [vmem:[#allocation2 + $0x98] sm:$0x1f] }
 0x2cb   : > { %1402 = vrot.lane.b32.xlu1 %v1262_v57, %s4629_s17  ;;  %v3017_v55 = vsel %vm3005_vm13, %v2952_v59, %v5659_v56  ;;  %v1789_v28 = vsel %vm1127_vm5, %v1784_v27, %v5769_v37  ;;  %v3223_v57 = vshrl.u32 %v3143_v33, 16  ;;  %v2946_v56 = vsel %vm2940_vm12, %v2881_v16, %v5533_v14  ;;  %v1014_v37 = vld [vmem:[#allocation2 + $0x90] sm:$0xf8]  ;;  %v5912_v27 = vld [vmem:[#allocation2 + $0xa8] sm:$0xf] }
 0x2cc   : > { %v5843_v61 = vpop.permute.xlu0 %1380  ;;  %v1769_v35 = vor.u32 %v1768_v2, %v1764_v50  ;;  %v3226_v49 = vshll.u32 %v3143_v33, 16  ;;  %v3011_v3 = vsel %vm3005_vm13, %v2946_v56, %v5715_v58  ;;  %v3082_v48 = vsel %vm3070_vm14, %v3017_v55, %v5772_v18  ;;  %v953_v56 = vld [vmem:[#allocation2 + $0x98] sm:$0xf] }
 0x2cd   : > { %v5845_v54 = vpop.permute.xlu1 %2465  ;;  %v1281_v63 = vshll.u32 %v5856_v17, 16  ;;  %v2303_v14 = vsel %vm1127_vm5, %v2298_v43, %v5795_v31  ;;  %v1492_v58 = vrot.slane %v5885_v36, 1  ;;  %v2755_v18 = vsel %vm557_vm3, %v2678_v9, %v5535_v15 }
 0x2ce   : > { %1939 = vrot.lane.b32.xlu0 %v1777_v11, %s4635_s16  ;;  %v1774_v53 = vsel %vm1127_vm5, %v1769_v35, %v5811_v51  ;;  %v3225_v11 = vrot.slane %v3223_v57, 3  ;;  %v1497_v31 = vsel %vm1464_vm4, %v1495_v52, %v1496_v25  ;;  %v3228_v51 = vrot.slane %v3226_v49, 4 }
 0x2cf   : > { %1398 = vrot.lane.b32.xlu1 %v1247_v42, %s4629_s17  ;;  %v3147_v19 = vsel %vm3135_vm15, %v3082_v48, %v5713_v32  ;;  %v2820_v15 = vsel %vm2810_vm10, %v2755_v18, %v5675_v38  ;;  %v1493_v62 = vrot.slane %v5893_v1, 1  ;;  %v1279_v23 = vshrl.u32 %v5856_v17, 16 }
 0x2d0   : > { %v5862_v6 = vpop.permute.xlu0 %1629  ;;  %v1283_v2 = vrot.slane %v1281_v63, 1  ;;  %v1266_v32 = vshll.u32 %v5885_v36, 16  ;;  %v3238_v38 = vshrl.u32 %v3147_v19, 16  ;;  %v3241_v55 = vshll.u32 %v3147_v19, 16 }
 0x2d1   : > { %v5864_v13 = vpop.permute.xlu1 %1631  ;;  %v1286_v35 = vshll.u32 %v5912_v27, 16 }
 0x2d2   : > { %1396 = vrot.lane.b32.xlu0 %v1244_v0, %s4629_s17  ;;  %v1284_v9 = vor.u32 %v1283_v2, %v1279_v23  ;;  %v1268_v48 = vrot.slane %v1266_v32, 1  ;;  %v3240_v63 = vrot.slane %v3238_v38, 3 }
 0x2d3   : > { %1941 = vrot.lane.b32.xlu1 %v1789_v28, %s4635_s16  ;;  %v3229_v28 = vor.u32 %v3228_v51, %v3225_v11  ;;  %v994_v11 = vld [vmem:[#allocation2 + $0xc8] sm:$0x1f] }
 0x2d4   : > { %v5883_v30 = vpop.permute.xlu0 %2171 }
 0x2d5   : > { %v2462_v10 = vpop.permute.xlu1 %2461 }
 0x2d6   : > { %v3076_v34 = vsel %vm3070_vm14, %v3011_v3, %v2462_v10  ;;  %1641 = vrot.lane.b32.xlu0 %v1014_v37, %s4631_s12  ;;  %v1077_v37 = vld [vmem:[#allocation2 + $0x90] sm:$0xf8] }
 0x2d7   : > { %v3141_v45 = vsel %vm3135_vm15, %v3076_v34, %v5757_v29  ;;  %2477 = vrot.lane.b32.xlu1 %v2303_v14, %s4636_s5  ;;  %v3243_v34 = vrot.slane %v3241_v55, 4  ;;  %v1288_v14 = vrot.slane %v1286_v35, 1 }
 0x2d8   : > { %v3216_v42 = vshrl.u32 %v3141_v45, 16  ;;  %v3219_v4 = vshll.u32 %v3141_v45, 16  ;;  %v5909_v50 = vpop.permute.xlu0 %1625 }
 0x2d9   : > { %v1922_v29 = vpop.permute.xlu1 %1921  ;;  %v1289_v45 = vsel %vm1127_vm5, %v1284_v9, %v1288_v14  ;;  %v3244_v19 = vor.u32 %v3243_v34, %v3240_v63 }
 0x2da   : > { %v3218_v59 = vrot.slane %v3216_v42, 3  ;;  %v3221_v33 = vrot.slane %v3219_v4, 4  ;;  %v2885_v16 = vsel %vm2875_vm11, %v2820_v15, %v1922_v29  ;;  %1553 = vrot.lane.b32.xlu0 %v1497_v31, %s4630_s27  ;;  %v1502_v15 = vrot.slane %v994_v11, 1 }
 0x2db   : > { %v2950_v0 = vsel %vm2940_vm12, %v2885_v16, %v5774_v5  ;;  %1937 = vrot.lane.b32.xlu1 %v1774_v53, %s4635_s16  ;;  %v1494_v5 = vsel %vm1464_vm4, %v1492_v58, %v1493_v62  ;;  %v1271_v53 = vshll.u32 %v953_v56, 16 }
 0x2dc   : > { %v3222_v43 = vor.u32 %v3221_v33, %v3218_v59  ;;  %v3015_v17 = vsel %vm3005_vm13, %v2950_v0, %v5692_v24  ;;  %v5926_v57 = vpop.permute.xlu0 %2167  ;;  %v1264_v24 = vshrl.u32 %v5885_v36, 16  ;;  %v978_v36 = vld [vmem:[#allocation2 + $0xc0] sm:$0xf0]  ;;  %v1290_v59 = vshrl.u32 %v5912_v27, 16  ;;  %v993_v33 = vld [vmem:[#allocation2 + $0xb8] sm:$0x1f] }
 0x2dd   : > { %v3080_v26 = vsel %vm3070_vm14, %v3015_v17, %v5845_v54  ;;  %v5928_v52 = vpop.permute.xlu1 %2169  ;;  %v1273_v42 = vrot.slane %v1271_v53, 1  ;;  %v1501_v4 = vrot.slane %v978_v36, 1  ;;  %v1311_v44 = vshll.u32 %v978_v36, 16  ;;  %v959_v17 = vld [vmem:[#allocation2 + $0xc8] sm:$0xf] }
 0x2de   : > { %v3145_v49 = vsel %vm3135_vm15, %v3080_v26, %v5750_v8  ;;  %v3230_v3 = vsel %vm3200_vm0, %v3222_v43, %v3229_v28  ;;  %1549 = vrot.lane.b32.xlu0 %v1494_v5, %s4630_s27  ;;  %v1269_v31 = vor.u32 %v1268_v48, %v1264_v24  ;;  %v1499_v38 = vrot.slane %v993_v33, 1  ;;  %v957_v24 = vld [vmem:[#allocation2 + $0xb8] sm:$0xf]  ;;  %v980_v53 = vld [vmem:[#allocation2 + $0xe0] sm:$0xf0] }
 0x2df   : > { %2181 = vrot.lane.b32.xlu1 %v1077_v37, %s4632_s14  ;;  %v3231_v54 = vshrl.u32 %v3145_v49, 16  ;;  %v3234_v10 = vshll.u32 %v3145_v49, 16  ;;  %4146 = vmatmul.mubr.msk.bf16.vlgmr.msra.gmra.mrb[0].mxu1 %vm3460_vm1, %v3230_v3  ;;  %v1503_v32 = vsel %vm1464_vm4, %v1501_v4, %v1502_v15  ;;  %v1292_v27 = vor.u32 %v1290_v59, %v1288_v14  ;;  %v995_v4 = vld [vmem:[#allocation2 + $0xd8] sm:$0x1f]  ;;  %v979_v33 = vld [vmem:[#allocation2 + $0xd0] sm:$0xf0] }
 0x2e0   : > { %v5938_v1 = vpop.permute.xlu0 %2079  ;;  %v1274_v16 = vsel %vm1127_vm5, %v1269_v31, %v1273_v42  ;;  %v1275_v43 = vshrl.u32 %v953_v56, 16  ;;  %v1309_v35 = vshrl.u32 %v978_v36, 16  ;;  %v1313_v26 = vrot.slane %v1311_v44, 1 }
 0x2e1   : > { %v5940_v8 = vpop.permute.xlu1 %1627  ;;  %v3233_v58 = vrot.slane %v3231_v54, 3  ;;  %v3236_v18 = vrot.slane %v3234_v10, 4  ;;  %v1316_v9 = vshll.u32 %v959_v17, 16  ;;  %v1301_v63 = vshll.u32 %v957_v24, 16 }
 0x2e2   : > { %1408 = vrot.lane.b32.xlu0 %v1289_v45, %s4629_s17  ;;  %v1277_v3 = vor.u32 %v1275_v43, %v1273_v42  ;;  %v1314_v48 = vor.u32 %v1313_v26, %v1309_v35  ;;  %v1507_v45 = vrot.slane %v980_v53, 1  ;;  %v1320_v42 = vshrl.u32 %v959_v17, 16  ;;  %v963_v43 = vld [vmem:[#allocation2 + $0xe8] sm:$0xf] }
 0x2e3   : > { %1555 = vrot.lane.b32.xlu1 %v1496_v25, %s4630_s27  ;;  %v3237_v51 = vor.u32 %v3236_v18, %v3233_v58  ;;  %v977_v25 = vld [vmem:[#allocation2 + $0xb0] sm:$0xf0]  ;;  %v1318_v10 = vrot.slane %v1316_v9, 1  ;;  %v996_v58 = vld [vmem:[#allocation2 + $0xe8] sm:$0x1f]  ;;  %v1303_v11 = vrot.slane %v1301_v63, 1 }
 0x2e4   : > { %v5947_v29 = vpop.permute.xlu0 %2619  ;;  %v1498_v0 = vrot.slane %v977_v25, 1  ;;  %v1296_v5 = vshll.u32 %v977_v25, 16  ;;  %v1294_v54 = vshrl.u32 %v977_v25, 16  ;;  %v1508_v31 = vrot.slane %v996_v58, 1  ;;  %v4323_v63 = vld [vmem:[#allocation2 + $0x38] sm:$0xf] }
 0x2e5   : > { %v5949_v23 = vpop.permute.xlu1 %2165  ;;  %v3245_v2 = vsel %vm3200_vm0, %v3237_v51, %v3244_v19  ;;  %v1319_v18 = vsel %vm1127_vm5, %v1314_v48, %v1318_v10  ;;  %v1341_v59 = vshll.u32 %v980_v53, 16  ;;  %v1505_v44 = vrot.slane %v995_v4, 1  ;;  %v961_v48 = vld [vmem:[#allocation2 + $0xd8] sm:$0xf] }
 0x2e6   : > { %4149 = vmatprep.mubr.msk.bf16.mxu1 %vm3460_vm1, %v3245_v2  ;;  %1404 = vrot.lane.b32.xlu0 %v1274_v16, %s4629_s17  ;;  %v1298_v56 = vrot.slane %v1296_v5, 1  ;;  %v1509_v16 = vsel %vm1464_vm4, %v1507_v45, %v1508_v31  ;;  %v1339_v17 = vshrl.u32 %v980_v53, 16  ;;  %v1326_v26 = vshll.u32 %v979_v33, 16  ;;  %v6007_v4 = vld [vmem:[#allocation2 + $0xf8] sm:$0xf] }
 0x2e7   : > { %1551 = vrot.lane.b32.xlu1 %v1493_v62, %s4630_s27  ;;  %v1500_v62 = vsel %vm1464_vm4, %v1498_v0, %v1499_v38  ;;  %v1322_v0 = vor.u32 %v1320_v42, %v1318_v10  ;;  %v1343_v35 = vrot.slane %v1341_v59, 1  ;;  %v1346_v5 = vshll.u32 %v963_v43, 16 }
 0x2e8   : > { %v5958_v55 = vpop.permute.xlu0 %1537  ;;  %v1299_v36 = vor.u32 %v1298_v56, %v1294_v54  ;;  %v981_v54 = vld [vmem:[#allocation2 + $0xf0] sm:$0xf0]  ;;  %v1328_v10 = vrot.slane %v1326_v26, 1  ;;  %v2685_v53 = vsel %vm2665_vm9, %v4323_v63, %v5803_v20  ;;  %v6030_v63 = vld [vmem:[#allocation2 + $0x80] sm:$0xf0] }
 0x2e9   : > { %v5960_v28 = vpop.permute.xlu1 %1539  ;;  %v1344_v56 = vor.u32 %v1343_v35, %v1339_v17  ;;  %v1348_v58 = vrot.slane %v1346_v5, 1  ;;  %v1356_v45 = vshll.u32 %v981_v54, 16  ;;  %v1361_v17 = vshll.u32 %v6007_v4, 16 }
 0x2ea   : > { %1561 = vrot.lane.b32.xlu0 %v1503_v32, %s4630_s27  ;;  %v1304_v2 = vsel %vm1127_vm5, %v1299_v36, %v1303_v11  ;;  %v6001_v36 = vld [vmem:[#allocation2 + $0xf8] sm:$0x1f] }
 0x2eb   : > { %1410 = vrot.lane.b32.xlu1 %v1292_v27, %s4629_s17  ;;  %v1305_v27 = vshrl.u32 %v957_v24, 16  ;;  %v1324_v24 = vshrl.u32 %v979_v33, 16  ;;  %v1349_v20 = vsel %vm1127_vm5, %v1344_v56, %v1348_v58  ;;  %v940_v56 = vld [vmem:[#allocation2 + $0x30] sm:$0xf8] }
 0x2ec   : > { %v5965_v49 = vpop.permute.xlu0 %2615 }
 0x2ed   : > { %v5967_v37 = vpop.permute.xlu1 %1535  ;;  %v1329_v59 = vor.u32 %v1328_v10, %v1324_v24  ;;  %v1363_v10 = vrot.slane %v1361_v17, 1 }
 0x2ee   : > { %1557 = vrot.lane.b32.xlu0 %v1500_v62, %s4630_s27 }
 0x2ef   : > { %1406 = vrot.lane.b32.xlu1 %v1277_v3, %s4629_s17  ;;  %v1307_v3 = vor.u32 %v1305_v27, %v1303_v11  ;;  %v1358_v27 = vrot.slane %v1356_v45, 1  ;;  %v2315_v45 = vshll.u32 %v5706_v22, 16 }
 0x2f0   : > { %v5971_v34 = vpop.permute.xlu0 %2075 }
 0x2f1   : > { %v5973_v14 = vpop.permute.xlu1 %2077  ;;  %v2317_v17 = vrot.slane %v2315_v45, 1 }
 0x2f2   : > { %1416 = vrot.lane.b32.xlu0 %v1319_v18, %s4629_s17  ;;  %v1331_v18 = vshll.u32 %v961_v48, 16 }
 0x2f3   : > { %1563 = vrot.lane.b32.xlu1 %v1502_v15, %s4630_s27  ;;  %v1504_v15 = vrot.slane %v979_v33, 1  ;;  %v1510_v33 = vrot.slane %v981_v54, 1 }
 0x2f4   : > { %v5978_v51 = vpop.permute.xlu0 %1533 }
 0x2f5   : > { %v5980_v19 = vpop.permute.xlu1 %2617 }
 0x2f6   : > { %1412 = vrot.lane.b32.xlu0 %v1304_v2, %s4629_s17  ;;  %v2761_v2 = vsel %vm557_vm3, %v2685_v53, %v5734_v40 }
 0x2f7   : > { %1559 = vrot.lane.b32.xlu1 %v1499_v38, %s4630_s27  ;;  %v1506_v38 = vsel %vm1464_vm4, %v1504_v15, %v1505_v44  ;;  %v1333_v15 = vrot.slane %v1331_v18, 1  ;;  %v2826_v35 = vsel %vm2810_vm10, %v2761_v2, %v5661_v39  ;;  %v2683_v39 = vsel %vm2665_vm9, %v940_v56, %v5843_v61 }
 0x2f8   : > { %v5986_v25 = vpop.permute.xlu0 %1935  ;;  %v2891_v24 = vsel %vm2875_vm11, %v2826_v35, %v5755_v47  ;;  %v2759_v61 = vsel %vm557_vm3, %v2683_v39, %v5748_v12  ;;  %v2308_v35 = vshrl.u32 %v6030_v63, 16  ;;  %v942_v39 = vld [vmem:[#allocation2 + $0x40] sm:$0xf8] }
 0x2f9   : > { %v5988_v32 = vpop.permute.xlu1 %2613  ;;  %v1334_v5 = vsel %vm1127_vm5, %v1329_v59, %v1333_v15  ;;  %v2956_v47 = vsel %vm2940_vm12, %v2891_v24, %v5702_v7 }
 0x2fa   : > { %1569 = vrot.lane.b32.xlu0 %v1509_v16, %s4630_s27  ;;  %v1511_v16 = vrot.slane %v6001_v36, 1  ;;  %v1335_v36 = vshrl.u32 %v961_v48, 16  ;;  %v2310_v48 = vshll.u32 %v6030_v63, 16 }
 0x2fb   : > { %1418 = vrot.lane.b32.xlu1 %v1322_v0, %s4629_s17  ;;  %v1354_v0 = vshrl.u32 %v981_v54, 16 }
 0x2fc   : > { %v5993_v62 = vpop.permute.xlu0 %2475  ;;  %v1512_v54 = vsel %vm1464_vm4, %v1510_v33, %v1511_v16  ;;  %v1078_v33 = vld [vmem:[#allocation2 + $0x98] sm:$0xf] }
 0x2fd   : > { %v5995_v9 = vpop.permute.xlu1 %2073 }
 0x2fe   : > { %1565 = vrot.lane.b32.xlu0 %v1506_v38, %s4630_s27  ;;  %v1350_v38 = vshrl.u32 %v963_v43, 16  ;;  %v1359_v43 = vor.u32 %v1358_v27, %v1354_v0  ;;  %v2319_v0 = vshrl.u32 %v5706_v22, 16  ;;  %v2824_v27 = vsel %vm2810_vm10, %v2759_v61, %v5645_v46 }
 0x2ff   : > { %1414 = vrot.lane.b32.xlu1 %v1307_v3, %s4629_s17  ;;  %v4324_v3 = vld [vmem:[#allocation2 + $0x48] sm:$0xf]  ;;  %v2330_v22 = vshll.u32 %v1078_v33, 16  ;;  %v2889_v46 = vsel %vm2875_vm11, %v2824_v27, %v5822_v41  ;;  %v7096_v41 = vld [vmem:[#allocation30_spill] sm:$0xff] }
 0x300   : > { %v6003_v42 = vpop.permute.xlu0 %1392 }
 0x301   : > { %v6005_v11 = vpop.permute.xlu1 %1394 }
 0x302   : > { %1424 = vrot.lane.b32.xlu0 %v1349_v20, %s4629_s17  ;;  %v1364_v20 = vsel %vm1127_vm5, %v1359_v43, %v1363_v10  ;;  %v2688_v43 = vsel %vm2665_vm9, %v942_v39, %v7096_v41 }
 0x303   : > { %1571 = vrot.lane.b32.xlu1 %v1508_v31, %s4630_s27  ;;  %v2690_v31 = vsel %vm2665_vm9, %v4324_v3, %v5787_v21  ;;  %v1352_v21 = vor.u32 %v1350_v38, %v1348_v58  ;;  %v3021_v58 = vsel %vm3005_vm13, %v2956_v47, %v5926_v57  ;;  %v6063_v38 = vld [vmem:[#allocation2 + $0x90] sm:$0xf0] }
 0x304   : > { %v2472_v26 = vpop.permute.xlu0 %2471  ;;  %v2325_v56 = vshll.u32 %v6063_v38, 16 }
 0x305   : > { %v6018_v40 = vpop.permute.xlu1 %1390  ;;  %v3086_v12 = vsel %vm3070_vm14, %v3021_v58, %v2472_v26  ;;  %v2312_v26 = vrot.slane %v2310_v48, 1  ;;  %v2323_v48 = vshrl.u32 %v6063_v38, 16 }
 0x306   : > { %1420 = vrot.lane.b32.xlu0 %v1334_v5, %s4629_s17  ;;  %v2327_v58 = vrot.slane %v2325_v56, 1  ;;  %v6109_v56 = vld [vmem:[#allocation2 + $0x90] sm:$0xf0] }
 0x307   : > { %1567 = vrot.lane.b32.xlu1 %v1505_v44, %s4630_s27  ;;  %v2765_v44 = vsel %vm557_vm3, %v2690_v31, %v5725_v60 }
 0x308   : > { %v1932_v53 = vpop.permute.xlu0 %1931  ;;  %v2830_v2 = vsel %vm2810_vm10, %v2765_v44, %v5940_v8  ;;  %v1337_v8 = vor.u32 %v1335_v36, %v1333_v15  ;;  %v3151_v15 = vsel %vm3135_vm15, %v3086_v12, %v5965_v49  ;;  %v2313_v49 = vor.u32 %v2312_v26, %v2308_v35 }
 0x309   : > { %v6032_v18 = vpop.permute.xlu1 %1933  ;;  %v2895_v60 = vsel %vm2875_vm11, %v2830_v2, %v1932_v53  ;;  %v3253_v24 = vshrl.u32 %v3151_v15, 16  ;;  %v7097_v53 = vld [vmem:[#allocation29_spill] sm:$0xff]  ;;  %v2332_v36 = vrot.slane %v2330_v22, 1  ;;  %v2334_v44 = vshrl.u32 %v1078_v33, 16 }
 0x30a   : > { %1573 = vrot.lane.b32.xlu0 %v1512_v54, %s4630_s27  ;;  %v2960_v57 = vsel %vm2940_vm12, %v2895_v60, %v5971_v34  ;;  %v1365_v34 = vshrl.u32 %v6007_v4, 16  ;;  %v2321_v54 = vor.u32 %v2319_v0, %v2317_v17  ;;  %v3256_v4 = vshll.u32 %v3151_v15, 16  ;;  %v7098_v60 = vld [vmem:[#allocation28_spill] sm:$0xff] }
 0x30b   : > { %1426 = vrot.lane.b32.xlu1 %v1352_v21, %s4629_s17  ;;  %v3025_v31 = vsel %vm3005_vm13, %v2960_v57, %v5883_v30  ;;  %v2954_v21 = vsel %vm2940_vm12, %v2889_v46, %v7097_v53  ;;  %v3255_v12 = vrot.slane %v3253_v24, 3  ;;  %v2336_v35 = vor.u32 %v2334_v44, %v2332_v36  ;;  %v1117_v46 = vld [vmem:[#allocation2 + $0x88] sm:$0x1f] }
 0x30c   : > { %v6051_v59 = vpop.permute.xlu0 %1388  ;;  %v3019_v30 = vsel %vm3005_vm13, %v2954_v21, %v5949_v23  ;;  %v3090_v45 = vsel %vm3070_vm14, %v3025_v31, %v5993_v62  ;;  %v3258_v62 = vrot.slane %v3256_v4, 4  ;;  %v2318_v26 = vsel %vm1127_vm5, %v2313_v49, %v2317_v17 }
 0x30d   : > { %v6053_v7 = vpop.permute.xlu1 %2473 }
 0x30e   : > { %1428 = vrot.lane.b32.xlu0 %v1364_v20, %s4629_s17  ;;  %v2763_v20 = vsel %vm557_vm3, %v2688_v43, %v7098_v60  ;;  %v2571_v43 = vrot.slane %v6030_v63, 1  ;;  %v1015_v60 = vld [vmem:[#allocation2 + $0x98] sm:$0xf] }
 0x30f   : > { %1422 = vrot.lane.b32.xlu1 %v1337_v8, %s4629_s17  ;;  %v2828_v0 = vsel %vm2810_vm10, %v2763_v20, %v5909_v50  ;;  %v2574_v20 = vrot.slane %v6063_v38, 1  ;;  %v1016_v38 = vld [vmem:[#allocation2 + $0xa0] sm:$0xf8] }
 0x310   : > { %v6069_v5 = vpop.permute.xlu0 %1637 }
 0x311   : > { %v6071_v3 = vpop.permute.xlu1 %1639 }
 0x312   : > { %2183 = vrot.lane.b32.xlu0 %v1078_v33, %s4632_s14 }
 0x313   : > { %1575 = vrot.lane.b32.xlu1 %v1511_v16, %s4630_s27  ;;  %v1367_v16 = vor.u32 %v1365_v34, %v1363_v10  ;;  %v3155_v10 = vsel %vm3135_vm15, %v3090_v45, %v5947_v29  ;;  %v2328_v34 = vor.u32 %v2327_v58, %v2323_v48 }
 0x314   : > { %v6087_v61 = vpop.permute.xlu0 %2179  ;;  %v3268_v50 = vshrl.u32 %v3155_v10, 16  ;;  %v3271_v31 = vshll.u32 %v3155_v10, 16 }
 0x315   : > { %v2470_v47 = vpop.permute.xlu1 %2469  ;;  %v2333_v21 = vsel %vm1127_vm5, %v2328_v34, %v2332_v36 }
 0x316   : > { %v3084_v2 = vsel %vm3070_vm14, %v3019_v30, %v2470_v47  ;;  %2483 = vrot.lane.b32.xlu0 %v2321_v54, %s4636_s5  ;;  %v3259_v54 = vor.u32 %v3258_v62, %v3255_v12  ;;  %v1118_v30 = vld [vmem:[#allocation2 + $0x98] sm:$0x1f]  ;;  %v3270_v44 = vrot.slane %v3268_v50, 3  ;;  %v3273_v47 = vrot.slane %v3271_v31, 4 }
 0x317   : > { %v3149_v23 = vsel %vm3135_vm15, %v3084_v2, %v5988_v32  ;;  %1430 = vrot.lane.b32.xlu1 %v1367_v16, %s4629_s17  ;;  %v6127_v16 = vld [vmem:[#allocation2 + $0xa0] sm:$0xf0]  ;;  %v2575_v36 = vrot.slane %v1118_v30, 1  ;;  %v1794_v12 = vshrl.u32 %v6109_v56, 16 }
 0x318   : > { %v3246_v8 = vshrl.u32 %v3149_v23, 16  ;;  %v3249_v33 = vshll.u32 %v3149_v23, 16  ;;  %v6101_v27 = vpop.permute.xlu0 %1633  ;;  %v1811_v62 = vshll.u32 %v6127_v16, 16 }
 0x319   : > { %v1930_v57 = vpop.permute.xlu1 %1929 }
 0x31a   : > { %v3248_v32 = vrot.slane %v3246_v8, 3  ;;  %v3251_v15 = vrot.slane %v3249_v33, 4  ;;  %v2893_v22 = vsel %vm2875_vm11, %v2828_v0, %v1930_v57  ;;  %2487 = vrot.lane.b32.xlu0 %v2336_v35, %s4636_s5  ;;  %v3274_v8 = vor.u32 %v3273_v47, %v3270_v44 }
 0x31b   : > { %v2958_v29 = vsel %vm2940_vm12, %v2893_v22, %v5995_v9  ;;  %2481 = vrot.lane.b32.xlu1 %v2318_v26, %s4636_s5  ;;  %v2572_v9 = vrot.slane %v1117_v46, 1  ;;  %v1801_v33 = vshll.u32 %v1015_v60, 16  ;;  %v1017_v26 = vld [vmem:[#allocation2 + $0xa8] sm:$0xf]  ;;  %v1809_v22 = vshrl.u32 %v6127_v16, 16 }
 0x31c   : > { %v3252_v39 = vor.u32 %v3251_v15, %v3248_v32  ;;  %v3023_v17 = vsel %vm3005_vm13, %v2958_v29, %v5928_v52  ;;  %v6115_v49 = vpop.permute.xlu0 %2175  ;;  %v1796_v52 = vshll.u32 %v6109_v56, 16  ;;  %v2576_v32 = vsel %vm1464_vm4, %v2574_v20, %v2575_v36 }
 0x31d   : > { %v3088_v24 = vsel %vm3070_vm14, %v3023_v17, %v6053_v7  ;;  %v6117_v41 = vpop.permute.xlu1 %2177  ;;  %v2573_v2 = vsel %vm1464_vm4, %v2571_v43, %v2572_v9  ;;  %v1813_v46 = vrot.slane %v1811_v62, 1  ;;  %v1803_v34 = vrot.slane %v1801_v33, 1  ;;  %v1054_v17 = vld [vmem:[#allocation2 + $0x98] sm:$0x1f] }
 0x31e   : > { %v3153_v53 = vsel %vm3135_vm15, %v3088_v24, %v5980_v19  ;;  %v3260_v4 = vsel %vm3200_vm0, %v3252_v39, %v3259_v54  ;;  %2627 = vrot.lane.b32.xlu0 %v2572_v9, %s4634_s24  ;;  %v1798_v23 = vrot.slane %v1796_v52, 1  ;;  %v1816_v29 = vshll.u32 %v1017_v26, 16  ;;  %v1055_v52 = vld [vmem:[#allocation2 + $0xa8] sm:$0x1f] }
 0x31f   : > { %2485 = vrot.lane.b32.xlu1 %v2333_v21, %s4636_s5  ;;  %v3261_v7 = vshrl.u32 %v3153_v53, 16  ;;  %v3264_v45 = vshll.u32 %v3153_v53, 16  ;;  %4150 = vmatmul.mubr.msk.bf16.gmra.mrb[4].mxu1 %vm3460_vm1, %v3260_v4  ;;  %v1814_v39 = vor.u32 %v1813_v46, %v1809_v22  ;;  %v1805_v53 = vshrl.u32 %v1015_v60, 16  ;;  %v944_v22 = vld [vmem:[#allocation2 + $0x50] sm:$0xf8] }
 0x320   : > { %v6130_v19 = vpop.permute.xlu0 %2087  ;;  %v1799_v15 = vor.u32 %v1798_v23, %v1794_v12  ;;  %v1818_v24 = vrot.slane %v1816_v29, 1  ;;  %v2033_v4 = vrot.slane %v6109_v56, 1  ;;  %v2034_v30 = vrot.slane %v1054_v17, 1  ;;  %v6173_v56 = vld [vmem:[#allocation2 + $0xa0] sm:$0xf0] }
 0x321   : > { %v6132_v63 = vpop.permute.xlu1 %1635  ;;  %v3263_v48 = vrot.slane %v3261_v7, 3  ;;  %v3266_v58 = vrot.slane %v3264_v45, 4  ;;  %v1807_v44 = vor.u32 %v1805_v53, %v1803_v34  ;;  %v1820_v47 = vshrl.u32 %v1017_v26, 16  ;;  %v1081_v17 = vld [vmem:[#allocation2 + $0xb0] sm:$0xf8] }
 0x322   : > { %2631 = vrot.lane.b32.xlu0 %v2575_v36, %s4634_s24  ;;  %v1804_v54 = vsel %vm1127_vm5, %v1799_v15, %v1803_v34  ;;  %v1819_v21 = vsel %vm1127_vm5, %v1814_v39, %v1818_v24  ;;  %v2035_v36 = vsel %vm1464_vm4, %v2033_v4, %v2034_v30  ;;  %v2693_v46 = vsel %vm2665_vm9, %v944_v22, %v6051_v59  ;;  %v1082_v39 = vld [vmem:[#allocation2 + $0xb8] sm:$0xf] }
 0x323   : > { %2625 = vrot.lane.b32.xlu1 %v2573_v2, %s4634_s24  ;;  %v3267_v10 = vor.u32 %v3266_v58, %v3263_v48  ;;  %v2036_v2 = vrot.slane %v6127_v16, 1  ;;  %v2037_v48 = vrot.slane %v1055_v52, 1  ;;  %v4325_v58 = vld [vmem:[#allocation2 + $0x58] sm:$0xf]  ;;  %v1822_v23 = vor.u32 %v1820_v47, %v1818_v24 }
 0x324   : > { %v6140_v0 = vpop.permute.xlu0 %1545  ;;  %v2340_v16 = vshll.u32 %v6173_v56, 16  ;;  %v2767_v4 = vsel %vm557_vm3, %v2693_v46, %v5978_v51  ;;  %v2364_v46 = vshrl.u32 %v1082_v39, 16 }
 0x325   : > { %v6142_v57 = vpop.permute.xlu1 %2173  ;;  %v3275_v35 = vsel %vm3200_vm0, %v3267_v10, %v3274_v8  ;;  %v2038_v62 = vsel %vm1464_vm4, %v2036_v2, %v2037_v48  ;;  %v6187_v8 = vld [vmem:[#allocation2 + $0xb0] sm:$0xf0] }
 0x326   : > { %4153 = vmatprep.mubr.msk.bf16.mxu1 %vm3460_vm1, %v3275_v35  ;;  %1645 = vrot.lane.b32.xlu0 %v1016_v38, %s4631_s12  ;;  %v1080_v35 = vld [vmem:[#allocation2 + $0xa8] sm:$0xf]  ;;  %v1079_v38 = vld [vmem:[#allocation2 + $0xa0] sm:$0xf8]  ;;  %v2342_v15 = vrot.slane %v2340_v16, 1  ;;  %v2353_v53 = vshrl.u32 %v6187_v8, 16 }
 0x327   : > { %2629 = vrot.lane.b32.xlu1 %v2576_v32, %s4634_s24  ;;  %v2338_v32 = vshrl.u32 %v6173_v56, 16  ;;  %v2345_v34 = vshll.u32 %v1080_v35, 16 }
 0x328   : > { %v6150_v50 = vpop.permute.xlu0 %2623 }
 0x329   : > { %v6152_v31 = vpop.permute.xlu1 %1547  ;;  %v2343_v24 = vor.u32 %v2342_v15, %v2338_v32 }
 0x32a   : > { %1945 = vrot.lane.b32.xlu0 %v1804_v54, %s4635_s16 }
 0x32b   : > { %1643 = vrot.lane.b32.xlu1 %v1015_v60, %s4631_s12  ;;  %v2695_v60 = vsel %vm2665_vm9, %v4325_v58, %v6018_v40 }
 0x32c   : > { %v6157_v9 = vpop.permute.xlu0 %2083  ;;  %v2769_v10 = vsel %vm557_vm3, %v2695_v60, %v5967_v37  ;;  %v2355_v37 = vshll.u32 %v6187_v8, 16 }
 0x32d   : > { %v6159_v43 = vpop.permute.xlu1 %1543 }
 0x32e   : > { %1949 = vrot.lane.b32.xlu0 %v1819_v21, %s4635_s16  ;;  %v2357_v21 = vrot.slane %v2355_v37, 1 }
 0x32f   : > { %1647 = vrot.lane.b32.xlu1 %v1017_v26, %s4631_s12  ;;  %v2834_v26 = vsel %vm2810_vm10, %v2769_v10, %v5864_v13  ;;  %v2577_v10 = vrot.slane %v6173_v56, 1 }
 0x330   : > { %v6165_v7 = vpop.permute.xlu0 %1541  ;;  %v2899_v29 = vsel %vm2875_vm11, %v2834_v26, %v5986_v25  ;;  %v2347_v25 = vrot.slane %v2345_v34, 1 }
 0x331   : > { %v6167_v45 = vpop.permute.xlu1 %2085  ;;  %v2964_v59 = vsel %vm2940_vm12, %v2899_v29, %v5938_v1  ;;  %v1119_v1 = vld [vmem:[#allocation2 + $0xa8] sm:$0x1f]  ;;  %v2580_v29 = vrot.slane %v6187_v8, 1 }
 0x332   : > { %2089 = vrot.lane.b32.xlu0 %v2035_v36, %s4633_s19  ;;  %v3029_v52 = vsel %vm3005_vm13, %v2964_v59, %v6115_v49  ;;  %v2832_v36 = vsel %vm2810_vm10, %v2767_v4, %v5862_v6  ;;  %v2348_v2 = vsel %vm1127_vm5, %v2343_v24, %v2347_v25  ;;  %v2578_v26 = vrot.slane %v1119_v1, 1  ;;  %v1019_v1 = vld [vmem:[#allocation2 + $0xb8] sm:$0xf] }
 0x333   : > { %1947 = vrot.lane.b32.xlu1 %v1807_v44, %s4635_s16  ;;  %v2897_v49 = vsel %vm2875_vm11, %v2832_v36, %v6032_v18 }
 0x334   : > { %v6177_v20 = vpop.permute.xlu0 %1943  ;;  %v2962_v18 = vsel %vm2940_vm12, %v2897_v49, %v5973_v14  ;;  %v2579_v34 = vsel %vm1464_vm4, %v2577_v10, %v2578_v26  ;;  %v1018_v49 = vld [vmem:[#allocation2 + $0xb0] sm:$0xf8]  ;;  %v1831_v10 = vshll.u32 %v1019_v1, 16 }
 0x335   : > { %v6179_v12 = vpop.permute.xlu1 %2621  ;;  %v3027_v15 = vsel %vm3005_vm13, %v2962_v18, %v6142_v57  ;;  %v6249_v57 = vld [vmem:[#allocation2 + $0xb0] sm:$0xf0] }
 0x336   : > { %2093 = vrot.lane.b32.xlu0 %v2038_v62, %s4633_s19  ;;  %v2349_v62 = vshrl.u32 %v1080_v35, 16 }
 0x337   : > { %1951 = vrot.lane.b32.xlu1 %v1822_v23, %s4635_s16 }
 0x338   : > { %v6189_v33 = vpop.permute.xlu0 %1400  ;;  %v2351_v22 = vor.u32 %v2349_v62, %v2347_v25 }
 0x339   : > { %v6191_v40 = vpop.permute.xlu1 %2081 }
 0x33a   : > { %2185 = vrot.lane.b32.xlu0 %v1079_v38, %s4632_s14  ;;  %v1120_v38 = vld [vmem:[#allocation2 + $0xb8] sm:$0x1f] }
 0x33b   : > { %2091 = vrot.lane.b32.xlu1 %v2034_v30, %s4633_s19  ;;  %v2360_v30 = vshll.u32 %v1082_v39, 16 }
 0x33c   : > { %v2480_v54 = vpop.permute.xlu0 %2479 }
 0x33d   : > { %v6203_v13 = vpop.permute.xlu1 %1402  ;;  %v3094_v51 = vsel %vm3070_vm14, %v3029_v52, %v2480_v54  ;;  %v2362_v58 = vrot.slane %v2360_v30, 1  ;;  %v2581_v54 = vrot.slane %v1120_v38, 1  ;;  %v1041_v52 = vld [vmem:[#allocation2 + $0xc0] sm:$0xf0] }
 0x33e   : > { %2189 = vrot.lane.b32.xlu0 %v1081_v17, %s4632_s14  ;;  %v3159_v60 = vsel %vm3135_vm15, %v3094_v51, %v6150_v50 }
 0x33f   : > { %2095 = vrot.lane.b32.xlu1 %v2037_v48, %s4633_s19  ;;  %v2358_v48 = vor.u32 %v2357_v21, %v2353_v53  ;;  %v3283_v32 = vshrl.u32 %v3159_v60, 16  ;;  %v3286_v50 = vshll.u32 %v3159_v60, 16  ;;  %v2366_v59 = vor.u32 %v2364_v46, %v2362_v58 }
 0x340   : > { %v6214_v44 = vpop.permute.xlu0 %1939  ;;  %v2582_v30 = vsel %vm1464_vm4, %v2580_v29, %v2581_v54  ;;  %v1824_v60 = vshrl.u32 %v6249_v57, 16  ;;  %v1833_v46 = vrot.slane %v1831_v10, 1 }
 0x341   : > { %v6216_v47 = vpop.permute.xlu1 %1398  ;;  %v2363_v16 = vsel %vm1127_vm5, %v2358_v48, %v2362_v58  ;;  %v3285_v17 = vrot.slane %v3283_v32, 3  ;;  %v3288_v24 = vrot.slane %v3286_v50, 4  ;;  %v1021_v32 = vld [vmem:[#allocation2 + $0xc8] sm:$0xf]  ;;  %v1020_v50 = vld [vmem:[#allocation2 + $0xc0] sm:$0xf8] }
 0x342   : > { %2489 = vrot.lane.b32.xlu0 %v2348_v2, %s4636_s5 }
 0x343   : > { %2187 = vrot.lane.b32.xlu1 %v1080_v35, %s4632_s14  ;;  %v3289_v36 = vor.u32 %v3288_v24, %v3285_v17  ;;  %v1056_v17 = vld [vmem:[#allocation2 + $0xb8] sm:$0x1f] }
 0x344   : > { %v6228_v23 = vpop.permute.xlu0 %1396 }
 0x345   : > { %v6230_v6 = vpop.permute.xlu1 %1941 }
 0x346   : > { %2493 = vrot.lane.b32.xlu0 %v2363_v16, %s4636_s5  ;;  %v1841_v16 = vshll.u32 %v1041_v52, 16 }
 0x347   : > { %2191 = vrot.lane.b32.xlu1 %v1082_v39, %s4632_s14 }
 0x348   : > { %v6240_v37 = vpop.permute.xlu0 %1641 }
 0x349   : > { %v2478_v35 = vpop.permute.xlu1 %2477 }
 0x34a   : > { %v3092_v56 = vsel %vm3070_vm14, %v3027_v15, %v2478_v35  ;;  %2633 = vrot.lane.b32.xlu0 %v2579_v34, %s4634_s24  ;;  %v1839_v35 = vshrl.u32 %v1041_v52, 16 }
 0x34b   : > { %v3157_v14 = vsel %vm3135_vm15, %v3092_v56, %v6179_v12  ;;  %2491 = vrot.lane.b32.xlu1 %v2351_v22, %s4636_s5  ;;  %v1826_v12 = vshll.u32 %v6249_v57, 16  ;;  %v1843_v22 = vrot.slane %v1841_v16, 1  ;;  %v1846_v56 = vshll.u32 %v1021_v32, 16 }
 0x34c   : > { %v3276_v53 = vshrl.u32 %v3157_v14, 16  ;;  %v3279_v39 = vshll.u32 %v3157_v14, 16  ;;  %v6251_v21 = vpop.permute.xlu0 %1553 }
 0x34d   : > { %v6253_v4 = vpop.permute.xlu1 %1937  ;;  %v1828_v62 = vrot.slane %v1826_v12, 1  ;;  %v1844_v14 = vor.u32 %v1843_v22, %v1839_v35  ;;  %v1848_v24 = vrot.slane %v1846_v56, 1  ;;  %v1084_v22 = vld [vmem:[#allocation2 + $0xc8] sm:$0xf] }
 0x34e   : > { %v3278_v8 = vrot.slane %v3276_v53, 3  ;;  %v3281_v25 = vrot.slane %v3279_v39, 4  ;;  %2637 = vrot.lane.b32.xlu0 %v2582_v30, %s4634_s24  ;;  %v1057_v30 = vld [vmem:[#allocation2 + $0xc8] sm:$0x1f] }
 0x34f   : > { %2495 = vrot.lane.b32.xlu1 %v2366_v59, %s4636_s5  ;;  %v1829_v15 = vor.u32 %v1828_v62, %v1824_v60  ;;  %v1849_v59 = vsel %vm1127_vm5, %v1844_v14, %v1848_v24  ;;  %v2042_v60 = vrot.slane %v1041_v52, 1 }
 0x350   : > { %v3282_v51 = vor.u32 %v3281_v25, %v3278_v8  ;;  %v6259_v2 = vpop.permute.xlu0 %1549  ;;  %v2039_v8 = vrot.slane %v6249_v57, 1  ;;  %v2040_v25 = vrot.slane %v1056_v17, 1  ;;  %v1105_v57 = vld [vmem:[#allocation2 + $0xc0] sm:$0xf0]  ;;  %v2375_v17 = vshll.u32 %v1084_v22, 16 }
 0x351   : > { %v6261_v48 = vpop.permute.xlu1 %2181  ;;  %v1834_v29 = vsel %vm1127_vm5, %v1829_v15, %v1833_v46  ;;  %v2370_v15 = vshll.u32 %v1105_v57, 16  ;;  %v2368_v56 = vshrl.u32 %v1105_v57, 16 }
 0x352   : > { %v3290_v58 = vsel %vm3200_vm0, %v3282_v51, %v3289_v36  ;;  %1649 = vrot.lane.b32.xlu0 %v1018_v49, %s4631_s12  ;;  %v1850_v49 = vshrl.u32 %v1021_v32, 16 }
 0x353   : > { %2635 = vrot.lane.b32.xlu1 %v2578_v26, %s4634_s24  ;;  %4154 = vmatmul.mubr.msk.bf16.gmra.mrb[8].mxu1 %vm3460_vm1, %v3290_v58  ;;  %v2041_v58 = vsel %vm1464_vm4, %v2039_v8, %v2040_v25  ;;  %v1085_v8 = vld [vmem:[#allocation2 + $0xd0] sm:$0xf8] }
 0x354   : > { %v6268_v38 = vpop.permute.xlu0 %1408  ;;  %v1852_v10 = vor.u32 %v1850_v49, %v1848_v24 }
 0x355   : > { %v6270_v18 = vpop.permute.xlu1 %1555 }
 0x356   : > { %1653 = vrot.lane.b32.xlu0 %v1020_v50, %s4631_s12 }
 0x357   : > { %2639 = vrot.lane.b32.xlu1 %v2581_v54, %s4634_s24  ;;  %v1835_v54 = vshrl.u32 %v1019_v1, 16 }
 0x358   : > { %v6274_v34 = vpop.permute.xlu0 %1404 }
 0x359   : > { %v6276_v26 = vpop.permute.xlu1 %1551  ;;  %v1837_v51 = vor.u32 %v1835_v54, %v1833_v46  ;;  %v1083_v46 = vld [vmem:[#allocation2 + $0xc0] sm:$0xf8] }
 0x35a   : > { %1953 = vrot.lane.b32.xlu0 %v1834_v29, %s4635_s16  ;;  %v2372_v29 = vrot.slane %v2370_v15, 1 }
 0x35b   : > { %1651 = vrot.lane.b32.xlu1 %v1019_v1, %s4631_s12  ;;  %v2043_v1 = vrot.slane %v1057_v30, 1 }
 0x35c   : > { %v6281_v53 = vpop.permute.xlu0 %1561  ;;  %v2373_v30 = vor.u32 %v2372_v29, %v2368_v56 }
 0x35d   : > { %7099 = vst [vmem:[#allocation30_spill] sm:$0xff] %v6281_v53  ;;  %v6283_v39 = vpop.permute.xlu1 %1410  ;;  %v2044_v50 = vsel %vm1464_vm4, %v2042_v60, %v2043_v1 }
 0x35e   : > { %1957 = vrot.lane.b32.xlu0 %v1849_v59, %s4635_s16  ;;  %v1086_v59 = vld [vmem:[#allocation2 + $0xd8] sm:$0xf] }
 0x35f   : > { %1655 = vrot.lane.b32.xlu1 %v1021_v32, %s4631_s12  ;;  %v1106_v32 = vld [vmem:[#allocation2 + $0xd0] sm:$0xf0]  ;;  %v2390_v60 = vshll.u32 %v1086_v59, 16 }
 0x360   : > { %v6289_v12 = vpop.permute.xlu0 %1557  ;;  %v2385_v14 = vshll.u32 %v1106_v32, 16 }
 0x361   : > { %v6291_v36 = vpop.permute.xlu1 %1406  ;;  %v2392_v56 = vrot.slane %v2390_v60, 1  ;;  %v2394_v60 = vshrl.u32 %v1086_v59, 16 }
 0x362   : > { %2097 = vrot.lane.b32.xlu0 %v2041_v58, %s4633_s19  ;;  %v2387_v49 = vrot.slane %v2385_v14, 1  ;;  %v2377_v58 = vrot.slane %v2375_v17, 1 }
 0x363   : > { %1955 = vrot.lane.b32.xlu1 %v1837_v51, %s4635_s16  ;;  %v2383_v51 = vshrl.u32 %v1106_v32, 16 }
 0x364   : > { %v6296_v62 = vpop.permute.xlu0 %1416 }
 0x365   : > { %v6298_v16 = vpop.permute.xlu1 %1563  ;;  %v2388_v15 = vor.u32 %v2387_v49, %v2383_v51 }
 0x366   : > { %7100 = vst [vmem:[#allocation29_spill] sm:$0xff] %v6298_v16  ;;  %2101 = vrot.lane.b32.xlu0 %v2044_v50, %s4633_s19  ;;  %v2586_v16 = vrot.slane %v1106_v32, 1 }
 0x367   : > { %1959 = vrot.lane.b32.xlu1 %v1852_v10, %s4635_s16  ;;  %v2393_v17 = vsel %vm1127_vm5, %v2388_v15, %v2392_v56 }
 0x368   : > { %v6303_v52 = vpop.permute.xlu0 %1412 }
 0x369   : > { %v6305_v35 = vpop.permute.xlu1 %1559 }
 0x36a   : > { %2193 = vrot.lane.b32.xlu0 %v1083_v46, %s4632_s14  ;;  %v1121_v46 = vld [vmem:[#allocation2 + $0xc8] sm:$0x1f] }
 0x36b   : > { %2099 = vrot.lane.b32.xlu1 %v2040_v25, %s4633_s19  ;;  %v2378_v25 = vsel %vm1127_vm5, %v2373_v30, %v2377_v58  ;;  %v1122_v30 = vld [vmem:[#allocation2 + $0xd8] sm:$0x1f] }
 0x36c   : > { %v6309_v24 = vpop.permute.xlu0 %1569 }
 0x36d   : > { %7101 = vst [vmem:[#allocation28_spill] sm:$0xff] %v6309_v24  ;;  %v6311_v54 = vpop.permute.xlu1 %1418  ;;  %v2584_v24 = vrot.slane %v1121_v46, 1  ;;  %v2396_v46 = vor.u32 %v2394_v60, %v2392_v56  ;;  %v4326_v60 = vld [vmem:[#allocation2 + $0x68] sm:$0xf] }
 0x36e   : > { %7102 = vst [vmem:[#allocation31_spill] sm:$0xff] %v6311_v54  ;;  %2197 = vrot.lane.b32.xlu0 %v1085_v8, %s4632_s14  ;;  %v2583_v8 = vrot.slane %v1105_v57, 1  ;;  %v6336_v57 = vld [vmem:[#allocation2 + $0xd0] sm:$0xf0] }
 0x36f   : > { %2103 = vrot.lane.b32.xlu1 %v2043_v1, %s4633_s19  ;;  %v2379_v1 = vshrl.u32 %v1084_v22, 16  ;;  %v1854_v56 = vshrl.u32 %v6336_v57, 16 }
 0x370   : > { %v6315_v10 = vpop.permute.xlu0 %1565 }
 0x371   : > { %7103 = vst [vmem:[#allocation32_spill] sm:$0xff] %v6315_v10  ;;  %v6317_v50 = vpop.permute.xlu1 %1414  ;;  %v4327_v10 = vld [vmem:[#allocation2 + $0x78] sm:$0xf] }
 0x372   : > { %2497 = vrot.lane.b32.xlu0 %v2378_v25, %s4636_s5  ;;  %v2381_v25 = vor.u32 %v2379_v1, %v2377_v58  ;;  %v1856_v58 = vshll.u32 %v6336_v57, 16  ;;  %v1023_v1 = vld [vmem:[#allocation2 + $0xd8] sm:$0xf] }
 0x373   : > { %2195 = vrot.lane.b32.xlu1 %v1084_v22, %s4632_s14 }
 0x374   : > { %v6322_v29 = vpop.permute.xlu0 %1424 }
 0x375   : > { %7104 = vst [vmem:[#allocation33_spill] sm:$0xff] %v6322_v29  ;;  %v6324_v14 = vpop.permute.xlu1 %1571  ;;  %v2585_v29 = vsel %vm1464_vm4, %v2583_v8, %v2584_v24 }
 0x376   : > { %7105 = vst [vmem:[#allocation34_spill] sm:$0xff] %v6324_v14  ;;  %2501 = vrot.lane.b32.xlu0 %v2393_v17, %s4636_s5  ;;  %v2587_v14 = vrot.slane %v1122_v30, 1  ;;  %v1022_v30 = vld [vmem:[#allocation2 + $0xd0] sm:$0xf8] }
 0x377   : > { %2199 = vrot.lane.b32.xlu1 %v1086_v59, %s4632_s14  ;;  %v6344_v59 = vld [vmem:[#allocation2 + $0xe0] sm:$0xf0] }
 0x378   : > { %v6329_v51 = vpop.permute.xlu0 %1420  ;;  %v2588_v17 = vsel %vm1464_vm4, %v2586_v16, %v2587_v14  ;;  %v1871_v8 = vshll.u32 %v6344_v59, 16  ;;  %v1861_v16 = vshll.u32 %v1023_v1, 16 }
 0x379   : > { %7106 = vst [vmem:[#allocation35_spill] sm:$0xff] %v6329_v51  ;;  %v6331_v49 = vpop.permute.xlu1 %1567 }
 0x37a   : > { %7107 = vst [vmem:[#allocation36_spill] sm:$0xff] %v6331_v49  ;;  %2641 = vrot.lane.b32.xlu0 %v2585_v29, %s4634_s24  ;;  %v1873_v49 = vrot.slane %v1871_v8, 1 }
 0x37b   : > { %2499 = vrot.lane.b32.xlu1 %v2381_v25, %s4636_s5  ;;  %v1858_v25 = vrot.slane %v1856_v58, 1 }
 0x37c   : > { %v6338_v22 = vpop.permute.xlu0 %1573 }
 0x37d   : > { %7108 = vst [vmem:[#allocation37_spill] sm:$0xff] %v6338_v22  ;;  %v6340_v15 = vpop.permute.xlu1 %1426  ;;  %v1859_v58 = vor.u32 %v1858_v25, %v1854_v56  ;;  %v948_v25 = vld [vmem:[#allocation2 + $0x70] sm:$0xf8] }
 0x37e   : > { %7109 = vst [vmem:[#allocation38_spill] sm:$0xff] %v6340_v15  ;;  %2645 = vrot.lane.b32.xlu0 %v2588_v17, %s4634_s24  ;;  %v6362_v15 = vld [vmem:[#allocation2 + $0xe8] sm:$0xf] }
 0x37f   : > { %2503 = vrot.lane.b32.xlu1 %v2396_v46, %s4636_s5  ;;  %v2700_v46 = vsel %vm2665_vm9, %v4326_v60, %v6005_v11  ;;  %v946_v11 = vld [vmem:[#allocation2 + $0x60] sm:$0xf8]  ;;  %v1863_v60 = vrot.slane %v1861_v16, 1 }
 0x380   : > { %v6348_v32 = vpop.permute.xlu0 %1428  ;;  %v2698_v8 = vsel %vm2665_vm9, %v946_v11, %v6003_v42  ;;  %v6387_v42 = vld [vmem:[#allocation2 + $0xd8] sm:$0x1f] }
 0x381   : > { %7110 = vst [vmem:[#allocation39_spill] sm:$0xff] %v6348_v32  ;;  %v6350_v29 = vpop.permute.xlu1 %1422  ;;  %v1869_v32 = vshrl.u32 %v6344_v59, 16  ;;  %v1864_v16 = vsel %vm1127_vm5, %v1859_v58, %v1863_v60 }
 0x382   : > { %7111 = vst [vmem:[#allocation40_spill] sm:$0xff] %v6350_v29  ;;  %1657 = vrot.lane.b32.xlu0 %v1022_v30, %s4631_s12  ;;  %v1024_v29 = vld [vmem:[#allocation2 + $0xe0] sm:$0xf8]  ;;  %v2773_v30 = vsel %vm557_vm3, %v2700_v46, %v5960_v28 }
 0x383   : > { %2643 = vrot.lane.b32.xlu1 %v2584_v24, %s4634_s24  ;;  %v2705_v24 = vsel %vm2665_vm9, %v4327_v10, %v6216_v47  ;;  %v2838_v56 = vsel %vm2810_vm10, %v2773_v30, %v6132_v63  ;;  %v1874_v10 = vor.u32 %v1873_v49, %v1869_v32  ;;  %v2771_v63 = vsel %vm557_vm3, %v2698_v8, %v5958_v55 }
 0x384   : > { %v6358_v17 = vpop.permute.xlu0 %2183  ;;  %v2777_v28 = vsel %vm557_vm3, %v2705_v24, %v6159_v43  ;;  %v1865_v32 = vshrl.u32 %v1023_v1, 16 }
 0x385   : > { %v6360_v22 = vpop.permute.xlu1 %1575 }
 0x386   : > { %7112 = vst [vmem:[#allocation41_spill] sm:$0xff] %v6360_v22  ;;  %1661 = vrot.lane.b32.xlu0 %v1024_v29, %s4631_s12  ;;  %v1876_v22 = vshll.u32 %v6362_v15, 16  ;;  %v2703_v29 = vsel %vm2665_vm9, %v948_v25, %v6228_v23  ;;  %v2842_v23 = vsel %vm2810_vm10, %v2777_v28, %v6071_v3  ;;  %v6407_v3 = vld [vmem:[#allocation2 + $0xe8] sm:$0x1f]  ;;  %v1880_v25 = vshrl.u32 %v6362_v15, 16 }
 0x387   : > { %2647 = vrot.lane.b32.xlu1 %v2587_v14, %s4634_s24  ;;  %v2903_v14 = vsel %vm2875_vm11, %v2838_v56, %v6214_v44  ;;  %v2836_v44 = vsel %vm2810_vm10, %v2771_v63, %v6101_v27  ;;  %v2775_v46 = vsel %vm557_vm3, %v2703_v29, %v6165_v7  ;;  %v2046_v27 = vrot.slane %v6387_v42, 1 }
 0x388   : > { %v2484_v54 = vpop.permute.xlu0 %2483  ;;  %v1878_v49 = vrot.slane %v1876_v22, 1  ;;  %v2968_v43 = vsel %vm2940_vm12, %v2903_v14, %v6157_v9  ;;  %v2901_v11 = vsel %vm2875_vm11, %v2836_v44, %v6253_v4  ;;  %v2045_v22 = vrot.slane %v6336_v57, 1 }
 0x389   : > { %v6376_v47 = vpop.permute.xlu1 %1430  ;;  %v2840_v9 = vsel %vm2810_vm10, %v2775_v46, %v6069_v5  ;;  %v2907_v7 = vsel %vm2875_vm11, %v2842_v23, %v6177_v20  ;;  %v3033_v4 = vsel %vm3005_vm13, %v2968_v43, %v6087_v61  ;;  %v2966_v57 = vsel %vm2940_vm12, %v2901_v11, %v6191_v40 }
 0x38a   : > { %7113 = vst [vmem:[#allocation42_spill] sm:$0xff] %v6376_v47  ;;  %1961 = vrot.lane.b32.xlu0 %v1864_v16, %s4635_s16  ;;  %v1879_v55 = vsel %vm1127_vm5, %v1874_v10, %v1878_v49  ;;  %v1867_v56 = vor.u32 %v1865_v32, %v1863_v60  ;;  %v2047_v5 = vsel %vm1464_vm4, %v2045_v22, %v2046_v27  ;;  %v2048_v14 = vrot.slane %v6344_v59, 1 }
 0x38b   : > { %1659 = vrot.lane.b32.xlu1 %v1023_v1, %s4631_s12  ;;  %v3098_v1 = vsel %vm3070_vm14, %v3033_v4, %v2484_v54  ;;  %v2049_v20 = vrot.slane %v6407_v3, 1  ;;  %v2905_v61 = vsel %vm2875_vm11, %v2840_v9, %v6230_v6  ;;  %v2972_v40 = vsel %vm2940_vm12, %v2907_v7, %v6130_v19  ;;  %v6429_v54 = vld [vmem:[#allocation2 + $0xe0] sm:$0xf0]  ;;  %v1088_v4 = vld [vmem:[#allocation2 + $0xe8] sm:$0xf] }
 0x38c   : > { %v2488_v58 = vpop.permute.xlu0 %2487  ;;  %v3031_v59 = vsel %vm3005_vm13, %v2966_v57, %v6117_v41  ;;  %v1882_v42 = vor.u32 %v1880_v25, %v1878_v49  ;;  %v2400_v44 = vshll.u32 %v6429_v54, 16  ;;  %v2970_v41 = vsel %vm2940_vm12, %v2905_v61, %v6167_v45  ;;  %v6447_v49 = vld [vmem:[#allocation2 + $0xf0] sm:$0xf0] }
 0x38d   : > { %v2482_v24 = vpop.permute.xlu1 %2481  ;;  %v2398_v57 = vshrl.u32 %v6429_v54, 16 }
 0x38e   : > { %1965 = vrot.lane.b32.xlu0 %v1879_v55, %s4635_s16  ;;  %v3096_v6 = vsel %vm3070_vm14, %v3031_v59, %v2482_v24  ;;  %v2402_v25 = vrot.slane %v2400_v44, 1 }
 0x38f   : > { %1663 = vrot.lane.b32.xlu1 %v6362_v15, %s4631_s12  ;;  %v3037_v15 = vsel %vm3005_vm13, %v2972_v40, %v6358_v17  ;;  %v2050_v17 = vsel %vm1464_vm4, %v2048_v14, %v2049_v20 }
 0x390   : > { %v2628_v30 = vpop.permute.xlu0 %2627  ;;  %v3102_v29 = vsel %vm3070_vm14, %v3037_v15, %v2488_v58  ;;  %v3035_v58 = vsel %vm3005_vm13, %v2970_v41, %v6261_v48  ;;  %v2405_v15 = vshll.u32 %v1088_v4, 16 }
 0x391   : > { %v2486_v8 = vpop.permute.xlu1 %2485  ;;  %v3163_v10 = vsel %vm3135_vm15, %v3098_v1, %v2628_v30 }
 0x392   : > { %2105 = vrot.lane.b32.xlu0 %v2047_v5, %s4633_s19  ;;  %v3298_v60 = vshrl.u32 %v3163_v10, 16  ;;  %v3301_v28 = vshll.u32 %v3163_v10, 16  ;;  %v3100_v22 = vsel %vm3070_vm14, %v3035_v58, %v2486_v8  ;;  %v2415_v10 = vshll.u32 %v6447_v49, 16 }
 0x393   : > { %1963 = vrot.lane.b32.xlu1 %v1867_v56, %s4635_s16  ;;  %v1087_v56 = vld [vmem:[#allocation2 + $0xe0] sm:$0xf8] }
 0x394   : > { %v2632_v16 = vpop.permute.xlu0 %2631  ;;  %v3300_v24 = vrot.slane %v3298_v60, 3  ;;  %v3303_v11 = vrot.slane %v3301_v28, 4 }
 0x395   : > { %v2626_v19 = vpop.permute.xlu1 %2625  ;;  %v3167_v63 = vsel %vm3135_vm15, %v3102_v29, %v2632_v16 }
 0x396   : > { %v3161_v32 = vsel %vm3135_vm15, %v3096_v6, %v2626_v19  ;;  %v3313_v43 = vshrl.u32 %v3167_v63, 16  ;;  %v3316_v23 = vshll.u32 %v3167_v63, 16  ;;  %2109 = vrot.lane.b32.xlu0 %v2050_v17, %s4633_s19  ;;  %v3304_v8 = vor.u32 %v3303_v11, %v3300_v24  ;;  %v1090_v6 = vld [vmem:[#allocation2 + $0xf8] sm:$0xf]  ;;  %v1089_v19 = vld [vmem:[#allocation2 + $0xf0] sm:$0xf8] }
 0x397   : > { %v3291_v46 = vshrl.u32 %v3161_v32, 16  ;;  %1967 = vrot.lane.b32.xlu1 %v1882_v42, %s4635_s16  ;;  %v3294_v55 = vshll.u32 %v3161_v32, 16  ;;  %v2403_v42 = vor.u32 %v2402_v25, %v2398_v57  ;;  %v2413_v63 = vshrl.u32 %v6447_v49, 16  ;;  %v1123_v11 = vld [vmem:[#allocation2 + $0xe8] sm:$0x1f] }
 0x398   : > { %v6452_v7 = vpop.permute.xlu0 %1645  ;;  %v3315_v48 = vrot.slane %v3313_v43, 3  ;;  %v3318_v5 = vrot.slane %v3316_v23, 4  ;;  %v2417_v32 = vrot.slane %v2415_v10, 1  ;;  %v2420_v41 = vshll.u32 %v1090_v6, 16 }
 0x399   : > { %v3293_v9 = vrot.slane %v3291_v46, 3  ;;  %v2630_v45 = vpop.permute.xlu1 %2629  ;;  %v3296_v1 = vrot.slane %v3294_v55, 4  ;;  %v2409_v57 = vshrl.u32 %v1088_v4, 16  ;;  %v2592_v25 = vrot.slane %v6447_v49, 1 }
 0x39a   : > { %v3165_v30 = vsel %vm3135_vm15, %v3100_v22, %v2630_v45  ;;  %2201 = vrot.lane.b32.xlu0 %v1087_v56, %s4632_s14  ;;  %v3319_v17 = vor.u32 %v3318_v5, %v3315_v48  ;;  %v2418_v24 = vor.u32 %v2417_v32, %v2413_v63  ;;  %v2422_v3 = vrot.slane %v2420_v41, 1 }
 0x39b   : > { %v3306_v14 = vshrl.u32 %v3165_v30, 16  ;;  %v3309_v61 = vshll.u32 %v3165_v30, 16  ;;  %2107 = vrot.lane.b32.xlu1 %v2046_v27, %s4633_s19  ;;  %v3297_v40 = vor.u32 %v3296_v1, %v3293_v9  ;;  %v2407_v27 = vrot.slane %v2405_v15, 1  ;;  %v1124_v1 = vld [vmem:[#allocation2 + $0xf8] sm:$0x1f] }
 0x39c   : > { %v6459_v28 = vpop.permute.xlu0 %1945  ;;  %v2423_v22 = vsel %vm1127_vm5, %v2418_v24, %v2422_v3  ;;  %v2589_v9 = vrot.slane %v6429_v54, 1  ;;  %v2590_v45 = vrot.slane %v1123_v11, 1  ;;  %v2593_v5 = vrot.slane %v1124_v1, 1  ;;  %v6494_v54 = vld [vmem:[#allocation2 + $0xf0] sm:$0xf0] }
 0x39d   : > { %v3308_v59 = vrot.slane %v3306_v14, 3  ;;  %v3311_v60 = vrot.slane %v3309_v61, 4  ;;  %v6461_v29 = vpop.permute.xlu1 %1643  ;;  %v3305_v16 = vsel %vm3200_vm0, %v3297_v40, %v3304_v8  ;;  %v2408_v58 = vsel %vm1127_vm5, %v2403_v42, %v2407_v27  ;;  %v6503_v15 = vld [vmem:[#allocation2 + $0x100] sm:$0xf0]  ;;  %v1026_v42 = vld [vmem:[#allocation2 + $0xf0] sm:$0xf8] }
 0x39e   : > { %4157 = vmatprep.mubr.msk.bf16.mxu1 %vm3460_vm1, %v3305_v16  ;;  %2205 = vrot.lane.b32.xlu0 %v1089_v19, %s4632_s14  ;;  %v2591_v10 = vsel %vm1464_vm4, %v2589_v9, %v2590_v45  ;;  %v2411_v48 = vor.u32 %v2409_v57, %v2407_v27  ;;  %v2424_v14 = vshrl.u32 %v1090_v6, 16  ;;  %v2594_v8 = vsel %vm1464_vm4, %v2592_v25, %v2593_v5  ;;  %v6515_v16 = vld [vmem:[#allocation2 + $0xf8] sm:$0xf] }
 0x39f   : > { %v3312_v44 = vor.u32 %v3311_v60, %v3308_v59  ;;  %2111 = vrot.lane.b32.xlu1 %v2049_v20, %s4633_s19  ;;  %v1886_v49 = vshll.u32 %v6494_v54, 16  ;;  %v1901_v19 = vshll.u32 %v6503_v15, 16  ;;  %v1884_v63 = vshrl.u32 %v6494_v54, 16 }
 0x3a0   : > { %v6470_v43 = vpop.permute.xlu0 %1949  ;;  %v2426_v40 = vor.u32 %v2424_v14, %v2422_v3  ;;  %v6524_v3 = vld [vmem:[#allocation2 + $0x108] sm:$0xf] }
 0x3a1   : > { %v6472_v23 = vpop.permute.xlu1 %1647  ;;  %v3320_v46 = vsel %vm3200_vm0, %v3312_v44, %v3319_v17  ;;  %v1888_v32 = vrot.slane %v1886_v49, 1  ;;  %v950_v44 = vld [vmem:[#allocation2 + $0x80] sm:$0xf8]  ;;  %v1903_v9 = vrot.slane %v1901_v19, 1 }
 0x3a2   : > { %4158 = vmatmul.mubr.msk.bf16.gmra.mrb[12].mxu1 %vm3460_vm1, %v3320_v46  ;;  %2505 = vrot.lane.b32.xlu0 %v2408_v58, %s4636_s5  ;;  %v1891_v46 = vshll.u32 %v6515_v16, 16  ;;  %v2708_v14 = vsel %vm2665_vm9, %v950_v44, %v6189_v33 }
 0x3a3   : > { %2203 = vrot.lane.b32.xlu1 %v1088_v4, %s4632_s14  ;;  %v2779_v44 = vsel %vm557_vm3, %v2708_v14, %v6140_v0 }
 0x3a4   : > { %v6479_v20 = vpop.permute.xlu0 %2089 }
 0x3a5   : > { %v6481_v55 = vpop.permute.xlu1 %1947 }
 0x3a6   : > { %2509 = vrot.lane.b32.xlu0 %v2423_v22, %s4636_s5  ;;  %v1899_v22 = vshrl.u32 %v6503_v15, 16 }
 0x3a7   : > { %2207 = vrot.lane.b32.xlu1 %v1090_v6, %s4632_s14  ;;  %v6513_v6 = vld [vmem:[%s349_s20] ss:$0 sm:$0xff] }
 0x3a8   : > { %v6487_v30 = vpop.permute.xlu0 %2093  ;;  %v1904_v33 = vor.u32 %v1903_v9, %v1899_v22 }
 0x3a9   : > { %v6489_v56 = vpop.permute.xlu1 %1951 }
 0x3aa   : > { %2649 = vrot.lane.b32.xlu0 %v2591_v10, %s4634_s24  ;;  %v1028_v10 = vld [vmem:[#allocation2 + $0x100] sm:$0xf8] }
 0x3ab   : > { %2507 = vrot.lane.b32.xlu1 %v2411_v48, %s4636_s5  ;;  %v1889_v48 = vor.u32 %v1888_v32, %v1884_v63  ;;  %v3741_v63 = vld [vmem:[%s5023_s8 + $0x18] sm:$0xff] }
 0x3ac   : > { %v6497_v4 = vpop.permute.xlu0 %2185 }
 0x3ad   : > { %v6499_v61 = vpop.permute.xlu1 %2091 }
 0x3ae   : > { %2653 = vrot.lane.b32.xlu0 %v2594_v8, %s4634_s24  ;;  %v3740_v8 = vld [vmem:[%s5023_s8 + $0x10] sm:$0xff] }
 0x3af   : > { %2511 = vrot.lane.b32.xlu1 %v2426_v40, %s4636_s5 }
 0x3b0   : > { %v6507_v59 = vpop.permute.xlu0 %2189 }
 0x3b1   : > { %v6509_v60 = vpop.permute.xlu1 %2095 }
 0x3b2   : > { %v4147_v17 = vpop.f32.mrb[0].mxu1  ;;  %1665 = vrot.lane.b32.xlu0 %v1026_v42, %s4631_s12  ;;  %v3738_v42 = vld [vmem:[%s5023_s8] sm:$0xff] }
 0x3b3   : > { %v3556_v27 = vadd.f32 %v4147_v17, %v6513_v6  ;;  %2651 = vrot.lane.b32.xlu1 %v2590_v45, %s4634_s24  ;;  %v3547_v41 = vpop.f32.mrb[1].mxu1 }
 0x3b4   : > { %v3548_v58 = vadd.f32 %v6513_v6, %v3547_v41  ;;  %v4148_v24 = vpop.f32.mrb[2].mxu1  ;;  %v2490_v11 = vpop.permute.xlu0 %2489  ;;  %v1893_v41 = vrot.slane %v1891_v46, 1  ;;  %v6545_v46 = vld [vmem:[#allocation2 + $0xf8] sm:$0x1f] }
 0x3b5   : > { %v3676_v57 = vmul.f32 0.1, %v3556_v27  ;;  %v3559_v1 = vadd.f32 %v4148_v24, %v6513_v6  ;;  %v6528_v25 = vpop.permute.xlu1 %2187  ;;  %v3550_v45 = vpop.f32.mrb[3].mxu1  ;;  %v1906_v24 = vshll.u32 %v6524_v3, 16 }
 0x3b6   : > { %v3674_v40 = vmul.f32 0.1, %v3548_v58  ;;  %v3551_v49 = vadd.f32 %v6513_v6, %v3550_v45  ;;  %1669 = vrot.lane.b32.xlu0 %v1028_v10, %s4631_s12  ;;  %v952_v45 = vld [vmem:[#allocation2 + $0x90] sm:$0xf8] }
 0x3b7   : > { %v3708_v19 = vmax.f32 %v3556_v27, %v3676_v57  ;;  %v3677_v17 = vmul.f32 0.1, %v3559_v1  ;;  %2655 = vrot.lane.b32.xlu1 %v2593_v5, %s4634_s24  ;;  %v3739_v27 = vld [vmem:[%s5023_s8 + $0x8] sm:$0xff]  ;;  %v1894_v5 = vsel %vm1127_vm5, %v1889_v48, %v1893_v41  ;;  %v2713_v22 = vsel %vm2665_vm9, %v952_v45, %v6274_v34 }
 0x3b8   : > { %v3706_v47 = vmax.f32 %v3548_v58, %v3674_v40  ;;  %v3675_v32 = vmul.f32 0.1, %v3551_v49  ;;  %v2494_v53 = vpop.permute.xlu0 %2493  ;;  %v2844_v58 = vsel %vm2810_vm10, %v2779_v44, %v6240_v37  ;;  %v1908_v48 = vrot.slane %v1906_v24, 1 }
 0x3b9   : > { %v3772_v10 = vadd.f32 %v3740_v8, %v3708_v19  ;;  %v3709_v51 = vmax.f32 %v3559_v1, %v3677_v17  ;;  %v6542_v57 = vpop.permute.xlu1 %2191  ;;  %v2909_v0 = vsel %vm2875_vm11, %v2844_v58, %v6459_v28  ;;  %v2051_v37 = vrot.slane %v6494_v54, 1 }
 0x3ba   : > { %v3770_v9 = vadd.f32 %v3738_v42, %v3706_v47  ;;  %v3707_v40 = vmax.f32 %v3551_v49, %v3675_v32  ;;  %1969 = vrot.lane.b32.xlu0 %v1894_v5, %s4635_s16  ;;  %v2974_v34 = vsel %vm2940_vm12, %v2909_v0, %v6479_v20  ;;  %v2052_v28 = vrot.slane %v6545_v46, 1  ;;  %v6565_v49 = vld [vmem:[#allocation2 + $0x108] sm:$0x1f]  ;;  %v4329_v32 = vld [vmem:[#allocation2 + $0x98] sm:$0xf] }
 0x3bb   : > { %3804 = vst.msk [vmem:[%s5023_s8 + $0x10] sm:$0xff] %vm557_vm3, %v3772_v10  ;;  %v3773_v1 = vadd.f32 %v3741_v63, %v3709_v51  ;;  %1667 = vrot.lane.b32.xlu1 %v6515_v16, %s4631_s12  ;;  %v1895_v8 = vshrl.u32 %v6515_v16, 16  ;;  %v4328_v51 = vld [vmem:[#allocation2 + $0x88] sm:$0xf]  ;;  %v2783_v54 = vsel %vm557_vm3, %v2713_v22, %v6259_v2  ;;  %v3039_v20 = vsel %vm3005_vm13, %v2974_v34, %v6497_v4  ;;  %v6603_v5 = vld [vmem:[#allocation2 + $0x100] sm:$0xf0] }
 0x3bc   : > { %3802 = vst.msk [vmem:[%s5023_s8] sm:$0xff] %vm557_vm3, %v3770_v9  ;;  %v3771_v47 = vadd.f32 %v3739_v27, %v3707_v40  ;;  %v2634_v14 = vpop.permute.xlu0 %2633  ;;  %v2710_v19 = vsel %vm2665_vm9, %v4328_v51, %v6203_v13  ;;  %v1909_v17 = vsel %vm1127_vm5, %v1904_v33, %v1908_v48  ;;  %v2848_v16 = vsel %vm2810_vm10, %v2783_v54, %v6452_v7 }
 0x3bd   : > { %3805 = vst.msk [vmem:[%s5023_s8 + $0x18] sm:$0xff] %vm557_vm3, %v3773_v1  ;;  %v2492_v42 = vpop.permute.xlu1 %2491  ;;  %v3104_v24 = vsel %vm3070_vm14, %v3039_v20, %v2490_v11  ;;  %v2913_v13 = vsel %vm2875_vm11, %v2848_v16, %v6470_v43  ;;  %v2054_v4 = vrot.slane %v6503_v15, 1  ;;  %v2055_v63 = vrot.slane %v6565_v49, 1 }
 0x3be   : > { %3803 = vst.msk [vmem:[%s5023_s8 + $0x8] sm:$0xff] %vm557_vm3, %v3771_v47  ;;  %1973 = vrot.lane.b32.xlu0 %v1909_v17, %s4635_s16  ;;  %v3169_v2 = vsel %vm3135_vm15, %v3104_v24, %v2634_v14  ;;  %v2715_v7 = vsel %vm2665_vm9, %v4329_v32, %v6291_v36  ;;  %v2781_v11 = vsel %vm557_vm3, %v2710_v19, %v6152_v31  ;;  %v1910_v44 = vshrl.u32 %v6524_v3, 16  ;;  %v6631_v47 = vld [vmem:[#allocation2 + $0x108] sm:$0xf]  ;;  %v6636_v19 = vld [vmem:[#allocation2 + $0x118] sm:$0xf] }
 0x3bf   : > { %1671 = vrot.lane.b32.xlu1 %v6524_v3, %s4631_s12  ;;  %v2978_v33 = vsel %vm2940_vm12, %v2913_v13, %v6487_v30  ;;  %v2846_v45 = vsel %vm2810_vm10, %v2781_v11, %v6461_v29  ;;  %v2053_v36 = vsel %vm1464_vm4, %v2051_v37, %v2052_v28  ;;  %v1897_v27 = vor.u32 %v1895_v8, %v1893_v41  ;;  %v6609_v29 = vld [vmem:[#allocation2 + $0x110] sm:$0xf0] }
 0x3c0   : > { %v2638_v43 = vpop.permute.xlu0 %2637  ;;  %v3043_v15 = vsel %vm3005_vm13, %v2978_v33, %v6507_v59  ;;  %v2911_v31 = vsel %vm2875_vm11, %v2846_v45, %v6481_v55  ;;  %v3321_v3 = vshrl.u32 %v3169_v2, 16  ;;  %v3324_v58 = vshll.u32 %v3169_v2, 16 }
 0x3c1   : > { %v2496_v10 = vpop.permute.xlu1 %2495  ;;  %v3108_v30 = vsel %vm3070_vm14, %v3043_v15, %v2494_v53  ;;  %v2785_v59 = vsel %vm557_vm3, %v2715_v7, %v6276_v26  ;;  %v2976_v22 = vsel %vm2940_vm12, %v2911_v31, %v6499_v61  ;;  %v2428_v55 = vshrl.u32 %v6603_v5, 16  ;;  %v1091_v7 = vld [vmem:[#allocation2 + $0x100] sm:$0xf8] }
 0x3c2   : > { %2113 = vrot.lane.b32.xlu0 %v2053_v36, %s4633_s19  ;;  %v3173_v41 = vsel %vm3135_vm15, %v3108_v30, %v2638_v43  ;;  %v2850_v53 = vsel %vm2810_vm10, %v2785_v59, %v6472_v23  ;;  %v3041_v9 = vsel %vm3005_vm13, %v2976_v22, %v6528_v25  ;;  %v2056_v26 = vsel %vm1464_vm4, %v2054_v4, %v2055_v63 }
 0x3c3   : > { %1971 = vrot.lane.b32.xlu1 %v1897_v27, %s4635_s16  ;;  %v2430_v61 = vshll.u32 %v6603_v5, 16  ;;  %v2915_v0 = vsel %vm2875_vm11, %v2850_v53, %v6489_v56  ;;  %v3106_v1 = vsel %vm3070_vm14, %v3041_v9, %v2492_v42  ;;  %v1912_v34 = vor.u32 %v1910_v44, %v1908_v48 }
 0x3c4   : > { %v6622_v40 = vpop.permute.xlu0 %1649  ;;  %v2445_v23 = vshll.u32 %v6609_v29, 16  ;;  %v3323_v25 = vrot.slane %v3321_v3, 3  ;;  %v3326_v14 = vrot.slane %v3324_v58, 4  ;;  %v3336_v8 = vshrl.u32 %v3173_v41, 16 }
 0x3c5   : > { %v2636_v37 = vpop.permute.xlu1 %2635  ;;  %v2980_v56 = vsel %vm2940_vm12, %v2915_v0, %v6509_v60  ;;  %v3339_v54 = vshll.u32 %v3173_v41, 16  ;;  %v2432_v16 = vrot.slane %v2430_v61, 1  ;;  %v2435_v24 = vshll.u32 %v6631_v47, 16 }
 0x3c6   : > { %v3171_v51 = vsel %vm3135_vm15, %v3106_v1, %v2636_v37  ;;  %2117 = vrot.lane.b32.xlu0 %v2056_v26, %s4633_s19  ;;  %v3045_v48 = vsel %vm3005_vm13, %v2980_v56, %v6542_v57  ;;  %v2443_v13 = vshrl.u32 %v6609_v29, 16  ;;  %v2450_v11 = vshll.u32 %v6636_v19, 16  ;;  %v1125_v1 = vld [vmem:[#allocation2 + $0x108] sm:$0x1f]  ;;  %v1126_v37 = vld [vmem:[#allocation2 + $0x118] sm:$0x1f] }
 0x3c7   : > { %v3328_v20 = vshrl.u32 %v3171_v51, 16  ;;  %v3331_v42 = vshll.u32 %v3171_v51, 16  ;;  %1975 = vrot.lane.b32.xlu1 %v1912_v34, %s4635_s16  ;;  %v3110_v2 = vsel %vm3070_vm14, %v3045_v48, %v2496_v10  ;;  %v3327_v33 = vor.u32 %v3326_v14, %v3323_v25  ;;  %v1093_v10 = vld [vmem:[#allocation2 + $0x110] sm:$0xf8] }
 0x3c8   : > { %v6643_v17 = vpop.permute.xlu0 %1653  ;;  %v3338_v43 = vrot.slane %v3336_v8, 3  ;;  %v2447_v57 = vrot.slane %v2445_v23, 1  ;;  %v3341_v45 = vrot.slane %v3339_v54, 4  ;;  %v2433_v22 = vor.u32 %v2432_v16, %v2428_v55 }
 0x3c9   : > { %v3330_v4 = vrot.slane %v3328_v20, 3  ;;  %v3333_v32 = vrot.slane %v3331_v42, 4  ;;  %v2640_v60 = vpop.permute.xlu1 %2639  ;;  %v2437_v41 = vrot.slane %v2435_v24, 1  ;;  %v2595_v23 = vrot.slane %v6603_v5, 1 }
 0x3ca   : > { %v3175_v44 = vsel %vm3135_vm15, %v3110_v2, %v2640_v60  ;;  %2209 = vrot.lane.b32.xlu0 %v1091_v7, %s4632_s14  ;;  %v3342_v53 = vor.u32 %v3341_v45, %v3338_v43  ;;  %v2448_v46 = vor.u32 %v2447_v57, %v2443_v13  ;;  %v2596_v25 = vrot.slane %v1125_v1, 1  ;;  %v954_v13 = vld [vmem:[#allocation2 + $0xa0] sm:$0xf8]  ;;  %v956_v60 = vld [vmem:[#allocation2 + $0xb0] sm:$0xf8] }
 0x3cb   : > { %v3334_v15 = vor.u32 %v3333_v32, %v3330_v4  ;;  %v3343_v36 = vshrl.u32 %v3175_v44, 16  ;;  %v3346_v27 = vshll.u32 %v3175_v44, 16  ;;  %2115 = vrot.lane.b32.xlu1 %v2052_v28, %s4633_s19  ;;  %v2452_v28 = vrot.slane %v2450_v11, 1 }
 0x3cc   : > { %v1954_v31 = vpop.permute.xlu0 %1953  ;;  %v2438_v55 = vsel %vm1127_vm5, %v2433_v22, %v2437_v41  ;;  %v2439_v14 = vshrl.u32 %v6631_v47, 16  ;;  %v2598_v8 = vrot.slane %v6609_v29, 1  ;;  %v2599_v51 = vrot.slane %v1126_v37, 1 }
 0x3cd   : > { %v3345_v30 = vrot.slane %v3343_v36, 3  ;;  %v3348_v3 = vrot.slane %v3346_v27, 4  ;;  %v6654_v58 = vpop.permute.xlu1 %1651  ;;  %v3335_v59 = vsel %vm3200_vm0, %v3327_v33, %v3334_v15  ;;  %v2453_v49 = vsel %vm1127_vm5, %v2448_v46, %v2452_v28 }
 0x3ce   : > { %4161 = vmatprep.mubr.msk.bf16.mxu1 %vm3460_vm1, %v3335_v59  ;;  %2213 = vrot.lane.b32.xlu0 %v1093_v10, %s4632_s14  ;;  %v2454_v56 = vshrl.u32 %v6636_v19, 16  ;;  %v2597_v42 = vsel %vm1464_vm4, %v2595_v23, %v2596_v25  ;;  %v2441_v48 = vor.u32 %v2439_v14, %v2437_v41  ;;  %v2600_v5 = vsel %vm1464_vm4, %v2598_v8, %v2599_v51  ;;  %v4331_v10 = vld [vmem:[#allocation2 + $0xb8] sm:$0xf] }
 0x3cf   : > { %v3349_v9 = vor.u32 %v3348_v3, %v3345_v30  ;;  %2119 = vrot.lane.b32.xlu1 %v2055_v63, %s4633_s19  ;;  %v2718_v2 = vsel %vm2665_vm9, %v954_v13, %v6268_v38  ;;  %v2723_v11 = vsel %vm2665_vm9, %v956_v60, %v6303_v52 }
 0x3d0   : > { %v1958_v26 = vpop.permute.xlu0 %1957  ;;  %v2787_v7 = vsel %vm557_vm3, %v2718_v2, %v6251_v21  ;;  %v2791_v45 = vsel %vm557_vm3, %v2723_v11, %v6289_v12  ;;  %v4330_v21 = vld [vmem:[#allocation2 + $0xa8] sm:$0xf]  ;;  %v3742_v2 = vld [vmem:[%s5023_s8 + $0x20] sm:$0xff] }
 0x3d1   : > { %v6662_v61 = vpop.permute.xlu1 %1655  ;;  %v3350_v0 = vsel %vm3200_vm0, %v3342_v53, %v3349_v9  ;;  %v2852_v33 = vsel %vm2810_vm10, %v2787_v7, %v6622_v40  ;;  %v2720_v36 = vsel %vm2665_vm9, %v4330_v21, %v6283_v39  ;;  %v2856_v52 = vsel %vm2810_vm10, %v2791_v45, %v6643_v17 }
 0x3d2   : > { %4162 = vmatmul.mubr.msk.bf16.gmra.mrb[16].mxu1 %vm3460_vm1, %v3350_v0  ;;  %2513 = vrot.lane.b32.xlu0 %v2438_v55, %s4636_s5  ;;  %v2917_v44 = vsel %vm2875_vm11, %v2852_v33, %v1954_v31  ;;  %v2725_v31 = vsel %vm2665_vm9, %v4331_v10, %v6317_v50  ;;  %v2921_v30 = vsel %vm2875_vm11, %v2856_v52, %v1958_v26 }
 0x3d3   : > { %2211 = vrot.lane.b32.xlu1 %v6631_v47, %s4632_s14  ;;  %v2456_v47 = vor.u32 %v2454_v56, %v2452_v28  ;;  %v2789_v39 = vsel %vm557_vm3, %v2720_v36, %v6270_v18  ;;  %v2793_v50 = vsel %vm557_vm3, %v2725_v31, %v6305_v35  ;;  %v3743_v36 = vld [vmem:[%s5023_s8 + $0x28] sm:$0xff] }
 0x3d4   : > { %v2098_v63 = vpop.permute.xlu0 %2097  ;;  %v2854_v53 = vsel %vm2810_vm10, %v2789_v39, %v6654_v58  ;;  %v2858_v28 = vsel %vm2810_vm10, %v2793_v50, %v6662_v61 }
 0x3d5   : > { %v6671_v34 = vpop.permute.xlu1 %1955  ;;  %v2982_v38 = vsel %vm2940_vm12, %v2917_v44, %v2098_v63 }
 0x3d6   : > { %2517 = vrot.lane.b32.xlu0 %v2453_v49, %s4636_s5  ;;  %v2919_v1 = vsel %vm2875_vm11, %v2854_v53, %v6671_v34 }
 0x3d7   : > { %2215 = vrot.lane.b32.xlu1 %v6636_v19, %s4632_s14 }
 0x3d8   : > { %v2102_v54 = vpop.permute.xlu0 %2101 }
 0x3d9   : > { %v1960_v20 = vpop.permute.xlu1 %1959  ;;  %v2986_v59 = vsel %vm2940_vm12, %v2921_v30, %v2102_v54 }
 0x3da   : > { %2657 = vrot.lane.b32.xlu0 %v2597_v42, %s4634_s24  ;;  %v2923_v58 = vsel %vm2875_vm11, %v2858_v28, %v1960_v20 }
 0x3db   : > { %2515 = vrot.lane.b32.xlu1 %v2441_v48, %s4636_s5 }
 0x3dc   : > { %v2194_v16 = vpop.permute.xlu0 %2193 }
 0x3dd   : > { %v2100_v24 = vpop.permute.xlu1 %2099  ;;  %v3047_v15 = vsel %vm3005_vm13, %v2982_v38, %v2194_v16  ;;  %v3744_v16 = vld [vmem:[%s5023_s8 + $0x30] sm:$0xff] }
 0x3de   : > { %2661 = vrot.lane.b32.xlu0 %v2600_v5, %s4634_s24  ;;  %v2984_v35 = vsel %vm2940_vm12, %v2919_v1, %v2100_v24 }
 0x3df   : > { %2519 = vrot.lane.b32.xlu1 %v2456_v47, %s4636_s5 }
 0x3e0   : > { %v2198_v29 = vpop.permute.xlu0 %2197 }
 0x3e1   : > { %v2104_v19 = vpop.permute.xlu1 %2103  ;;  %v3051_v17 = vsel %vm3005_vm13, %v2986_v59, %v2198_v29 }
 0x3e2   : > { %v2988_v63 = vsel %vm2940_vm12, %v2923_v58, %v2104_v19 }
 0x3e3   : > { %2659 = vrot.lane.b32.xlu1 %v2596_v25, %s4634_s24 }
 0x3e4   : > { %v2498_v4 = vpop.permute.xlu0 %2497 }
 0x3e5   : > { %v2196_v32 = vpop.permute.xlu1 %2195  ;;  %v3112_v40 = vsel %vm3070_vm14, %v3047_v15, %v2498_v4 }
 0x3e6   : > { %v3049_v23 = vsel %vm3005_vm13, %v2984_v35, %v2196_v32 }
 0x3e7   : > { %2663 = vrot.lane.b32.xlu1 %v2599_v51, %s4634_s24 }
 0x3e8   : > { %v2502_v43 = vpop.permute.xlu0 %2501 }
 0x3e9   : > { %v2200_v57 = vpop.permute.xlu1 %2199  ;;  %v3116_v9 = vsel %vm3070_vm14, %v3051_v17, %v2502_v43  ;;  %v3745_v43 = vld [vmem:[%s5023_s8 + $0x38] sm:$0xff] }
 0x3ea   : > { %v3053_v25 = vsel %vm3005_vm13, %v2988_v63, %v2200_v57 }
 0x3ec   : > { %v2642_v27 = vpop.permute.xlu0 %2641 }
 0x3ed   : > { %v3177_v12 = vsel %vm3135_vm15, %v3112_v40, %v2642_v27  ;;  %v2500_v3 = vpop.permute.xlu1 %2499 }
 0x3ee   : > { %v3351_v22 = vshrl.u32 %v3177_v12, 16  ;;  %v3354_v41 = vshll.u32 %v3177_v12, 16  ;;  %v3114_v54 = vsel %vm3070_vm14, %v3049_v23, %v2500_v3 }
 0x3f0   : > { %v2646_v46 = vpop.permute.xlu0 %2645  ;;  %v6721_v26 = vrot.slane %v3351_v22, 3  ;;  %v3356_v0 = vrot.slane %v3354_v41, 4 }
 0x3f1   : > { %v3181_v55 = vsel %vm3135_vm15, %v3116_v9, %v2646_v46  ;;  %v2504_v18 = vpop.permute.xlu1 %2503 }
 0x3f2   : > { %v4151_v49 = vpop.f32.mrb[4].mxu1  ;;  %v3366_v14 = vshrl.u32 %v3181_v55, 16  ;;  %v3357_v56 = vor.u32 %v3356_v0, %v6721_v26  ;;  %v3369_v47 = vshll.u32 %v3181_v55, 16  ;;  %v3118_v11 = vsel %vm3070_vm14, %v3053_v25, %v2504_v18  ;;  %v958_v25 = vld [vmem:[#allocation2 + $0xc0] sm:$0xf8] }
 0x3f3   : > { %v3572_v37 = vadd.f32 %v4151_v49, %v6513_v6  ;;  %v3563_v61 = vpop.f32.mrb[5].mxu1 }
 0x3f4   : > { %v3564_v8 = vadd.f32 %v6513_v6, %v3563_v61  ;;  %v4152_v34 = vpop.f32.mrb[6].mxu1  ;;  %v6733_v51 = vpop.permute.xlu0 %1657  ;;  %v3368_v7 = vrot.slane %v3366_v14, 3  ;;  %v3371_v40 = vrot.slane %v3369_v47, 4  ;;  %v2728_v14 = vsel %vm2665_vm9, %v958_v25, %v6296_v62  ;;  %v7117_v62 = vld [vmem:[#allocation32_spill] sm:$0xff] }
 0x3f5   : > { %v3680_v20 = vmul.f32 0.1, %v3572_v37  ;;  %v3575_v42 = vadd.f32 %v4152_v34, %v6513_v6  ;;  %v2644_v48 = vpop.permute.xlu1 %2643  ;;  %v3566_v5 = vpop.f32.mrb[7].mxu1  ;;  %v960_v34 = vld [vmem:[#allocation2 + $0xd0] sm:$0xf8] }
 0x3f6   : > { %v3678_v24 = vmul.f32 0.1, %v3564_v8  ;;  %v3179_v29 = vsel %vm3135_vm15, %v3114_v54, %v2644_v48  ;;  %v3567_v19 = vadd.f32 %v6513_v6, %v3566_v5  ;;  %v3372_v9 = vor.u32 %v3371_v40, %v3368_v7  ;;  %v7114_v54 = vld [vmem:[#allocation35_spill] sm:$0xff]  ;;  %v7120_v40 = vld [vmem:[#allocation36_spill] sm:$0xff] }
 0x3f7   : > { %v3712_v13 = vmax.f32 %v3572_v37, %v3680_v20  ;;  %v3681_v4 = vmul.f32 0.1, %v3575_v42  ;;  %v3358_v32 = vshrl.u32 %v3179_v29, 16  ;;  %v3361_v60 = vshll.u32 %v3179_v29, 16  ;;  %v7116_v29 = vld [vmem:[#allocation31_spill] sm:$0xff] }
 0x3f8   : > { %v3710_v33 = vmax.f32 %v3564_v8, %v3678_v24  ;;  %v3679_v44 = vmul.f32 0.1, %v3567_v19  ;;  %v1662_v57 = vpop.permute.xlu0 %1661  ;;  %v2733_v20 = vsel %vm2665_vm9, %v960_v34, %v7114_v54  ;;  %v4332_v24 = vld [vmem:[#allocation2 + $0xc8] sm:$0xf]  ;;  %v4333_v7 = vld [vmem:[#allocation2 + $0xd8] sm:$0xf] }
 0x3f9   : > { %v3776_v38 = vadd.f32 %v3744_v16, %v3712_v13  ;;  %v3713_v45 = vmax.f32 %v3575_v42, %v3681_v4  ;;  %v3360_v15 = vrot.slane %v3358_v32, 3  ;;  %v3363_v21 = vrot.slane %v3361_v60, 4  ;;  %v2648_v52 = vpop.permute.xlu1 %2647  ;;  %v7115_v42 = vld [vmem:[#allocation30_spill] sm:$0xff] }
 0x3fa   : > { %v3774_v27 = vadd.f32 %v3742_v2, %v3710_v33  ;;  %v3711_v10 = vmax.f32 %v3567_v19, %v3679_v44  ;;  %v3183_v31 = vsel %vm3135_vm15, %v3118_v11, %v2648_v52  ;;  %v2795_v48 = vsel %vm557_vm3, %v2728_v14, %v7115_v42  ;;  %v7118_v11 = vld [vmem:[#allocation40_spill] sm:$0xff]  ;;  %v7119_v44 = vld [vmem:[#allocation29_spill] sm:$0xff] }
 0x3fb   : > { %3808 = vst.msk [vmem:[%s5023_s8 + $0x30] sm:$0xff] %vm557_vm3, %v3776_v38  ;;  %v3777_v30 = vadd.f32 %v3745_v43, %v3713_v45  ;;  %v3364_v12 = vor.u32 %v3363_v21, %v3360_v15  ;;  %v3373_v3 = vshrl.u32 %v3183_v31, 16  ;;  %v3376_v59 = vshll.u32 %v3183_v31, 16 }
 0x3fc   : > { %3806 = vst.msk [vmem:[%s5023_s8 + $0x20] sm:$0xff] %vm557_vm3, %v3774_v27  ;;  %v3775_v22 = vadd.f32 %v3743_v36, %v3711_v10  ;;  %v1962_v41 = vpop.permute.xlu0 %1961  ;;  %v2860_v5 = vsel %vm2810_vm10, %v2795_v48, %v6733_v51  ;;  %v2730_v19 = vsel %vm2665_vm9, %v4332_v24, %v7116_v29  ;;  %v2799_v13 = vsel %vm557_vm3, %v2733_v20, %v7117_v62  ;;  %v3748_v48 = vld [vmem:[%s5023_s8 + $0x50] sm:$0xff] }
 0x3fd   : > { %3809 = vst.msk [vmem:[%s5023_s8 + $0x38] sm:$0xff] %vm557_vm3, %v3777_v30  ;;  %v3375_v39 = vrot.slane %v3373_v3, 3  ;;  %v3378_v17 = vrot.slane %v3376_v59, 4  ;;  %v1660_v53 = vpop.permute.xlu1 %1659  ;;  %v3365_v50 = vsel %vm3200_vm0, %v3357_v56, %v3364_v12  ;;  %v2925_v47 = vsel %vm2875_vm11, %v2860_v5, %v1962_v41 }
 0x3fe   : > { %3807 = vst.msk [vmem:[%s5023_s8 + $0x28] sm:$0xff] %vm557_vm3, %v3775_v22  ;;  %4165 = vmatprep.mubr.msk.bf16.mxu1 %vm3460_vm1, %v3365_v50  ;;  %v2864_v32 = vsel %vm2810_vm10, %v2799_v13, %v1662_v57  ;;  %v2735_v51 = vsel %vm2665_vm9, %v4333_v7, %v7118_v11  ;;  %v2797_v38 = vsel %vm557_vm3, %v2730_v19, %v7119_v44  ;;  %v3746_v19 = vld [vmem:[%s5023_s8 + $0x40] sm:$0xff] }
 0x3ff   : > { %v3379_v46 = vor.u32 %v3378_v17, %v3375_v39  ;;  %v2862_v57 = vsel %vm2810_vm10, %v2797_v38, %v1660_v53  ;;  %v2801_v27 = vsel %vm557_vm3, %v2735_v51, %v7120_v40  ;;  %v3747_v38 = vld [vmem:[%s5023_s8 + $0x48] sm:$0xff] }
 0x400   : > { %v1966_v28 = vpop.permute.xlu0 %1965 }
 0x401   : > { %v1664_v26 = vpop.permute.xlu1 %1663  ;;  %v3380_v0 = vsel %vm3200_vm0, %v3372_v9, %v3379_v46  ;;  %v2929_v33 = vsel %vm2875_vm11, %v2864_v32, %v1966_v28  ;;  %v3749_v32 = vld [vmem:[%s5023_s8 + $0x58] sm:$0xff] }
 0x402   : > { %4166 = vmatmul.mubr.msk.bf16.gmra.mrb[20].mxu1 %vm3460_vm1, %v3380_v0  ;;  %v2866_v30 = vsel %vm2810_vm10, %v2801_v27, %v1664_v26 }
 0x404   : > { %v2106_v55 = vpop.permute.xlu0 %2105 }
 0x405   : > { %v1964_v18 = vpop.permute.xlu1 %1963  ;;  %v2990_v2 = vsel %vm2940_vm12, %v2925_v47, %v2106_v55 }
 0x406   : > { %v2927_v10 = vsel %vm2875_vm11, %v2862_v57, %v1964_v18 }
 0x408   : > { %v2110_v1 = vpop.permute.xlu0 %2109 }
 0x409   : > { %v1968_v58 = vpop.permute.xlu1 %1967  ;;  %v2994_v45 = vsel %vm2940_vm12, %v2929_v33, %v2110_v1 }
 0x40a   : > { %v2931_v22 = vsel %vm2875_vm11, %v2866_v30, %v1968_v58 }
 0x40c   : > { %v2202_v49 = vpop.permute.xlu0 %2201 }
 0x40d   : > { %v2108_v35 = vpop.permute.xlu1 %2107  ;;  %v3055_v60 = vsel %vm3005_vm13, %v2990_v2, %v2202_v49 }
 0x40e   : > { %v2992_v12 = vsel %vm2940_vm12, %v2927_v10, %v2108_v35 }
 0x410   : > { %v2206_v63 = vpop.permute.xlu0 %2205 }
 0x411   : > { %v2112_v37 = vpop.permute.xlu1 %2111  ;;  %v3059_v36 = vsel %vm3005_vm13, %v2994_v45, %v2206_v63 }
 0x412   : > { %v2996_v53 = vsel %vm2940_vm12, %v2931_v22, %v2112_v37 }
 0x414   : > { %v2506_v61 = vpop.permute.xlu0 %2505 }
 0x415   : > { %v2204_v23 = vpop.permute.xlu1 %2203  ;;  %v3120_v43 = vsel %vm3070_vm14, %v3055_v60, %v2506_v61 }
 0x416   : > { %v3057_v41 = vsel %vm3005_vm13, %v2992_v12, %v2204_v23 }
 0x418   : > { %v2510_v8 = vpop.permute.xlu0 %2509 }
 0x419   : > { %v2208_v56 = vpop.permute.xlu1 %2207  ;;  %v3124_v31 = vsel %vm3070_vm14, %v3059_v36, %v2510_v8 }
 0x41a   : > { %v3061_v46 = vsel %vm3005_vm13, %v2996_v53, %v2208_v56 }
 0x41c   : > { %v2650_v16 = vpop.permute.xlu0 %2649 }
 0x41d   : > { %v2508_v4 = vpop.permute.xlu1 %2507  ;;  %v3185_v15 = vsel %vm3135_vm15, %v3120_v43, %v2650_v16 }
 0x41e   : > { %v3381_v3 = vshrl.u32 %v3185_v15, 16  ;;  %v3384_v39 = vshll.u32 %v3185_v15, 16  ;;  %v3122_v50 = vsel %vm3070_vm14, %v3057_v41, %v2508_v4 }
 0x420   : > { %v2654_v21 = vpop.permute.xlu0 %2653  ;;  %v3383_v55 = vrot.slane %v3381_v3, 3  ;;  %v3386_v35 = vrot.slane %v3384_v39, 4 }
 0x421   : > { %v2512_v52 = vpop.permute.xlu1 %2511  ;;  %v3189_v59 = vsel %vm3135_vm15, %v3124_v31, %v2654_v21 }
 0x422   : > { %v3396_v28 = vshrl.u32 %v3189_v59, 16  ;;  %v3399_v63 = vshll.u32 %v3189_v59, 16  ;;  %v3126_v37 = vsel %vm3070_vm14, %v3061_v46, %v2512_v52  ;;  %v3387_v51 = vor.u32 %v3386_v35, %v3383_v55 }
 0x424   : > { %v6793_v17 = vpop.permute.xlu0 %1665  ;;  %v3398_v42 = vrot.slane %v3396_v28, 3  ;;  %v3401_v2 = vrot.slane %v3399_v63, 4  ;;  %v962_v28 = vld [vmem:[#allocation2 + $0xe0] sm:$0xf8]  ;;  %v7123_v63 = vld [vmem:[#allocation39_spill] sm:$0xff] }
 0x425   : > { %v2652_v9 = vpop.permute.xlu1 %2651 }
 0x426   : > { %v3187_v26 = vsel %vm3135_vm15, %v3122_v50, %v2652_v9  ;;  %v4155_v0 = vpop.f32.mrb[8].mxu1  ;;  %v3402_v40 = vor.u32 %v3401_v2, %v3398_v42 }
 0x427   : > { %v3388_v18 = vshrl.u32 %v3187_v26, 16  ;;  %v3391_v1 = vshll.u32 %v3187_v26, 16  ;;  %v3588_v58 = vadd.f32 %v4155_v0, %v6513_v6  ;;  %v3579_v49 = vpop.f32.mrb[9].mxu1  ;;  %v7121_v0 = vld [vmem:[#allocation33_spill] sm:$0xff] }
 0x428   : > { %v3580_v61 = vadd.f32 %v6513_v6, %v3579_v49  ;;  %v4156_v23 = vpop.f32.mrb[10].mxu1  ;;  %v6802_v25 = vpop.permute.xlu0 %1669  ;;  %v2738_v55 = vsel %vm2665_vm9, %v962_v28, %v7121_v0 }
 0x429   : > { %v3390_v14 = vrot.slane %v3388_v18, 3  ;;  %v3393_v8 = vrot.slane %v3391_v1, 4  ;;  %v3684_v34 = vmul.f32 0.1, %v3588_v58  ;;  %v3591_v56 = vadd.f32 %v4156_v23, %v6513_v6  ;;  %v2656_v54 = vpop.permute.xlu1 %2655  ;;  %v3582_v20 = vpop.f32.mrb[11].mxu1 }
 0x42a   : > { %v3682_v5 = vmul.f32 0.1, %v3580_v61  ;;  %v3191_v47 = vsel %vm3135_vm15, %v3126_v37, %v2656_v54  ;;  %v3583_v16 = vadd.f32 %v6513_v6, %v3582_v20  ;;  %v964_v1 = vld [vmem:[#allocation2 + $0xf0] sm:$0xf8]  ;;  %v7125_v20 = vld [vmem:[#allocation37_spill] sm:$0xff] }
 0x42b   : > { %v3394_v24 = vor.u32 %v3393_v8, %v3390_v14  ;;  %v3716_v29 = vmax.f32 %v3588_v58, %v3684_v34  ;;  %v3685_v62 = vmul.f32 0.1, %v3591_v56  ;;  %v3403_v13 = vshrl.u32 %v3191_v47, 16  ;;  %v7122_v58 = vld [vmem:[#allocation28_spill] sm:$0xff]  ;;  %v4334_v34 = vld [vmem:[#allocation2 + $0xe8] sm:$0xf] }
 0x42c   : > { %v3714_v4 = vmax.f32 %v3580_v61, %v3682_v5  ;;  %v3406_v60 = vshll.u32 %v3191_v47, 16  ;;  %v3683_v7 = vmul.f32 0.1, %v3583_v16  ;;  %v1970_v11 = vpop.permute.xlu0 %1969  ;;  %v2803_v49 = vsel %vm557_vm3, %v2738_v55, %v7122_v58 }
 0x42d   : > { %v3780_v33 = vadd.f32 %v3748_v48, %v3716_v29  ;;  %v3717_v43 = vmax.f32 %v3591_v56, %v3685_v62  ;;  %v3405_v44 = vrot.slane %v3403_v13, 3  ;;  %v1668_v45 = vpop.permute.xlu1 %1667  ;;  %v3395_v52 = vsel %vm3200_vm0, %v3387_v51, %v3394_v24  ;;  %v7124_v56 = vld [vmem:[#allocation38_spill] sm:$0xff]  ;;  %v4335_v29 = vld [vmem:[#allocation2 + $0xf8] sm:$0xf] }
 0x42e   : > { %v3778_v15 = vadd.f32 %v3746_v19, %v3714_v4  ;;  %v3408_v21 = vrot.slane %v3406_v60, 4  ;;  %v3715_v57 = vmax.f32 %v3583_v16, %v3683_v7  ;;  %4169 = vmatprep.mubr.msk.bf16.mxu1 %vm3460_vm1, %v3395_v52  ;;  %v2743_v37 = vsel %vm2665_vm9, %v964_v1, %v7123_v63  ;;  %v7126_v19 = vld [vmem:[#allocation42_spill] sm:$0xff] }
 0x42f   : > { %3812 = vst.msk [vmem:[%s5023_s8 + $0x50] sm:$0xff] %vm557_vm3, %v3780_v33  ;;  %v3781_v36 = vadd.f32 %v3749_v32, %v3717_v43  ;;  %v2868_v61 = vsel %vm2810_vm10, %v2803_v49, %v6793_v17  ;;  %v2740_v54 = vsel %vm2665_vm9, %v4334_v34, %v7124_v56  ;;  %v2807_v42 = vsel %vm557_vm3, %v2743_v37, %v7125_v20  ;;  %v7127_v13 = vld [vmem:[#allocation34_spill] sm:$0xff] }
 0x430   : > { %3810 = vst.msk [vmem:[%s5023_s8 + $0x40] sm:$0xff] %vm557_vm3, %v3778_v15  ;;  %v3409_v27 = vor.u32 %v3408_v21, %v3405_v44  ;;  %v3779_v10 = vadd.f32 %v3747_v38, %v3715_v57  ;;  %v1974_v31 = vpop.permute.xlu0 %1973  ;;  %v2933_v23 = vsel %vm2875_vm11, %v2868_v61, %v1970_v11  ;;  %v2872_v47 = vsel %vm2810_vm10, %v2807_v42, %v6802_v25  ;;  %v7128_v44 = vld [vmem:[#allocation41_spill] sm:$0xff] }
 0x431   : > { %3813 = vst.msk [vmem:[%s5023_s8 + $0x58] sm:$0xff] %vm557_vm3, %v3781_v36  ;;  %v1672_v30 = vpop.permute.xlu1 %1671  ;;  %v2937_v16 = vsel %vm2875_vm11, %v2872_v47, %v1974_v31  ;;  %v2745_v62 = vsel %vm2665_vm9, %v4335_v29, %v7126_v19  ;;  %v2805_v2 = vsel %vm557_vm3, %v2740_v54, %v7127_v13  ;;  %v3753_v19 = vld [vmem:[%s5023_s8 + $0x78] sm:$0xff] }
 0x432   : > { %3811 = vst.msk [vmem:[%s5023_s8 + $0x48] sm:$0xff] %vm557_vm3, %v3779_v10  ;;  %v3410_v12 = vsel %vm3200_vm0, %v3402_v40, %v3409_v27  ;;  %v2870_v60 = vsel %vm2810_vm10, %v2805_v2, %v1668_v45  ;;  %v2809_v38 = vsel %vm557_vm3, %v2745_v62, %v7128_v44 }
 0x433   : > { %4170 = vmatmul.mubr.msk.bf16.gmra.mrb[24].mxu1 %vm3460_vm1, %v3410_v12  ;;  %v2874_v57 = vsel %vm2810_vm10, %v2809_v38, %v1672_v30 }
 0x434   : > { %v2114_v3 = vpop.permute.xlu0 %2113 }
 0x435   : > { %v1972_v59 = vpop.permute.xlu1 %1971  ;;  %v2998_v14 = vsel %vm2940_vm12, %v2933_v23, %v2114_v3 }
 0x436   : > { %v2935_v11 = vsel %vm2875_vm11, %v2870_v60, %v1972_v59 }
 0x438   : > { %v2118_v22 = vpop.permute.xlu0 %2117 }
 0x439   : > { %v1976_v41 = vpop.permute.xlu1 %1975  ;;  %v3002_v4 = vsel %vm2940_vm12, %v2937_v16, %v2118_v22  ;;  %v3750_v16 = vld [vmem:[%s5023_s8 + $0x60] sm:$0xff] }
 0x43a   : > { %v2939_v36 = vsel %vm2875_vm11, %v2874_v57, %v1976_v41  ;;  %v3756_v57 = vld [vmem:[%s5023_s8 + $0x90] sm:$0xff] }
 0x43c   : > { %v2210_v39 = vpop.permute.xlu0 %2209 }
 0x43d   : > { %v2116_v53 = vpop.permute.xlu1 %2115  ;;  %v3063_v48 = vsel %vm3005_vm13, %v2998_v14, %v2210_v39 }
 0x43e   : > { %v3000_v15 = vsel %vm2940_vm12, %v2935_v11, %v2116_v53  ;;  %v6887_v11 = vld [vmem:[%s349_s20] ss:$0 sm:$0xff]  ;;  %s4493_s20 = scalar_lea.vmem %s4492_s29, 8192 }
 0x43f   : > { %p4495_p8 = scmp.lt.s32.totalorder %s4493_s20, %s4487_s9 }
 0x440   : > { %v2214_v50 = vpop.permute.xlu0 %2213 }
 0x441   : > { %v2120_v9 = vpop.permute.xlu1 %2119  ;;  %v3067_v25 = vsel %vm3005_vm13, %v3002_v4, %v2214_v50  ;;  %v3751_v4 = vld [vmem:[%s5023_s8 + $0x68] sm:$0xff]  ;;  %p4496_p12 = por %p4495_p8, %p4494_p0 }
 0x442   : > { %v3004_v3 = vsel %vm2940_vm12, %v2939_v36, %v2120_v9 }
 0x443   : > { %p4497_p5 = pnand %p4496_p12, %p4490_p9 }
 0x444   : > { %v2514_v46 = vpop.permute.xlu0 %2513 }
 0x445   : > { %v2212_v26 = vpop.permute.xlu1 %2211  ;;  %v3128_v17 = vsel %vm3070_vm14, %v3063_v48, %v2514_v46  ;;  %v3752_v48 = vld [vmem:[%s5023_s8 + $0x70] sm:$0xff] }
 0x446   : > { %v3065_v45 = vsel %vm3005_vm13, %v3000_v15, %v2212_v26 }
 0x448   : > { %v2518_v18 = vpop.permute.xlu0 %2517 }
 0x449   : > { %v2216_v35 = vpop.permute.xlu1 %2215  ;;  %v3132_v51 = vsel %vm3070_vm14, %v3067_v25, %v2518_v18 }
 0x44a   : > { %v3069_v53 = vsel %vm3005_vm13, %v3004_v3, %v2216_v35 }
 0x44c   : > { %v2658_v8 = vpop.permute.xlu0 %2657 }
 0x44d   : > { %v2516_v5 = vpop.permute.xlu1 %2515  ;;  %v3193_v24 = vsel %vm3135_vm15, %v3128_v17, %v2658_v8 }
 0x44e   : > { %v3411_v33 = vshrl.u32 %v3193_v24, 16  ;;  %v3414_v43 = vshll.u32 %v3193_v24, 16  ;;  %v3130_v52 = vsel %vm3070_vm14, %v3065_v45, %v2516_v5 }
 0x450   : > { %v2662_v32 = vpop.permute.xlu0 %2661  ;;  %v3413_v27 = vrot.slane %v3411_v33, 3  ;;  %v3416_v10 = vrot.slane %v3414_v43, 4 }
 0x451   : > { %v2520_v7 = vpop.permute.xlu1 %2519  ;;  %v3197_v21 = vsel %vm3135_vm15, %v3132_v51, %v2662_v32 }
 0x452   : > { %v3426_v31 = vshrl.u32 %v3197_v21, 16  ;;  %v3429_v59 = vshll.u32 %v3197_v21, 16  ;;  %v3134_v30 = vsel %vm3070_vm14, %v3069_v53, %v2520_v7  ;;  %v3417_v28 = vor.u32 %v3416_v10, %v3413_v27 }
 0x454   : > { %v3428_v26 = vrot.slane %v3426_v31, 3  ;;  %v3431_v55 = vrot.slane %v3429_v59, 4  ;;  %v3757_v31 = vld [vmem:[%s5023_s8 + $0x98] sm:$0xff] }
 0x455   : > { %v2660_v40 = vpop.permute.xlu1 %2659 }
 0x456   : > { %v3195_v12 = vsel %vm3135_vm15, %v3130_v52, %v2660_v40  ;;  %v3432_v35 = vor.u32 %v3431_v55, %v3428_v26  ;;  %v3754_v40 = vld [vmem:[%s5023_s8 + $0x80] sm:$0xff] }
 0x457   : > { %v3418_v22 = vshrl.u32 %v3195_v12, 16  ;;  %v3421_v39 = vshll.u32 %v3195_v12, 16 }
 0x459   : > { %v3420_v50 = vrot.slane %v3418_v22, 3  ;;  %v3423_v46 = vrot.slane %v3421_v39, 4  ;;  %v2664_v41 = vpop.permute.xlu1 %2663  ;;  %v3755_v22 = vld [vmem:[%s5023_s8 + $0x88] sm:$0xff] }
 0x45a   : > { %v3199_v0 = vsel %vm3135_vm15, %v3134_v30, %v2664_v41 }
 0x45b   : > { %v3424_v18 = vor.u32 %v3423_v46, %v3420_v50  ;;  %v3433_v1 = vshrl.u32 %v3199_v0, 16  ;;  %v3436_v58 = vshll.u32 %v3199_v0, 16 }
 0x45d   : > { %v3435_v49 = vrot.slane %v3433_v1, 3  ;;  %v3438_v9 = vrot.slane %v3436_v58, 4  ;;  %v3425_v63 = vsel %vm3200_vm0, %v3417_v28, %v3424_v18  ;;  %v3760_v58 = vld [vmem:[%s5023_s8 + $0xb0] sm:$0xff] }
 0x45e   : > { %4173 = vmatprep.mubr.msk.bf16.mxu1 %vm3460_vm1, %v3425_v63 }
 0x45f   : > { %v3439_v37 = vor.u32 %v3438_v9, %v3435_v49 }
 0x461   : > { %v3440_v61 = vsel %vm3200_vm0, %v3432_v35, %v3439_v37  ;;  %v3758_v35 = vld [vmem:[%s5023_s8 + $0xa0] sm:$0xff] }
 0x462   : > { %4174 = vmatmul.mubr.msk.bf16.gmra.mrb[28].mxu1 %vm3460_vm1, %v3440_v61 }
 0x475   : > { %v4159_v23 = vpop.f32.mrb[12].mxu1 }
 0x476   : > { %v3604_v14 = vadd.f32 %v4159_v23, %v6513_v6  ;;  %v3595_v8 = vpop.f32.mrb[13].mxu1  ;;  %v3761_v23 = vld [vmem:[%s5023_s8 + $0xb8] sm:$0xff] }
 0x477   : > { %v3596_v34 = vadd.f32 %v6513_v6, %v3595_v8  ;;  %v4160_v56 = vpop.f32.mrb[14].mxu1 }
 0x478   : > { %v3688_v54 = vmul.f32 0.1, %v3604_v14  ;;  %v3607_v20 = vadd.f32 %v4160_v56, %v6513_v6  ;;  %v3598_v42 = vpop.f32.mrb[15].mxu1  ;;  %v3759_v56 = vld [vmem:[%s5023_s8 + $0xa8] sm:$0xff] }
 0x479   : > { %v3686_v5 = vmul.f32 0.1, %v3596_v34  ;;  %v3599_v47 = vadd.f32 %v6513_v6, %v3598_v42 }
 0x47a   : > { %v3720_v17 = vmax.f32 %v3604_v14, %v3688_v54  ;;  %v3689_v24 = vmul.f32 0.1, %v3607_v20 }
 0x47b   : > { %v3718_v29 = vmax.f32 %v3596_v34, %v3686_v5  ;;  %v3687_v62 = vmul.f32 0.1, %v3599_v47 }
 0x47c   : > { %v3784_v13 = vadd.f32 %v3752_v48, %v3720_v17  ;;  %v3721_v2 = vmax.f32 %v3607_v20, %v3689_v24 }
 0x47d   : > { %v3782_v32 = vadd.f32 %v3750_v16, %v3718_v29  ;;  %v3719_v60 = vmax.f32 %v3599_v47, %v3687_v62 }
 0x47e   : > { %3816 = vst.msk [vmem:[%s5023_s8 + $0x70] sm:$0xff] %vm557_vm3, %v3784_v13  ;;  %v3785_v25 = vadd.f32 %v3753_v19, %v3721_v2  ;;  %v3764_v13 = vld [vmem:[%s5023_s8 + $0xd0] sm:$0xff] }
 0x47f   : > { %3814 = vst.msk [vmem:[%s5023_s8 + $0x60] sm:$0xff] %vm557_vm3, %v3782_v32  ;;  %v3783_v6 = vadd.f32 %v3751_v4, %v3719_v60  ;;  %v3762_v60 = vld [vmem:[%s5023_s8 + $0xc0] sm:$0xff] }
 0x480   : > { %3817 = vst.msk [vmem:[%s5023_s8 + $0x78] sm:$0xff] %vm557_vm3, %v3785_v25 }
 0x481   : > { %3815 = vst.msk [vmem:[%s5023_s8 + $0x68] sm:$0xff] %vm557_vm3, %v3783_v6 }
 0x4a5   : > { %v4163_v7 = vpop.f32.mrb[16].mxu1 }
 0x4a6   : > { %v3620_v51 = vadd.f32 %v6887_v11, %v4163_v7  ;;  %v3611_v33 = vpop.f32.mrb[17].mxu1  ;;  %v3765_v7 = vld [vmem:[%s5023_s8 + $0xd8] sm:$0xff] }
 0x4a7   : > { %v3612_v43 = vadd.f32 %v6887_v11, %v3611_v33  ;;  %v4164_v44 = vpop.f32.mrb[18].mxu1 }
 0x4a8   : > { %v3692_v38 = vmul.f32 0.1, %v3620_v51  ;;  %v3623_v15 = vadd.f32 %v6887_v11, %v4164_v44  ;;  %v3614_v21 = vpop.f32.mrb[19].mxu1  ;;  %v3763_v44 = vld [vmem:[%s5023_s8 + $0xc8] sm:$0xff] }
 0x4a9   : > { %v3690_v45 = vmul.f32 0.1, %v3612_v43  ;;  %v3615_v36 = vadd.f32 %v6887_v11, %v3614_v21 }
 0x4aa   : > { %v3724_v52 = vmax.f32 %v3620_v51, %v3692_v38  ;;  %v3693_v27 = vmul.f32 0.1, %v3623_v15 }
 0x4ab   : > { %v3722_v10 = vmax.f32 %v3612_v43, %v3690_v45  ;;  %v3691_v12 = vmul.f32 0.1, %v3615_v36 }
 0x4ac   : > { %v3788_v3 = vadd.f32 %v3756_v57, %v3724_v52  ;;  %v3725_v59 = vmax.f32 %v3623_v15, %v3693_v27 }
 0x4ad   : > { %v3786_v39 = vadd.f32 %v3754_v40, %v3722_v10  ;;  %v3723_v53 = vmax.f32 %v3615_v36, %v3691_v12 }
 0x4ae   : > { %3820 = vst.msk [vmem:[%s5023_s8 + $0x90] sm:$0xff] %vm557_vm3, %v3788_v3  ;;  %v3789_v30 = vadd.f32 %v3757_v31, %v3725_v59  ;;  %v3768_v3 = vld [vmem:[%s5023_s8 + $0xf0] sm:$0xff] }
 0x4af   : > { %3818 = vst.msk [vmem:[%s5023_s8 + $0x80] sm:$0xff] %vm557_vm3, %v3786_v39  ;;  %v3787_v50 = vadd.f32 %v3755_v22, %v3723_v53  ;;  %v3766_v53 = vld [vmem:[%s5023_s8 + $0xe0] sm:$0xff] }
 0x4b0   : > { %3821 = vst.msk [vmem:[%s5023_s8 + $0x98] sm:$0xff] %vm557_vm3, %v3789_v30 }
 0x4b1   : > { %3819 = vst.msk [vmem:[%s5023_s8 + $0x88] sm:$0xff] %vm557_vm3, %v3787_v50 }
 0x4d5   : > { %v4167_v46 = vpop.f32.mrb[20].mxu1 }
 0x4d6   : > { %v3636_v41 = vadd.f32 %v6887_v11, %v4167_v46  ;;  %v3627_v28 = vpop.f32.mrb[21].mxu1  ;;  %v3769_v46 = vld [vmem:[%s5023_s8 + $0xf8] sm:$0xff] }
 0x4d7   : > { %v3628_v26 = vadd.f32 %v6887_v11, %v3627_v28  ;;  %v4168_v0 = vpop.f32.mrb[22].mxu1 }
 0x4d8   : > { %v3696_v55 = vmul.f32 0.1, %v3636_v41  ;;  %v3639_v18 = vadd.f32 %v6887_v11, %v4168_v0  ;;  %v3630_v1 = vpop.f32.mrb[23].mxu1  ;;  %v3767_v0 = vld [vmem:[%s5023_s8 + $0xe8] sm:$0xff] }
 0x4d9   : > { %v3694_v49 = vmul.f32 0.1, %v3628_v26  ;;  %v3631_v9 = vadd.f32 %v6887_v11, %v3630_v1 }
 0x4da   : > { %v3728_v63 = vmax.f32 %v3636_v41, %v3696_v55  ;;  %v3697_v37 = vmul.f32 0.1, %v3639_v18 }
 0x4db   : > { %v3726_v61 = vmax.f32 %v3628_v26, %v3694_v49  ;;  %v3695_v14 = vmul.f32 0.1, %v3631_v9 }
 0x4dc   : > { %v3792_v8 = vadd.f32 %v3760_v58, %v3728_v63  ;;  %v3729_v34 = vmax.f32 %v3639_v18, %v3697_v37 }
 0x4dd   : > { %v3790_v54 = vadd.f32 %v3758_v35, %v3726_v61  ;;  %v3727_v20 = vmax.f32 %v3631_v9, %v3695_v14 }
 0x4de   : > { %3824 = vst.msk [vmem:[%s5023_s8 + $0xb0] sm:$0xff] %vm557_vm3, %v3792_v8  ;;  %v3793_v42 = vadd.f32 %v3761_v23, %v3729_v34 }
 0x4df   : > { %3822 = vst.msk [vmem:[%s5023_s8 + $0xa0] sm:$0xff] %vm557_vm3, %v3790_v54  ;;  %v3791_v48 = vadd.f32 %v3759_v56, %v3727_v20 }
 0x4e0   : > { %3825 = vst.msk [vmem:[%s5023_s8 + $0xb8] sm:$0xff] %vm557_vm3, %v3793_v42 }
 0x4e1   : > { %3823 = vst.msk [vmem:[%s5023_s8 + $0xa8] sm:$0xff] %vm557_vm3, %v3791_v48 }
 0x506   : > { %v4171_v5 = vpop.f32.mrb[24].mxu1 }
 0x507   : > { %v3652_v47 = vadd.f32 %v6887_v11, %v4171_v5  ;;  %v3643_v17 = vpop.f32.mrb[25].mxu1 }
 0x508   : > { %v3644_v16 = vadd.f32 %v6887_v11, %v3643_v17  ;;  %v4172_v24 = vpop.f32.mrb[26].mxu1 }
 0x509   : > { %v3700_v29 = vmul.f32 0.1, %v3652_v47  ;;  %v3655_v19 = vadd.f32 %v6887_v11, %v4172_v24  ;;  %v3646_v62 = vpop.f32.mrb[27].mxu1 }
 0x50a   : > { %v3698_v2 = vmul.f32 0.1, %v3644_v16  ;;  %v3647_v4 = vadd.f32 %v6887_v11, %v3646_v62 }
 0x50b   : > { %v3732_v32 = vmax.f32 %v3652_v47, %v3700_v29  ;;  %v3701_v25 = vmul.f32 0.1, %v3655_v19 }
 0x50c   : > { %v3730_v6 = vmax.f32 %v3644_v16, %v3698_v2  ;;  %v3699_v51 = vmul.f32 0.1, %v3647_v4 }
 0x50d   : > { %v3796_v33 = vadd.f32 %v3764_v13, %v3732_v32  ;;  %v3733_v43 = vmax.f32 %v3655_v19, %v3701_v25 }
 0x50e   : > { %v3794_v38 = vadd.f32 %v3762_v60, %v3730_v6  ;;  %v3731_v15 = vmax.f32 %v3647_v4, %v3699_v51 }
 0x50f   : > { %3828 = vst.msk [vmem:[%s5023_s8 + $0xd0] sm:$0xff] %vm557_vm3, %v3796_v33  ;;  %v3797_v21 = vadd.f32 %v3765_v7, %v3733_v43 }
 0x510   : > { %3826 = vst.msk [vmem:[%s5023_s8 + $0xc0] sm:$0xff] %vm557_vm3, %v3794_v38  ;;  %v3795_v57 = vadd.f32 %v3763_v44, %v3731_v15 }
 0x511   : > { %3829 = vst.msk [vmem:[%s5023_s8 + $0xd8] sm:$0xff] %vm557_vm3, %v3797_v21 }
 0x512   : > { %3827 = vst.msk [vmem:[%s5023_s8 + $0xc8] sm:$0xff] %vm557_vm3, %v3795_v57 }
 0x535   : > { %v4175_v45 = vpop.f32.mrb[28].mxu1 }
 0x536   : > { %v3668_v36 = vadd.f32 %v6887_v11, %v4175_v45  ;;  %v3659_v52 = vpop.f32.mrb[29].mxu1 }
 0x537   : > { %v3660_v40 = vadd.f32 %v6887_v11, %v3659_v52  ;;  %v4176_v27 = vpop.f32.mrb[30].mxu1 }
 0x538   : > { %v3704_v10 = vmul.f32 0.1, %v3668_v36  ;;  %v3671_v31 = vadd.f32 %v6887_v11, %v4176_v27  ;;  %v3662_v12 = vpop.f32.mrb[31].mxu1 }
 0x539   : > { %v3702_v59 = vmul.f32 0.1, %v3660_v40  ;;  %v3663_v22 = vadd.f32 %v6887_v11, %v3662_v12 }
 0x53a   : > { %v3736_v39 = vmax.f32 %v3668_v36, %v3704_v10  ;;  %v3705_v30 = vmul.f32 0.1, %v3671_v31 }
 0x53b   : > { %v3734_v50 = vmax.f32 %v3660_v40, %v3702_v59  ;;  %v3703_v41 = vmul.f32 0.1, %v3663_v22 }
 0x53c   : > { %v3800_v28 = vadd.f32 %v3768_v3, %v3736_v39  ;;  %v3737_v26 = vmax.f32 %v3671_v31, %v3705_v30 }
 0x53d   : > { %v3798_v55 = vadd.f32 %v3766_v53, %v3734_v50  ;;  %v3735_v18 = vmax.f32 %v3663_v22, %v3703_v41 }
 0x53e   : > { %3832 = vst.msk [vmem:[%s5023_s8 + $0xf0] sm:$0xff] %vm557_vm3, %v3800_v28  ;;  %v3801_v11 = vadd.f32 %v3769_v46, %v3737_v26 }
 0x53f   : > { %3830 = vst.msk [vmem:[%s5023_s8 + $0xe0] sm:$0xff] %vm557_vm3, %v3798_v55  ;;  %v3799_v1 = vadd.f32 %v3767_v0, %v3735_v18 }
 0x540   : > { %3833 = vst.msk [vmem:[%s5023_s8 + $0xf8] sm:$0xff] %vm557_vm3, %v3801_v11 }
 0x541   : > { %3831 = vst.msk [vmem:[%s5023_s8 + $0xe8] sm:$0xff] %vm557_vm3, %v3799_v1 }
 0x542   : > { %4500 = shalt.err (!%p4497_p5)
}
 0x543   : > { %s4501_s8 = scalar_lea.hbm %s6952_s21, 4096  ;;  %s4505_s27 = scalar_lea.hbm %s7130_s15, 8192 }
 0x544   : > { %p4502_p3 = scmp.ne.s32.totalorder %s6952_s21, %s4501_s8  ;;  %p4506_p13 = scmp.lt.u32.totalorder %s6952_s21, %s7130_s15 }
 0x545   : > { %p4507_p7 = scmp.lt.u32.totalorder %s4505_s27, %s4501_s8  ;;  %p4509_p6 = scmp.lt.u32.totalorder %s4501_s8, %s6952_s21 }
 0x546   : > { %p4503_p10 = pnand %p4502_p3, %p7131_p11 }
 0x547   : > { %p4508_p1 = por %p4507_p7, %p4506_p13 }
 0x548   : > { %p4504_p2 = pneg %p4503_p10 }
 0x549   : > { %p4510_p4 = por %p4509_p6, %p4508_p1 }
 0x54b   : > { %p4511_p9 = pnand %p4510_p4, %p4504_p2 }
 0x54d   : > { %4514 = shalt.err (!%p4511_p9)
}
 0x54e   : > { %s4638_s19 = smov 128  }
 0x54f   : > { %4192 = dma.vmem_to_hbm [thread:$0]  (%p7131_p11), %s6956_s7, 4096, %s6952_s21, %s3835_s6, %s4638_s19, %s4638_s19, %s4635_s16  }
 0x550 PF: > { %s7132_s24 = sld [smem:[#allocation19_spill]]  ;;  %p4215_p0 = scmp.ge.s32.totalorder %s4617_s28, 2 }
 0x551   : > { %p7133_p8 = scmp.ne.s32.totalorder %s7079_s18, 0 }
 0x553   : > { %p4211_p12 = pnand %p4215_p0, %p7133_p8 }
 0x556   : > { %s3863_s5 = sand.u32 1, %s7132_s24  }
 0x557   : > { %s3864_s1 = scalar_lea.sflag [#allocation5], %s3863_s5 }
 0x558   : > { %4572 = dma.done.wait (!%p4211_p12), %s3864_s1, 4096  }
 0x559   : > { %4574 = vsyncadd (!%p4211_p12), %s3864_s1, 4294963200  ;;  %s27_s28 = sadd.s32 1, %s4617_s28   ;;  %s7134_s18 = sld [smem:[#allocation17_spill]] }
 0x55a   : > { %p24_p5 = scmp.ge.s32.totalorder %s27_s28, 6   ;;  %s7135_s19 = sld [smem:[#allocation18_spill]] }
 0x55b   : > { %s7136_s20 = sld [smem:[#allocation25_spill]]  ;;  %s7137_s30 = sld [smem:[#allocation27_spill]] }
 0x55c   : > { %s7138_s25 = sld [smem:[#allocation22_spill]]  ;;  %s7139_s13 = sld [smem:[#allocation23_spill]] }
 0x55d   : > { %s7140_s27 = sld [smem:[#allocation26_spill]]  ;;  %s7141_s21 = smov %s4593_s22 }
 0x55e   : > { %s7142_s22 = smov %s4597_s23  ;;  %s7144_s24 = smov %s4609_s26 }
 0x55f   :  { %26 = sbr.rel (!%p24_p5) target bundleno = 18 (0x12), region = 139 }
 0x561   : > { %s7143_s23 = smov %s7137_s30 }
 0x562   : > { %s7145_s26 = smov %s7139_s13 }
 0x566   :  { %3869 = vsyncpa [#allocation4], 1 }
 0x567   :  { %3871 = vsyncpa [#allocation4 + $0x1], 1 }
 0x568   :  { %3872 = vsyncpa [#allocation7], 1 }
 0x569   :  { %3874 = vsyncpa [#allocation7 + $0x1], 1 }
 0x56a   :  { %3875 = vsyncpa [#allocation10], 1 }
 0x56b   :  { %3877 = vsyncpa [#allocation10 + $0x1], 1 }
 0x56c   :  { %3878 = vsyncpa [#allocation5], 1 }
 0x56d   :  { %3880 = vsyncpa [#allocation5 + $0x1], 1 }

</bundles_post_ra>
